<compile_context>
chip_gen: v7x
topology: tpu7x:2x2x1
jax: 0.10.0
libtpu: 0.0.40
codegen_flags: <defaults>
</compile_context>

<pallas_src>
import functools

import jax
import jax.numpy as jnp
from jax import lax
from jax.experimental import pallas as pl
from jax.experimental.pallas import tpu as pltpu

VMEM_LIMIT = 32 * 1024 * 1024  # conservative for v5e/v6e/v7x scoped VMEM


# ----------------------------------------------------------------------------
# Tiling helpers
# ----------------------------------------------------------------------------
def _row_block(n, target=512):
    """Largest row tile <= target that divides n (multiple of 8), preferring
    >= 2 grid steps so v7x's two TensorCores both get work."""
    if n % 8 != 0:
        return n
    bm = min(n, target)
    bm -= bm % 8
    while n % bm != 0:
        bm -= 8
    if bm == n and n >= 16 and (n // 2) % 8 == 0:
        bm = n // 2
    return bm


def _pick_group(bs, target=8):
    """Number of (batch) sequences processed per attention grid step."""
    g = min(bs, target)
    while bs % g != 0:
        g -= 1
    if bs // g < 2 and bs % 2 == 0 and bs >= 2:
        g = bs // 2
    return max(g, 1)


# ----------------------------------------------------------------------------
# Kernels
# ----------------------------------------------------------------------------
def _ln_linear_kernel(*refs, do_ln, eps, activation, has_residual,
                      compute_dtype):
    """Optional LayerNorm -> matmul(+bias) -> optional ReLU -> optional
    residual add, all in one pass over a row tile."""
    it = iter(refs)
    x_ref = next(it)
    if do_ln:
        g_ref = next(it)
        be_ref = next(it)
    w_ref = next(it)
    b_ref = next(it)
    r_ref = next(it) if has_residual else None
    o_ref = next(it)

    x = x_ref[...].astype(jnp.float32)
    if do_ln:
        mean = jnp.mean(x, axis=-1, keepdims=True)
        var = jnp.mean((x - mean) ** 2, axis=-1, keepdims=True)
        x = (x - mean) * lax.rsqrt(var + eps)
        x = x * g_ref[...].astype(jnp.float32) + be_ref[...].astype(jnp.float32)

    y = jnp.dot(x.astype(compute_dtype), w_ref[...].astype(compute_dtype),
                preferred_element_type=jnp.float32)
    y = y + b_ref[...].astype(jnp.float32)
    if activation == "relu":
        y = jnp.maximum(y, 0.0)
    if has_residual:
        y = y + r_ref[...].astype(jnp.float32)
    o_ref[...] = y.astype(o_ref.dtype)


def _proj_concat_kernel(x1_ref, x2_ref, w1_ref, w2_ref, b_ref, r_ref, o_ref, *,
                        compute_dtype):
    """projection(concat([x1, x2], -1)) + bias + residual, with the concat
    realised as two matmuls against the row-split weight (no HBM concat)."""
    y = jnp.dot(x1_ref[...].astype(compute_dtype),
                w1_ref[...].astype(compute_dtype),
                preferred_element_type=jnp.float32)
    y = y + jnp.dot(x2_ref[...].astype(compute_dtype),
                    w2_ref[...].astype(compute_dtype),
                    preferred_element_type=jnp.float32)
    y = y + b_ref[...].astype(jnp.float32) + r_ref[...].astype(jnp.float32)
    o_ref[...] = y.astype(o_ref.dtype)


def _attention_kernel(qkv_ref, o_ref, *, heads, d_k, d_v, inv_temp,
                      compute_dtype):
    """Scaled dot-product attention for a group of G sequences, all heads,
    from a contiguous q|k|v slab (G, n, heads*(2*d_k + d_v))."""
    qkv = qkv_ref[...]                      # (G, n, heads*(2*d_k + d_v))
    outs = []
    for h in range(heads):                  # tiny static loop, unrolled
        q = qkv[:, :, h * d_k:(h + 1) * d_k]
        k = qkv[:, :, (heads + h) * d_k:(heads + h + 1) * d_k]
        v = qkv[:, :, 2 * heads * d_k + h * d_v:
                2 * heads * d_k + (h + 1) * d_v]
        # scores = (q @ k^T) / temperature   (scale folded into s, not q)
        s = jnp.einsum("bqd,bkd->bqk",
                       q.astype(compute_dtype), k.astype(compute_dtype),
                       preferred_element_type=jnp.float32) * inv_temp
        s = s - jnp.max(s, axis=-1, keepdims=True)
        p = jnp.exp(s)
        p = p * pl.reciprocal(jnp.sum(p, axis=-1, keepdims=True), approx=True)
        # attn dropout (p=0.1) is identity in eval mode.
        o = jnp.einsum("bqk,bkd->bqd",
                       p.astype(compute_dtype), v.astype(compute_dtype),
                       preferred_element_type=jnp.float32)
        outs.append(o)
    o_ref[...] = jnp.concatenate(outs, axis=-1).astype(o_ref.dtype)


# ----------------------------------------------------------------------------
# Pallas wrappers
# ----------------------------------------------------------------------------
def fused_ln_linear(x2d, w, b, *, gamma=None, beta=None, residual=None,
                    activation=None, eps=1e-5, compute_dtype=jnp.bfloat16,
                    max_rows=512):
    n, d_in = x2d.shape
    d_out = w.shape[1]
    bm = _row_block(n, max_rows)
    do_ln = gamma is not None
    has_res = residual is not None

    inputs = [x2d]
    in_specs = [pl.BlockSpec((bm, d_in), lambda i: (i, 0))]
    if do_ln:
        inputs += [gamma.reshape(1, d_in), beta.reshape(1, d_in)]
        in_specs += [pl.BlockSpec((1, d_in), lambda i: (0, 0)),
                     pl.BlockSpec((1, d_in), lambda i: (0, 0))]
    inputs += [w, b.reshape(1, d_out)]
    in_specs += [pl.BlockSpec((d_in, d_out), lambda i: (0, 0)),
                 pl.BlockSpec((1, d_out), lambda i: (0, 0))]
    if has_res:
        inputs.append(residual)
        in_specs.append(pl.BlockSpec((bm, d_out), lambda i: (i, 0)))

    kernel = functools.partial(_ln_linear_kernel, do_ln=do_ln, eps=eps,
                               activation=activation, has_residual=has_res,
                               compute_dtype=compute_dtype)
    return pl.pallas_call(
        kernel,
        out_shape=jax.ShapeDtypeStruct((n, d_out), x2d.dtype),
        grid=(n // bm,),
        in_specs=in_specs,
        out_specs=pl.BlockSpec((bm, d_out), lambda i: (i, 0)),
        compiler_params=pltpu.CompilerParams(
            dimension_semantics=("parallel",),
            vmem_limit_bytes=VMEM_LIMIT),
    )(*inputs)


def proj_concat_residual(x_t, x_s, w_t, w_s, bias, residual,
                         compute_dtype=jnp.bfloat16, max_rows=512):
    n, d_half = x_t.shape
    d_out = w_t.shape[1]
    bm = _row_block(n, max_rows)
    return pl.pallas_call(
        functools.partial(_proj_concat_kernel, compute_dtype=compute_dtype),
        out_shape=jax.ShapeDtypeStruct((n, d_out), x_t.dtype),
        grid=(n // bm,),
        in_specs=[
            pl.BlockSpec((bm, d_half), lambda i: (i, 0)),
            pl.BlockSpec((bm, d_half), lambda i: (i, 0)),
            pl.BlockSpec((d_half, d_out), lambda i: (0, 0)),
            pl.BlockSpec((d_half, d_out), lambda i: (0, 0)),
            pl.BlockSpec((1, d_out), lambda i: (0, 0)),
            pl.BlockSpec((bm, d_out), lambda i: (i, 0)),
        ],
        out_specs=pl.BlockSpec((bm, d_out), lambda i: (i, 0)),
        compiler_params=pltpu.CompilerParams(
            dimension_semantics=("parallel",),
            vmem_limit_bytes=VMEM_LIMIT),
    )(x_t, x_s, w_t, w_s, bias.reshape(1, d_out), residual)


def factorised_attention(qkv, heads, d_k, d_v, temperature,
                         compute_dtype=jnp.bfloat16):
    bs, n, c = qkv.shape                    # c = heads * (2*d_k + d_v)
    g = _pick_group(bs)
    return pl.pallas_call(
        functools.partial(_attention_kernel, heads=heads, d_k=d_k, d_v=d_v,
                          inv_temp=1.0 / temperature,
                          compute_dtype=compute_dtype),
        out_shape=jax.ShapeDtypeStruct((bs, n, heads * d_v), qkv.dtype),
        grid=(bs // g,),
        in_specs=[pl.BlockSpec((g, n, c), lambda i: (i, 0, 0))],
        out_specs=pl.BlockSpec((g, n, heads * d_v), lambda i: (i, 0, 0)),
        compiler_params=pltpu.CompilerParams(
            dimension_semantics=("parallel",),
            vmem_limit_bytes=VMEM_LIMIT),
    )(qkv)


# ----------------------------------------------------------------------------
# Module forward (glue in plain JAX, compute in Pallas kernels)
# ----------------------------------------------------------------------------
def factorised_transformer_layer(token, p, n_head,
                                 compute_dtype=jnp.bfloat16):
    b, n_t, n_h, n_w, d = token.shape
    d_k = d // n_head
    d_v = d_k
    heads2 = n_head // 2
    hdk = heads2 * d_k
    hdv = heads2 * d_v
    N = b * n_t * n_h * n_w

    x2d = token.reshape(N, d)               # also the first residual

    # --- fused LN1 + all six Q/K/V projections (one lane-dense matmul) ------
    w_qkv = jnp.concatenate([p["w_qt"], p["w_kt"], p["w_vt"],
                             p["w_qs"], p["w_ks"], p["w_vs"]], axis=1)
    b_qkv = jnp.concatenate([p["b_qt"], p["b_kt"], p["b_vt"],
                             p["b_qs"], p["b_ks"], p["b_vs"]], axis=0)
    qkv = fused_ln_linear(x2d, w_qkv, b_qkv,
                          gamma=p["ln1_g"], beta=p["ln1_b"],
                          compute_dtype=compute_dtype)        # (N, 6*hdk)

    c3 = 3 * hdk                                              # q|k|v per branch
    qkv_t = qkv[:, :c3]                                       # temporal slab
    qkv_s = qkv[:, c3:]                                       # spatial slab

    # 'b n_t n_h n_w c -> (b n_t) (n_h n_w) c'  : pure reshape
    qkv_t = qkv_t.reshape(b * n_t, n_h * n_w, c3)
    # 'b n_t n_h n_w c -> (b n_h n_w) n_t c'    : single transpose of the slab
    qkv_s = (qkv_s.reshape(b, n_t, n_h * n_w, c3)
             .transpose(0, 2, 1, 3)
             .reshape(b * n_h * n_w, n_t, c3))

    temp = d_k ** 0.5
    t_out = factorised_attention(qkv_t, heads2, d_k, d_v, temp, compute_dtype)
    s_out = factorised_attention(qkv_s, heads2, d_k, d_v, temp, compute_dtype)

    # back to (b, n_t, n_h, n_w) row order
    t_out = t_out.reshape(N, hdv)
    s_out = (s_out.reshape(b, n_h * n_w, n_t, hdv)
             .transpose(0, 2, 1, 3)
             .reshape(N, hdv))

    # --- projection with fused concat + first residual ----------------------
    y2d = proj_concat_residual(t_out, s_out,
                               p["proj_w"][:hdv], p["proj_w"][hdv:],
                               p["proj_b"], x2d, compute_dtype)

    # --- FFN: fused LN2 + ffc1 + ReLU, then ffc2 with fused residual --------
    h = fused_ln_linear(y2d, p["ffc1_w"], p["ffc1_b"],
                        gamma=p["ln2_g"], beta=p["ln2_b"],
                        activation="relu", compute_dtype=compute_dtype)
    out2d = fused_ln_linear(h, p["ffc2_w"], p["ffc2_b"], residual=y2d,
                            compute_dtype=compute_dtype)
    return out2d.reshape(b, n_t, n_h, n_w, d)


# ----------------------------------------------------------------------------
# Pure-JAX reference (for correctness check)
# ----------------------------------------------------------------------------
def reference(token, p, n_head):
    b, n_t, n_h, n_w, d = token.shape
    d_k = d // n_head
    d_v = d_k
    heads2 = n_head // 2

    def ln(x, g, bb):
        m = jnp.mean(x, -1, keepdims=True)
        v = jnp.mean((x - m) ** 2, -1, keepdims=True)
        return (x - m) / jnp.sqrt(v + 1e-5) * g + bb

    def attn(x, wq, bq, wk, bk, wv, bv):
        bs, n, _ = x.shape
        q = (x @ wq + bq).reshape(bs, n, heads2, d_k).transpose(0, 2, 1, 3)
        k = (x @ wk + bk).reshape(bs, n, heads2, d_k).transpose(0, 2, 1, 3)
        v = (x @ wv + bv).reshape(bs, n, heads2, d_v).transpose(0, 2, 1, 3)
        s = jnp.einsum("bhqd,bhkd->bhqk", q / (d_k ** 0.5), k)
        pmat = jax.nn.softmax(s, axis=-1)
        o = jnp.einsum("bhqk,bhkd->bhqd", pmat, v)
        return o.transpose(0, 2, 1, 3).reshape(bs, n, heads2 * d_v)

    residual = token
    x = ln(token, p["ln1_g"], p["ln1_b"])
    temporal = x.reshape(b * n_t, n_h * n_w, d)
    spatial = jnp.transpose(x, (0, 2, 3, 1, 4)).reshape(b * n_h * n_w, n_t, d)
    t_out = attn(temporal, p["w_qt"], p["b_qt"], p["w_kt"], p["b_kt"],
                 p["w_vt"], p["b_vt"])
    s_out = attn(spatial, p["w_qs"], p["b_qs"], p["w_ks"], p["b_ks"],
                 p["w_vs"], p["b_vs"])
    t5 = t_out.reshape(b, n_t, n_h, n_w, -1)
    s5 = s_out.reshape(b, n_h, n_w, n_t, -1).transpose(0, 3, 1, 2, 4)
    y = jnp.concatenate([t5, s5], axis=-1)
    y = y @ p["proj_w"] + p["proj_b"] + residual
    y_res = y
    z = ln(y, p["ln2_g"], p["ln2_b"])
    h = jnp.maximum(z @ p["ffc1_w"] + p["ffc1_b"], 0.0)
    return h @ p["ffc2_w"] + p["ffc2_b"] + y_res


# ----------------------------------------------------------------------------
# Deterministic parameter init (shapes from the module __init__)
# ----------------------------------------------------------------------------
def init_params(key, d_model, n_head, d_feature):
    d_k = d_model // n_head
    heads2 = n_head // 2
    keys = jax.random.split(key, 16)

    def lin(k, din, dout):
        k1, k2 = jax.random.split(k)
        w = jax.random.normal(k1, (din, dout), jnp.float32) / jnp.sqrt(din)
        bb = jax.random.normal(k2, (dout,), jnp.float32) * 0.01
        return w, bb

    p = {}
    for i, name in enumerate(["qt", "kt", "vt", "qs", "ks", "vs"]):
        w, bb = lin(keys[i], d_model, heads2 * d_k)
        p["w_" + name] = w
        p["b_" + name] = bb
    p["proj_w"], p["proj_b"] = lin(keys[6], d_model, d_model)
    p["ffc1_w"], p["ffc1_b"] = lin(keys[7], d_model, d_feature)
    p["ffc2_w"], p["ffc2_b"] = lin(keys[8], d_feature, d_model)
    p["ln1_g"] = jnp.ones((d_model,), jnp.float32)
    p["ln1_b"] = jnp.zeros((d_model,), jnp.float32)
    p["ln2_g"] = jnp.ones((d_model,), jnp.float32)
    p["ln2_b"] = jnp.zeros((d_model,), jnp.float32)
    return p


if __name__ == "__main__":
    # Small shapes consistent with the module defaults (scaled down).
    B, N_T, N_H, N_W = 2, 2, 4, 4
    D_MODEL, N_HEAD, D_FEATURE = 128, 4, 256

    key = jax.random.PRNGKey(0)
    kp, kx = jax.random.split(key)
    params = init_params(kp, D_MODEL, N_HEAD, D_FEATURE)
    token = jax.random.normal(kx, (B, N_T, N_H, N_W, D_MODEL), jnp.float32)

    fwd = jax.jit(functools.partial(factorised_transformer_layer,
                                    n_head=N_HEAD))
    out = jax.block_until_ready(fwd(token, params))

    ref = reference(token, params, N_HEAD)
    assert out.shape == token.shape, (out.shape, token.shape)
    # Tolerance sized for bf16 MXU operands with f32 accumulation vs the
    # all-f32 reference; real bugs produce O(1) errors.
    if not jnp.allclose(out, ref, atol=3e-2, rtol=3e-2):
        raise AssertionError("Pallas output does not match reference")
    print("KERNEL_OK")
</pallas_src>

<mosaic_0001>
module attributes {stable_mosaic.version = 11 : i64} {
  func.func @_ln_linear_kernel(%arg0: i32, %arg1: memref<32x128xf32, #tpu.memory_space<vmem>>, %arg2: memref<1x128xf32, #tpu.memory_space<vmem>>, %arg3: memref<1x128xf32, #tpu.memory_space<vmem>>, %arg4: memref<128x384xf32, #tpu.memory_space<vmem>>, %arg5: memref<1x384xf32, #tpu.memory_space<vmem>>, %arg6: memref<32x384xf32, #tpu.memory_space<vmem>>) attributes {dimension_semantics = [#tpu.dimension_semantics<parallel>], iteration_bounds = array<i64: 2>, scalar_prefetch = 0 : i64, scratch_operands = 0 : i64, tpu.core_type = #tpu.core_type<tc>, window_params = [{transform_indices = @transform_0, window_bounds = array<i64: 32, 128>}, {pipeline_mode = #tpu.pipeline_mode<synchronous>, transform_indices = @transform_1, window_bounds = array<i64: 1, 128>}, {pipeline_mode = #tpu.pipeline_mode<synchronous>, transform_indices = @transform_2, window_bounds = array<i64: 1, 128>}, {pipeline_mode = #tpu.pipeline_mode<synchronous>, transform_indices = @transform_3, window_bounds = array<i64: 128, 384>}, {pipeline_mode = #tpu.pipeline_mode<synchronous>, transform_indices = @transform_4, window_bounds = array<i64: 1, 384>}, {transform_indices = @transform_5, window_bounds = array<i64: 32, 384>}]} {
    %c0 = arith.constant 0 : index
    %c0_0 = arith.constant 0 : index
    %0 = vector.load %arg1[%c0, %c0_0] : memref<32x128xf32, #tpu.memory_space<vmem>>, vector<32x128xf32>
    %cst = arith.constant dense<0.000000e+00> : vector<32xf32>
    %1 = vector.multi_reduction <add>, %0, %cst [1] : vector<32x128xf32> to vector<32xf32>
    %2 = vector.shape_cast %1 : vector<32xf32> to vector<32x1xf32>
    %cst_1 = arith.constant 1.280000e+02 : f32
    %3 = vector.broadcast %cst_1 : f32 to vector<32x1xf32>
    %4 = arith.divf %2, %3 : vector<32x1xf32>
    %5 = vector.broadcast %4 : vector<32x1xf32> to vector<32x128xf32>
    %6 = arith.subf %0, %5 : vector<32x128xf32>
    %7 = arith.mulf %6, %6 : vector<32x128xf32>
    %cst_2 = arith.constant dense<0.000000e+00> : vector<32xf32>
    %8 = vector.multi_reduction <add>, %7, %cst_2 [1] : vector<32x128xf32> to vector<32xf32>
    %9 = vector.shape_cast %8 : vector<32xf32> to vector<32x1xf32>
    %cst_3 = arith.constant 1.280000e+02 : f32
    %10 = vector.broadcast %cst_3 : f32 to vector<32x1xf32>
    %11 = arith.divf %9, %10 : vector<32x1xf32>
    %12 = vector.broadcast %4 : vector<32x1xf32> to vector<32x128xf32>
    %13 = arith.subf %0, %12 : vector<32x128xf32>
    %cst_4 = arith.constant 9.99999974E-6 : f32
    %14 = vector.broadcast %cst_4 : f32 to vector<32x1xf32>
    %15 = arith.addf %11, %14 : vector<32x1xf32>
    %16 = math.rsqrt %15 : vector<32x1xf32>
    %17 = vector.broadcast %16 : vector<32x1xf32> to vector<32x128xf32>
    %18 = arith.mulf %13, %17 : vector<32x128xf32>
    %c0_5 = arith.constant 0 : index
    %c0_6 = arith.constant 0 : index
    %19 = vector.load %arg2[%c0_5, %c0_6] : memref<1x128xf32, #tpu.memory_space<vmem>>, vector<1x128xf32>
    %20 = vector.broadcast %19 : vector<1x128xf32> to vector<32x128xf32>
    %21 = arith.mulf %18, %20 : vector<32x128xf32>
    %c0_7 = arith.constant 0 : index
    %c0_8 = arith.constant 0 : index
    %22 = vector.load %arg3[%c0_7, %c0_8] : memref<1x128xf32, #tpu.memory_space<vmem>>, vector<1x128xf32>
    %23 = vector.broadcast %22 : vector<1x128xf32> to vector<32x128xf32>
    %24 = arith.addf %21, %23 : vector<32x128xf32>
    %25 = arith.truncf %24 : vector<32x128xf32> to vector<32x128xbf16>
    %c0_9 = arith.constant 0 : index
    %c0_10 = arith.constant 0 : index
    %26 = vector.load %arg4[%c0_9, %c0_10] : memref<128x384xf32, #tpu.memory_space<vmem>>, vector<128x384xf32>
    %27 = arith.truncf %26 : vector<128x384xf32> to vector<128x384xbf16>
    %cst_11 = arith.constant dense<0.000000e+00> : vector<32x384xf32>
    %28 = tpu.matmul %25, %27, %cst_11 {dimension_numbers = #tpu.dot_dimension_numbers<[1], [0], [0], [1], [0, 0, 1, 1], [], []>} : vector<32x128xbf16>, vector<128x384xbf16>, vector<32x384xf32> -> vector<32x384xf32>
    %c0_12 = arith.constant 0 : index
    %c0_13 = arith.constant 0 : index
    %29 = vector.load %arg5[%c0_12, %c0_13] : memref<1x384xf32, #tpu.memory_space<vmem>>, vector<1x384xf32>
    %30 = vector.broadcast %29 : vector<1x384xf32> to vector<32x384xf32>
    %31 = arith.addf %28, %30 : vector<32x384xf32>
    %c0_14 = arith.constant 0 : index
    %c0_15 = arith.constant 0 : index
    %32 = vector.load %arg6[%c0_14, %c0_15] : memref<32x384xf32, #tpu.memory_space<vmem>>, vector<32x384xf32>
    tpu.vector_store %arg6[%c0_14, %c0_15], %31 {strides = array<i32>} : memref<32x384xf32, #tpu.memory_space<vmem>>, vector<32x384xf32>,
    return
  }
  func.func @transform_0(%arg0: i32) -> (i32, i32) {
    %c0_i32 = arith.constant 0 : i32
    %c0_i32_0 = arith.constant 0 : i32
    return %arg0, %c0_i32 : i32, i32
  }
  func.func @transform_1(%arg0: i32) -> (i32, i32) {
    %c0_i32 = arith.constant 0 : i32
    %c0_i32_0 = arith.constant 0 : i32
    %c0_i32_1 = arith.constant 0 : i32
    return %c0_i32, %c0_i32_0 : i32, i32
  }
  func.func @transform_2(%arg0: i32) -> (i32, i32) {
    %c0_i32 = arith.constant 0 : i32
    %c0_i32_0 = arith.constant 0 : i32
    %c0_i32_1 = arith.constant 0 : i32
    return %c0_i32, %c0_i32_0 : i32, i32
  }
  func.func @transform_3(%arg0: i32) -> (i32, i32) {
    %c0_i32 = arith.constant 0 : i32
    %c0_i32_0 = arith.constant 0 : i32
    %c0_i32_1 = arith.constant 0 : i32
    return %c0_i32, %c0_i32_0 : i32, i32
  }
  func.func @transform_4(%arg0: i32) -> (i32, i32) {
    %c0_i32 = arith.constant 0 : i32
    %c0_i32_0 = arith.constant 0 : i32
    %c0_i32_1 = arith.constant 0 : i32
    return %c0_i32, %c0_i32_0 : i32, i32
  }
  func.func @transform_5(%arg0: i32) -> (i32, i32) {
    %c0_i32 = arith.constant 0 : i32
    %c0_i32_0 = arith.constant 0 : i32
    return %arg0, %c0_i32 : i32, i32
  }
}

module attributes {stable_mosaic.version = 11 : i64} {
  func.func @_attention_kernel(%arg0: i32, %arg1: memref<8x2x192xf32, #tpu.memory_space<vmem>>, %arg2: memref<8x2x64xf32, #tpu.memory_space<vmem>>) attributes {dimension_semantics = [#tpu.dimension_semantics<parallel>], iteration_bounds = array<i64: 4>, scalar_prefetch = 0 : i64, scratch_operands = 0 : i64, tpu.core_type = #tpu.core_type<tc>, window_params = [{transform_indices = @transform_0, window_bounds = array<i64: 8, 2, 192>}, {transform_indices = @transform_1, window_bounds = array<i64: 8, 2, 64>}]} {
    %c0 = arith.constant 0 : index
    %c0_0 = arith.constant 0 : index
    %c0_1 = arith.constant 0 : index
    %0 = vector.load %arg1[%c0, %c0_0, %c0_1] : memref<8x2x192xf32, #tpu.memory_space<vmem>>, vector<8x2x192xf32>
    %1 = vector.extract_strided_slice %0 {offsets = [0, 0, 0], sizes = [8, 2, 32], strides = [1, 1, 1]} : vector<8x2x192xf32> to vector<8x2x32xf32>
    %2 = vector.extract_strided_slice %0 {offsets = [0, 0, 64], sizes = [8, 2, 32], strides = [1, 1, 1]} : vector<8x2x192xf32> to vector<8x2x32xf32>
    %3 = vector.extract_strided_slice %0 {offsets = [0, 0, 128], sizes = [8, 2, 32], strides = [1, 1, 1]} : vector<8x2x192xf32> to vector<8x2x32xf32>
    %4 = arith.truncf %1 : vector<8x2x32xf32> to vector<8x2x32xbf16>
    %5 = arith.truncf %2 : vector<8x2x32xf32> to vector<8x2x32xbf16>
    "tpu.trace_start"() <{level = 10 : i32, message = "bqd,bkd->bqk"}> : () -> ()
    %cst = arith.constant dense<0.000000e+00> : vector<8x2x2xf32>
    %6 = tpu.matmul %4, %5, %cst {dimension_numbers = #tpu.dot_dimension_numbers<[2], [2], [1], [1], [0, 0, 0, 1, 1, 1], [0], [0]>} : vector<8x2x32xbf16>, vector<8x2x32xbf16>, vector<8x2x2xf32> -> vector<8x2x2xf32>
    "tpu.trace_stop"() : () -> ()
    %cst_2 = arith.constant 0.176776692 : f32
    %7 = vector.broadcast %cst_2 : f32 to vector<8x2x2xf32>
    %8 = arith.mulf %6, %7 : vector<8x2x2xf32>
    %cst_3 = arith.constant dense<0xFF800000> : vector<8x2xf32>
    %9 = vector.multi_reduction <maximumf>, %8, %cst_3 [2] : vector<8x2x2xf32> to vector<8x2xf32>
    %10 = vector.shape_cast %9 : vector<8x2xf32> to vector<8x2x1xf32>
    %11 = vector.broadcast %10 : vector<8x2x1xf32> to vector<8x2x2xf32>
    %12 = arith.subf %8, %11 : vector<8x2x2xf32>
    %13 = math.exp %12 : vector<8x2x2xf32>
    %cst_4 = arith.constant dense<0.000000e+00> : vector<8x2xf32>
    %14 = vector.multi_reduction <add>, %13, %cst_4 [2] : vector<8x2x2xf32> to vector<8x2xf32>
    %15 = vector.shape_cast %14 : vector<8x2xf32> to vector<8x2x1xf32>
    %16 = tpu.reciprocal %15 {approx = true} : vector<8x2x1xf32> -> vector<8x2x1xf32>
    %17 = vector.broadcast %16 : vector<8x2x1xf32> to vector<8x2x2xf32>
    %18 = arith.mulf %13, %17 : vector<8x2x2xf32>
    %19 = arith.truncf %18 : vector<8x2x2xf32> to vector<8x2x2xbf16>
    %20 = arith.truncf %3 : vector<8x2x32xf32> to vector<8x2x32xbf16>
    "tpu.trace_start"() <{level = 10 : i32, message = "bqk,bkd->bqd"}> : () -> ()
    %cst_5 = arith.constant dense<0.000000e+00> : vector<8x2x32xf32>
    %21 = tpu.matmul %19, %20, %cst_5 {dimension_numbers = #tpu.dot_dimension_numbers<[2], [1], [1], [2], [0, 0, 0, 1, 1, 2], [0], [0]>} : vector<8x2x2xbf16>, vector<8x2x32xbf16>, vector<8x2x32xf32> -> vector<8x2x32xf32>
    "tpu.trace_stop"() : () -> ()
    %22 = vector.extract_strided_slice %0 {offsets = [0, 0, 32], sizes = [8, 2, 32], strides = [1, 1, 1]} : vector<8x2x192xf32> to vector<8x2x32xf32>
    %23 = vector.extract_strided_slice %0 {offsets = [0, 0, 96], sizes = [8, 2, 32], strides = [1, 1, 1]} : vector<8x2x192xf32> to vector<8x2x32xf32>
    %24 = vector.extract_strided_slice %0 {offsets = [0, 0, 160], sizes = [8, 2, 32], strides = [1, 1, 1]} : vector<8x2x192xf32> to vector<8x2x32xf32>
    %25 = arith.truncf %22 : vector<8x2x32xf32> to vector<8x2x32xbf16>
    %26 = arith.truncf %23 : vector<8x2x32xf32> to vector<8x2x32xbf16>
    "tpu.trace_start"() <{level = 10 : i32, message = "bqd,bkd->bqk"}> : () -> ()
    %cst_6 = arith.constant dense<0.000000e+00> : vector<8x2x2xf32>
    %27 = tpu.matmul %25, %26, %cst_6 {dimension_numbers = #tpu.dot_dimension_numbers<[2], [2], [1], [1], [0, 0, 0, 1, 1, 1], [0], [0]>} : vector<8x2x32xbf16>, vector<8x2x32xbf16>, vector<8x2x2xf32> -> vector<8x2x2xf32>
    "tpu.trace_stop"() : () -> ()
    %cst_7 = arith.constant 0.176776692 : f32
    %28 = vector.broadcast %cst_7 : f32 to vector<8x2x2xf32>
    %29 = arith.mulf %27, %28 : vector<8x2x2xf32>
    %cst_8 = arith.constant dense<0xFF800000> : vector<8x2xf32>
    %30 = vector.multi_reduction <maximumf>, %29, %cst_8 [2] : vector<8x2x2xf32> to vector<8x2xf32>
    %31 = vector.shape_cast %30 : vector<8x2xf32> to vector<8x2x1xf32>
    %32 = vector.broadcast %31 : vector<8x2x1xf32> to vector<8x2x2xf32>
    %33 = arith.subf %29, %32 : vector<8x2x2xf32>
    %34 = math.exp %33 : vector<8x2x2xf32>
    %cst_9 = arith.constant dense<0.000000e+00> : vector<8x2xf32>
    %35 = vector.multi_reduction <add>, %34, %cst_9 [2] : vector<8x2x2xf32> to vector<8x2xf32>
    %36 = vector.shape_cast %35 : vector<8x2xf32> to vector<8x2x1xf32>
    %37 = tpu.reciprocal %36 {approx = true} : vector<8x2x1xf32> -> vector<8x2x1xf32>
    %38 = vector.broadcast %37 : vector<8x2x1xf32> to vector<8x2x2xf32>
    %39 = arith.mulf %34, %38 : vector<8x2x2xf32>
    %40 = arith.truncf %39 : vector<8x2x2xf32> to vector<8x2x2xbf16>
    %41 = arith.truncf %24 : vector<8x2x32xf32> to vector<8x2x32xbf16>
    "tpu.trace_start"() <{level = 10 : i32, message = "bqk,bkd->bqd"}> : () -> ()
    %cst_10 = arith.constant dense<0.000000e+00> : vector<8x2x32xf32>
    %42 = tpu.matmul %40, %41, %cst_10 {dimension_numbers = #tpu.dot_dimension_numbers<[2], [1], [1], [2], [0, 0, 0, 1, 1, 2], [0], [0]>} : vector<8x2x2xbf16>, vector<8x2x32xbf16>, vector<8x2x32xf32> -> vector<8x2x32xf32>
    "tpu.trace_stop"() : () -> ()
    %43 = tpu.concatenate %21, %42 in 2 : vector<8x2x32xf32>, vector<8x2x32xf32> -> vector<8x2x64xf32>
    %c0_11 = arith.constant 0 : index
    %c0_12 = arith.constant 0 : index
    %c0_13 = arith.constant 0 : index
    %44 = vector.load %arg2[%c0_11, %c0_12, %c0_13] : memref<8x2x64xf32, #tpu.memory_space<vmem>>, vector<8x2x64xf32>
    tpu.vector_store %arg2[%c0_11, %c0_12, %c0_13], %43 {strides = array<i32>} : memref<8x2x64xf32, #tpu.memory_space<vmem>>, vector<8x2x64xf32>,
    return
  }
  func.func @transform_0(%arg0: i32) -> (i32, i32, i32) {
    %c0_i32 = arith.constant 0 : i32
    %c0_i32_0 = arith.constant 0 : i32
    %c0_i32_1 = arith.constant 0 : i32
    return %arg0, %c0_i32, %c0_i32_0 : i32, i32, i32
  }
  func.func @transform_1(%arg0: i32) -> (i32, i32, i32) {
    %c0_i32 = arith.constant 0 : i32
    %c0_i32_0 = arith.constant 0 : i32
    %c0_i32_1 = arith.constant 0 : i32
    return %arg0, %c0_i32, %c0_i32_0 : i32, i32, i32
  }
}

module attributes {stable_mosaic.version = 11 : i64} {
  func.func @_attention_kernel(%arg0: i32, %arg1: memref<2x16x192xf32, #tpu.memory_space<vmem>>, %arg2: memref<2x16x64xf32, #tpu.memory_space<vmem>>) attributes {dimension_semantics = [#tpu.dimension_semantics<parallel>], iteration_bounds = array<i64: 2>, scalar_prefetch = 0 : i64, scratch_operands = 0 : i64, tpu.core_type = #tpu.core_type<tc>, window_params = [{transform_indices = @transform_0, window_bounds = array<i64: 2, 16, 192>}, {transform_indices = @transform_1, window_bounds = array<i64: 2, 16, 64>}]} {
    %c0 = arith.constant 0 : index
    %c0_0 = arith.constant 0 : index
    %c0_1 = arith.constant 0 : index
    %0 = vector.load %arg1[%c0, %c0_0, %c0_1] : memref<2x16x192xf32, #tpu.memory_space<vmem>>, vector<2x16x192xf32>
    %1 = vector.extract_strided_slice %0 {offsets = [0, 0, 0], sizes = [2, 16, 32], strides = [1, 1, 1]} : vector<2x16x192xf32> to vector<2x16x32xf32>
    %2 = vector.extract_strided_slice %0 {offsets = [0, 0, 64], sizes = [2, 16, 32], strides = [1, 1, 1]} : vector<2x16x192xf32> to vector<2x16x32xf32>
    %3 = vector.extract_strided_slice %0 {offsets = [0, 0, 128], sizes = [2, 16, 32], strides = [1, 1, 1]} : vector<2x16x192xf32> to vector<2x16x32xf32>
    %4 = arith.truncf %1 : vector<2x16x32xf32> to vector<2x16x32xbf16>
    %5 = arith.truncf %2 : vector<2x16x32xf32> to vector<2x16x32xbf16>
    "tpu.trace_start"() <{level = 10 : i32, message = "bqd,bkd->bqk"}> : () -> ()
    %cst = arith.constant dense<0.000000e+00> : vector<2x16x16xf32>
    %6 = tpu.matmul %4, %5, %cst {dimension_numbers = #tpu.dot_dimension_numbers<[2], [2], [1], [1], [0, 0, 0, 1, 1, 1], [0], [0]>} : vector<2x16x32xbf16>, vector<2x16x32xbf16>, vector<2x16x16xf32> -> vector<2x16x16xf32>
    "tpu.trace_stop"() : () -> ()
    %cst_2 = arith.constant 0.176776692 : f32
    %7 = vector.broadcast %cst_2 : f32 to vector<2x16x16xf32>
    %8 = arith.mulf %6, %7 : vector<2x16x16xf32>
    %cst_3 = arith.constant dense<0xFF800000> : vector<2x16xf32>
    %9 = vector.multi_reduction <maximumf>, %8, %cst_3 [2] : vector<2x16x16xf32> to vector<2x16xf32>
    %10 = vector.shape_cast %9 : vector<2x16xf32> to vector<2x16x1xf32>
    %11 = vector.broadcast %10 : vector<2x16x1xf32> to vector<2x16x16xf32>
    %12 = arith.subf %8, %11 : vector<2x16x16xf32>
    %13 = math.exp %12 : vector<2x16x16xf32>
    %cst_4 = arith.constant dense<0.000000e+00> : vector<2x16xf32>
    %14 = vector.multi_reduction <add>, %13, %cst_4 [2] : vector<2x16x16xf32> to vector<2x16xf32>
    %15 = vector.shape_cast %14 : vector<2x16xf32> to vector<2x16x1xf32>
    %16 = tpu.reciprocal %15 {approx = true} : vector<2x16x1xf32> -> vector<2x16x1xf32>
    %17 = vector.broadcast %16 : vector<2x16x1xf32> to vector<2x16x16xf32>
    %18 = arith.mulf %13, %17 : vector<2x16x16xf32>
    %19 = arith.truncf %18 : vector<2x16x16xf32> to vector<2x16x16xbf16>
    %20 = arith.truncf %3 : vector<2x16x32xf32> to vector<2x16x32xbf16>
    "tpu.trace_start"() <{level = 10 : i32, message = "bqk,bkd->bqd"}> : () -> ()
    %cst_5 = arith.constant dense<0.000000e+00> : vector<2x16x32xf32>
    %21 = tpu.matmul %19, %20, %cst_5 {dimension_numbers = #tpu.dot_dimension_numbers<[2], [1], [1], [2], [0, 0, 0, 1, 1, 2], [0], [0]>} : vector<2x16x16xbf16>, vector<2x16x32xbf16>, vector<2x16x32xf32> -> vector<2x16x32xf32>
    "tpu.trace_stop"() : () -> ()
    %22 = vector.extract_strided_slice %0 {offsets = [0, 0, 32], sizes = [2, 16, 32], strides = [1, 1, 1]} : vector<2x16x192xf32> to vector<2x16x32xf32>
    %23 = vector.extract_strided_slice %0 {offsets = [0, 0, 96], sizes = [2, 16, 32], strides = [1, 1, 1]} : vector<2x16x192xf32> to vector<2x16x32xf32>
    %24 = vector.extract_strided_slice %0 {offsets = [0, 0, 160], sizes = [2, 16, 32], strides = [1, 1, 1]} : vector<2x16x192xf32> to vector<2x16x32xf32>
    %25 = arith.truncf %22 : vector<2x16x32xf32> to vector<2x16x32xbf16>
    %26 = arith.truncf %23 : vector<2x16x32xf32> to vector<2x16x32xbf16>
    "tpu.trace_start"() <{level = 10 : i32, message = "bqd,bkd->bqk"}> : () -> ()
    %cst_6 = arith.constant dense<0.000000e+00> : vector<2x16x16xf32>
    %27 = tpu.matmul %25, %26, %cst_6 {dimension_numbers = #tpu.dot_dimension_numbers<[2], [2], [1], [1], [0, 0, 0, 1, 1, 1], [0], [0]>} : vector<2x16x32xbf16>, vector<2x16x32xbf16>, vector<2x16x16xf32> -> vector<2x16x16xf32>
    "tpu.trace_stop"() : () -> ()
    %cst_7 = arith.constant 0.176776692 : f32
    %28 = vector.broadcast %cst_7 : f32 to vector<2x16x16xf32>
    %29 = arith.mulf %27, %28 : vector<2x16x16xf32>
    %cst_8 = arith.constant dense<0xFF800000> : vector<2x16xf32>
    %30 = vector.multi_reduction <maximumf>, %29, %cst_8 [2] : vector<2x16x16xf32> to vector<2x16xf32>
    %31 = vector.shape_cast %30 : vector<2x16xf32> to vector<2x16x1xf32>
    %32 = vector.broadcast %31 : vector<2x16x1xf32> to vector<2x16x16xf32>
    %33 = arith.subf %29, %32 : vector<2x16x16xf32>
    %34 = math.exp %33 : vector<2x16x16xf32>
    %cst_9 = arith.constant dense<0.000000e+00> : vector<2x16xf32>
    %35 = vector.multi_reduction <add>, %34, %cst_9 [2] : vector<2x16x16xf32> to vector<2x16xf32>
    %36 = vector.shape_cast %35 : vector<2x16xf32> to vector<2x16x1xf32>
    %37 = tpu.reciprocal %36 {approx = true} : vector<2x16x1xf32> -> vector<2x16x1xf32>
    %38 = vector.broadcast %37 : vector<2x16x1xf32> to vector<2x16x16xf32>
    %39 = arith.mulf %34, %38 : vector<2x16x16xf32>
    %40 = arith.truncf %39 : vector<2x16x16xf32> to vector<2x16x16xbf16>
    %41 = arith.truncf %24 : vector<2x16x32xf32> to vector<2x16x32xbf16>
    "tpu.trace_start"() <{level = 10 : i32, message = "bqk,bkd->bqd"}> : () -> ()
    %cst_10 = arith.constant dense<0.000000e+00> : vector<2x16x32xf32>
    %42 = tpu.matmul %40, %41, %cst_10 {dimension_numbers = #tpu.dot_dimension_numbers<[2], [1], [1], [2], [0, 0, 0, 1, 1, 2], [0], [0]>} : vector<2x16x16xbf16>, vector<2x16x32xbf16>, vector<2x16x32xf32> -> vector<2x16x32xf32>
    "tpu.trace_stop"() : () -> ()
    %43 = tpu.concatenate %21, %42 in 2 : vector<2x16x32xf32>, vector<2x16x32xf32> -> vector<2x16x64xf32>
    %c0_11 = arith.constant 0 : index
    %c0_12 = arith.constant 0 : index
    %c0_13 = arith.constant 0 : index
    %44 = vector.load %arg2[%c0_11, %c0_12, %c0_13] : memref<2x16x64xf32, #tpu.memory_space<vmem>>, vector<2x16x64xf32>
    tpu.vector_store %arg2[%c0_11, %c0_12, %c0_13], %43 {strides = array<i32>} : memref<2x16x64xf32, #tpu.memory_space<vmem>>, vector<2x16x64xf32>,
    return
  }
  func.func @transform_0(%arg0: i32) -> (i32, i32, i32) {
    %c0_i32 = arith.constant 0 : i32
    %c0_i32_0 = arith.constant 0 : i32
    %c0_i32_1 = arith.constant 0 : i32
    return %arg0, %c0_i32, %c0_i32_0 : i32, i32, i32
  }
  func.func @transform_1(%arg0: i32) -> (i32, i32, i32) {
    %c0_i32 = arith.constant 0 : i32
    %c0_i32_0 = arith.constant 0 : i32
    %c0_i32_1 = arith.constant 0 : i32
    return %arg0, %c0_i32, %c0_i32_0 : i32, i32, i32
  }
}

module attributes {stable_mosaic.version = 11 : i64} {
  func.func @_proj_concat_kernel(%arg0: i32, %arg1: memref<32x64xf32, #tpu.memory_space<vmem>>, %arg2: memref<32x64xf32, #tpu.memory_space<vmem>>, %arg3: memref<64x128xf32, #tpu.memory_space<vmem>>, %arg4: memref<64x128xf32, #tpu.memory_space<vmem>>, %arg5: memref<1x128xf32, #tpu.memory_space<vmem>>, %arg6: memref<32x128xf32, #tpu.memory_space<vmem>>, %arg7: memref<32x128xf32, #tpu.memory_space<vmem>>) attributes {dimension_semantics = [#tpu.dimension_semantics<parallel>], iteration_bounds = array<i64: 2>, scalar_prefetch = 0 : i64, scratch_operands = 0 : i64, tpu.core_type = #tpu.core_type<tc>, window_params = [{transform_indices = @transform_0, window_bounds = array<i64: 32, 64>}, {transform_indices = @transform_1, window_bounds = array<i64: 32, 64>}, {pipeline_mode = #tpu.pipeline_mode<synchronous>, transform_indices = @transform_2, window_bounds = array<i64: 64, 128>}, {pipeline_mode = #tpu.pipeline_mode<synchronous>, transform_indices = @transform_3, window_bounds = array<i64: 64, 128>}, {pipeline_mode = #tpu.pipeline_mode<synchronous>, transform_indices = @transform_4, window_bounds = array<i64: 1, 128>}, {transform_indices = @transform_5, window_bounds = array<i64: 32, 128>}, {transform_indices = @transform_6, window_bounds = array<i64: 32, 128>}]} {
    %c0 = arith.constant 0 : index
    %c0_0 = arith.constant 0 : index
    %0 = vector.load %arg1[%c0, %c0_0] : memref<32x64xf32, #tpu.memory_space<vmem>>, vector<32x64xf32>
    %1 = arith.truncf %0 : vector<32x64xf32> to vector<32x64xbf16>
    %c0_1 = arith.constant 0 : index
    %c0_2 = arith.constant 0 : index
    %2 = vector.load %arg3[%c0_1, %c0_2] : memref<64x128xf32, #tpu.memory_space<vmem>>, vector<64x128xf32>
    %3 = arith.truncf %2 : vector<64x128xf32> to vector<64x128xbf16>
    %cst = arith.constant dense<0.000000e+00> : vector<32x128xf32>
    %4 = tpu.matmul %1, %3, %cst {dimension_numbers = #tpu.dot_dimension_numbers<[1], [0], [0], [1], [0, 0, 1, 1], [], []>} : vector<32x64xbf16>, vector<64x128xbf16>, vector<32x128xf32> -> vector<32x128xf32>
    %c0_3 = arith.constant 0 : index
    %c0_4 = arith.constant 0 : index
    %5 = vector.load %arg2[%c0_3, %c0_4] : memref<32x64xf32, #tpu.memory_space<vmem>>, vector<32x64xf32>
    %6 = arith.truncf %5 : vector<32x64xf32> to vector<32x64xbf16>
    %c0_5 = arith.constant 0 : index
    %c0_6 = arith.constant 0 : index
    %7 = vector.load %arg4[%c0_5, %c0_6] : memref<64x128xf32, #tpu.memory_space<vmem>>, vector<64x128xf32>
    %8 = arith.truncf %7 : vector<64x128xf32> to vector<64x128xbf16>
    %cst_7 = arith.constant dense<0.000000e+00> : vector<32x128xf32>
    %9 = tpu.matmul %6, %8, %cst_7 {dimension_numbers = #tpu.dot_dimension_numbers<[1], [0], [0], [1], [0, 0, 1, 1], [], []>} : vector<32x64xbf16>, vector<64x128xbf16>, vector<32x128xf32> -> vector<32x128xf32>
    %10 = arith.addf %4, %9 : vector<32x128xf32>
    %c0_8 = arith.constant 0 : index
    %c0_9 = arith.constant 0 : index
    %11 = vector.load %arg5[%c0_8, %c0_9] : memref<1x128xf32, #tpu.memory_space<vmem>>, vector<1x128xf32>
    %12 = vector.broadcast %11 : vector<1x128xf32> to vector<32x128xf32>
    %13 = arith.addf %10, %12 : vector<32x128xf32>
    %c0_10 = arith.constant 0 : index
    %c0_11 = arith.constant 0 : index
    %14 = vector.load %arg6[%c0_10, %c0_11] : memref<32x128xf32, #tpu.memory_space<vmem>>, vector<32x128xf32>
    %15 = arith.addf %13, %14 : vector<32x128xf32>
    %c0_12 = arith.constant 0 : index
    %c0_13 = arith.constant 0 : index
    %16 = vector.load %arg7[%c0_12, %c0_13] : memref<32x128xf32, #tpu.memory_space<vmem>>, vector<32x128xf32>
    tpu.vector_store %arg7[%c0_12, %c0_13], %15 {strides = array<i32>} : memref<32x128xf32, #tpu.memory_space<vmem>>, vector<32x128xf32>,
    return
  }
  func.func @transform_0(%arg0: i32) -> (i32, i32) {
    %c0_i32 = arith.constant 0 : i32
    %c0_i32_0 = arith.constant 0 : i32
    return %arg0, %c0_i32 : i32, i32
  }
  func.func @transform_1(%arg0: i32) -> (i32, i32) {
    %c0_i32 = arith.constant 0 : i32
    %c0_i32_0 = arith.constant 0 : i32
    return %arg0, %c0_i32 : i32, i32
  }
  func.func @transform_2(%arg0: i32) -> (i32, i32) {
    %c0_i32 = arith.constant 0 : i32
    %c0_i32_0 = arith.constant 0 : i32
    %c0_i32_1 = arith.constant 0 : i32
    return %c0_i32, %c0_i32_0 : i32, i32
  }
  func.func @transform_3(%arg0: i32) -> (i32, i32) {
    %c0_i32 = arith.constant 0 : i32
    %c0_i32_0 = arith.constant 0 : i32
    %c0_i32_1 = arith.constant 0 : i32
    return %c0_i32, %c0_i32_0 : i32, i32
  }
  func.func @transform_4(%arg0: i32) -> (i32, i32) {
    %c0_i32 = arith.constant 0 : i32
    %c0_i32_0 = arith.constant 0 : i32
    %c0_i32_1 = arith.constant 0 : i32
    return %c0_i32, %c0_i32_0 : i32, i32
  }
  func.func @transform_5(%arg0: i32) -> (i32, i32) {
    %c0_i32 = arith.constant 0 : i32
    %c0_i32_0 = arith.constant 0 : i32
    return %arg0, %c0_i32 : i32, i32
  }
  func.func @transform_6(%arg0: i32) -> (i32, i32) {
    %c0_i32 = arith.constant 0 : i32
    %c0_i32_0 = arith.constant 0 : i32
    return %arg0, %c0_i32 : i32, i32
  }
}

module attributes {stable_mosaic.version = 11 : i64} {
  func.func @_ln_linear_kernel(%arg0: i32, %arg1: memref<32x128xf32, #tpu.memory_space<vmem>>, %arg2: memref<1x128xf32, #tpu.memory_space<vmem>>, %arg3: memref<1x128xf32, #tpu.memory_space<vmem>>, %arg4: memref<128x256xf32, #tpu.memory_space<vmem>>, %arg5: memref<1x256xf32, #tpu.memory_space<vmem>>, %arg6: memref<32x256xf32, #tpu.memory_space<vmem>>) attributes {dimension_semantics = [#tpu.dimension_semantics<parallel>], iteration_bounds = array<i64: 2>, scalar_prefetch = 0 : i64, scratch_operands = 0 : i64, tpu.core_type = #tpu.core_type<tc>, window_params = [{transform_indices = @transform_0, window_bounds = array<i64: 32, 128>}, {pipeline_mode = #tpu.pipeline_mode<synchronous>, transform_indices = @transform_1, window_bounds = array<i64: 1, 128>}, {pipeline_mode = #tpu.pipeline_mode<synchronous>, transform_indices = @transform_2, window_bounds = array<i64: 1, 128>}, {pipeline_mode = #tpu.pipeline_mode<synchronous>, transform_indices = @transform_3, window_bounds = array<i64: 128, 256>}, {pipeline_mode = #tpu.pipeline_mode<synchronous>, transform_indices = @transform_4, window_bounds = array<i64: 1, 256>}, {transform_indices = @transform_5, window_bounds = array<i64: 32, 256>}]} {
    %c0 = arith.constant 0 : index
    %c0_0 = arith.constant 0 : index
    %0 = vector.load %arg1[%c0, %c0_0] : memref<32x128xf32, #tpu.memory_space<vmem>>, vector<32x128xf32>
    %cst = arith.constant dense<0.000000e+00> : vector<32xf32>
    %1 = vector.multi_reduction <add>, %0, %cst [1] : vector<32x128xf32> to vector<32xf32>
    %2 = vector.shape_cast %1 : vector<32xf32> to vector<32x1xf32>
    %cst_1 = arith.constant 1.280000e+02 : f32
    %3 = vector.broadcast %cst_1 : f32 to vector<32x1xf32>
    %4 = arith.divf %2, %3 : vector<32x1xf32>
    %5 = vector.broadcast %4 : vector<32x1xf32> to vector<32x128xf32>
    %6 = arith.subf %0, %5 : vector<32x128xf32>
    %7 = arith.mulf %6, %6 : vector<32x128xf32>
    %cst_2 = arith.constant dense<0.000000e+00> : vector<32xf32>
    %8 = vector.multi_reduction <add>, %7, %cst_2 [1] : vector<32x128xf32> to vector<32xf32>
    %9 = vector.shape_cast %8 : vector<32xf32> to vector<32x1xf32>
    %cst_3 = arith.constant 1.280000e+02 : f32
    %10 = vector.broadcast %cst_3 : f32 to vector<32x1xf32>
    %11 = arith.divf %9, %10 : vector<32x1xf32>
    %12 = vector.broadcast %4 : vector<32x1xf32> to vector<32x128xf32>
    %13 = arith.subf %0, %12 : vector<32x128xf32>
    %cst_4 = arith.constant 9.99999974E-6 : f32
    %14 = vector.broadcast %cst_4 : f32 to vector<32x1xf32>
    %15 = arith.addf %11, %14 : vector<32x1xf32>
    %16 = math.rsqrt %15 : vector<32x1xf32>
    %17 = vector.broadcast %16 : vector<32x1xf32> to vector<32x128xf32>
    %18 = arith.mulf %13, %17 : vector<32x128xf32>
    %c0_5 = arith.constant 0 : index
    %c0_6 = arith.constant 0 : index
    %19 = vector.load %arg2[%c0_5, %c0_6] : memref<1x128xf32, #tpu.memory_space<vmem>>, vector<1x128xf32>
    %20 = vector.broadcast %19 : vector<1x128xf32> to vector<32x128xf32>
    %21 = arith.mulf %18, %20 : vector<32x128xf32>
    %c0_7 = arith.constant 0 : index
    %c0_8 = arith.constant 0 : index
    %22 = vector.load %arg3[%c0_7, %c0_8] : memref<1x128xf32, #tpu.memory_space<vmem>>, vector<1x128xf32>
    %23 = vector.broadcast %22 : vector<1x128xf32> to vector<32x128xf32>
    %24 = arith.addf %21, %23 : vector<32x128xf32>
    %25 = arith.truncf %24 : vector<32x128xf32> to vector<32x128xbf16>
    %c0_9 = arith.constant 0 : index
    %c0_10 = arith.constant 0 : index
    %26 = vector.load %arg4[%c0_9, %c0_10] : memref<128x256xf32, #tpu.memory_space<vmem>>, vector<128x256xf32>
    %27 = arith.truncf %26 : vector<128x256xf32> to vector<128x256xbf16>
    %cst_11 = arith.constant dense<0.000000e+00> : vector<32x256xf32>
    %28 = tpu.matmul %25, %27, %cst_11 {dimension_numbers = #tpu.dot_dimension_numbers<[1], [0], [0], [1], [0, 0, 1, 1], [], []>} : vector<32x128xbf16>, vector<128x256xbf16>, vector<32x256xf32> -> vector<32x256xf32>
    %c0_12 = arith.constant 0 : index
    %c0_13 = arith.constant 0 : index
    %29 = vector.load %arg5[%c0_12, %c0_13] : memref<1x256xf32, #tpu.memory_space<vmem>>, vector<1x256xf32>
    %30 = vector.broadcast %29 : vector<1x256xf32> to vector<32x256xf32>
    %31 = arith.addf %28, %30 : vector<32x256xf32>
    %cst_14 = arith.constant 0.000000e+00 : f32
    %32 = vector.broadcast %cst_14 : f32 to vector<32x256xf32>
    %33 = arith.maximumf %31, %32 : vector<32x256xf32>
    %c0_15 = arith.constant 0 : index
    %c0_16 = arith.constant 0 : index
    %34 = vector.load %arg6[%c0_15, %c0_16] : memref<32x256xf32, #tpu.memory_space<vmem>>, vector<32x256xf32>
    tpu.vector_store %arg6[%c0_15, %c0_16], %33 {strides = array<i32>} : memref<32x256xf32, #tpu.memory_space<vmem>>, vector<32x256xf32>,
    return
  }
  func.func @transform_0(%arg0: i32) -> (i32, i32) {
    %c0_i32 = arith.constant 0 : i32
    %c0_i32_0 = arith.constant 0 : i32
    return %arg0, %c0_i32 : i32, i32
  }
  func.func @transform_1(%arg0: i32) -> (i32, i32) {
    %c0_i32 = arith.constant 0 : i32
    %c0_i32_0 = arith.constant 0 : i32
    %c0_i32_1 = arith.constant 0 : i32
    return %c0_i32, %c0_i32_0 : i32, i32
  }
  func.func @transform_2(%arg0: i32) -> (i32, i32) {
    %c0_i32 = arith.constant 0 : i32
    %c0_i32_0 = arith.constant 0 : i32
    %c0_i32_1 = arith.constant 0 : i32
    return %c0_i32, %c0_i32_0 : i32, i32
  }
  func.func @transform_3(%arg0: i32) -> (i32, i32) {
    %c0_i32 = arith.constant 0 : i32
    %c0_i32_0 = arith.constant 0 : i32
    %c0_i32_1 = arith.constant 0 : i32
    return %c0_i32, %c0_i32_0 : i32, i32
  }
  func.func @transform_4(%arg0: i32) -> (i32, i32) {
    %c0_i32 = arith.constant 0 : i32
    %c0_i32_0 = arith.constant 0 : i32
    %c0_i32_1 = arith.constant 0 : i32
    return %c0_i32, %c0_i32_0 : i32, i32
  }
  func.func @transform_5(%arg0: i32) -> (i32, i32) {
    %c0_i32 = arith.constant 0 : i32
    %c0_i32_0 = arith.constant 0 : i32
    return %arg0, %c0_i32 : i32, i32
  }
}

module attributes {stable_mosaic.version = 11 : i64} {
  func.func @_ln_linear_kernel(%arg0: i32, %arg1: memref<32x256xf32, #tpu.memory_space<vmem>>, %arg2: memref<256x128xf32, #tpu.memory_space<vmem>>, %arg3: memref<1x128xf32, #tpu.memory_space<vmem>>, %arg4: memref<32x128xf32, #tpu.memory_space<vmem>>, %arg5: memref<32x128xf32, #tpu.memory_space<vmem>>) attributes {dimension_semantics = [#tpu.dimension_semantics<parallel>], iteration_bounds = array<i64: 2>, scalar_prefetch = 0 : i64, scratch_operands = 0 : i64, tpu.core_type = #tpu.core_type<tc>, window_params = [{transform_indices = @transform_0, window_bounds = array<i64: 32, 256>}, {pipeline_mode = #tpu.pipeline_mode<synchronous>, transform_indices = @transform_1, window_bounds = array<i64: 256, 128>}, {pipeline_mode = #tpu.pipeline_mode<synchronous>, transform_indices = @transform_2, window_bounds = array<i64: 1, 128>}, {transform_indices = @transform_3, window_bounds = array<i64: 32, 128>}, {transform_indices = @transform_4, window_bounds = array<i64: 32, 128>}]} {
    %c0 = arith.constant 0 : index
    %c0_0 = arith.constant 0 : index
    %0 = vector.load %arg1[%c0, %c0_0] : memref<32x256xf32, #tpu.memory_space<vmem>>, vector<32x256xf32>
    %1 = arith.truncf %0 : vector<32x256xf32> to vector<32x256xbf16>
    %c0_1 = arith.constant 0 : index
    %c0_2 = arith.constant 0 : index
    %2 = vector.load %arg2[%c0_1, %c0_2] : memref<256x128xf32, #tpu.memory_space<vmem>>, vector<256x128xf32>
    %3 = arith.truncf %2 : vector<256x128xf32> to vector<256x128xbf16>
    %cst = arith.constant dense<0.000000e+00> : vector<32x128xf32>
    %4 = tpu.matmul %1, %3, %cst {dimension_numbers = #tpu.dot_dimension_numbers<[1], [0], [0], [1], [0, 0, 1, 1], [], []>} : vector<32x256xbf16>, vector<256x128xbf16>, vector<32x128xf32> -> vector<32x128xf32>
    %c0_3 = arith.constant 0 : index
    %c0_4 = arith.constant 0 : index
    %5 = vector.load %arg3[%c0_3, %c0_4] : memref<1x128xf32, #tpu.memory_space<vmem>>, vector<1x128xf32>
    %6 = vector.broadcast %5 : vector<1x128xf32> to vector<32x128xf32>
    %7 = arith.addf %4, %6 : vector<32x128xf32>
    %c0_5 = arith.constant 0 : index
    %c0_6 = arith.constant 0 : index
    %8 = vector.load %arg4[%c0_5, %c0_6] : memref<32x128xf32, #tpu.memory_space<vmem>>, vector<32x128xf32>
    %9 = arith.addf %7, %8 : vector<32x128xf32>
    %c0_7 = arith.constant 0 : index
    %c0_8 = arith.constant 0 : index
    %10 = vector.load %arg5[%c0_7, %c0_8] : memref<32x128xf32, #tpu.memory_space<vmem>>, vector<32x128xf32>
    tpu.vector_store %arg5[%c0_7, %c0_8], %9 {strides = array<i32>} : memref<32x128xf32, #tpu.memory_space<vmem>>, vector<32x128xf32>,
    return
  }
  func.func @transform_0(%arg0: i32) -> (i32, i32) {
    %c0_i32 = arith.constant 0 : i32
    %c0_i32_0 = arith.constant 0 : i32
    return %arg0, %c0_i32 : i32, i32
  }
  func.func @transform_1(%arg0: i32) -> (i32, i32) {
    %c0_i32 = arith.constant 0 : i32
    %c0_i32_0 = arith.constant 0 : i32
    %c0_i32_1 = arith.constant 0 : i32
    return %c0_i32, %c0_i32_0 : i32, i32
  }
  func.func @transform_2(%arg0: i32) -> (i32, i32) {
    %c0_i32 = arith.constant 0 : i32
    %c0_i32_0 = arith.constant 0 : i32
    %c0_i32_1 = arith.constant 0 : i32
    return %c0_i32, %c0_i32_0 : i32, i32
  }
  func.func @transform_3(%arg0: i32) -> (i32, i32) {
    %c0_i32 = arith.constant 0 : i32
    %c0_i32_0 = arith.constant 0 : i32
    return %arg0, %c0_i32 : i32, i32
  }
  func.func @transform_4(%arg0: i32) -> (i32, i32) {
    %c0_i32 = arith.constant 0 : i32
    %c0_i32_0 = arith.constant 0 : i32
    return %arg0, %c0_i32 : i32, i32
  }
}

</mosaic_0001>

<bundles_post_ra>
// kernel: factorised_transformer_layer.6
= control target key start
LH: loop header
LB: loop body
LE: loop exit
PB: predicated region body
PF: predicated region fallthrough
CT: control target
= control target key end

     0   :  { %s665_s18 = smov 0   ;;  %s875_s0 = inlined_call_operand.vmem [shape: f32[64,128], index: 0, kind: input, shape index: {}]   ;;  %s876_s1 = inlined_call_operand.vmem [shape: f32[1,128], index: 1, kind: input, shape index: {}]   ;;  %s877_s2 = inlined_call_operand.vmem [shape: f32[1,128], index: 2, kind: input, shape index: {}]   ;;  %s878_s3 = inlined_call_operand.vmem [shape: f32[128,384], index: 3, kind: input, shape index: {}]   ;;  %s879_s4 = inlined_call_operand.vmem [shape: f32[1,384], index: 4, kind: input, shape index: {}]   ;;  %s880_s5 = inlined_call_operand.vmem [shape: f32[64,384], index: 5, kind: output, shape index: {}]  }
   0x1 LB: > { %s565_s19 = sadd.s32 4294967295, %s632_s18   ;;  %p569_p0 = scmp.ge.s32.totalorder %s632_s18, 1  ;;  %s632_s18 = sphi %s665_s18, %s15_s18  }
   0x2   : > { %p188_p1 = scmp.lt.s32.totalorder %s632_s18, 3 }
   0x4   : > { %p189_p2 = pnand %p569_p0, %p188_p1 }
   0x5   : > { %s570_s20 = sshll.u32 (!%p189_p2), %s565_s19, 2  ;;  %v305_v4 = vld [vmem:[%s878_s3 + $0x8] sm:$0xff] (!%p189_p2)  ;;  %v308_v5 = vld [vmem:[%s878_s3 + $0x20] sm:$0xff] (!%p189_p2)  ;;  %v307_v8 = vld [vmem:[%s878_s3 + $0x18] sm:$0xff] (!%p189_p2) }
   0x6   : > { %192 = sbr.rel (%p189_p2) target bundleno = 560 (0x230), region = 40  ;;  %p218_p3 = scmp.lt.s32.totalorder (!%p189_p2), %s570_s20, 7  ;;  %v304_v6 = vld [vmem:[%s878_s3] sm:$0xff] (!%p189_p2)  ;;  %v353_v7 = vpack.c.bf16 (!%p189_p2), %v308_v5, %v305_v4  ;;  %v311_v9 = vld [vmem:[%s878_s3 + $0x38] sm:$0xff] (!%p189_p2)  ;;  %v314_v10 = vld [vmem:[%s878_s3 + $0x50] sm:$0xff] (!%p189_p2) }
   0x7   : > { %v352_v11 = vpack.c.bf16 (!%p189_p2), %v307_v8, %v304_v6  ;;  %v356_v12 = vpack.c.bf16 (!%p189_p2), %v314_v10, %v311_v9  ;;  %v306_v13 = vld [vmem:[%s878_s3 + $0x10] sm:$0xff] (!%p189_p2)  ;;  %v309_v14 = vld [vmem:[%s878_s3 + $0x28] sm:$0xff] (!%p189_p2)  ;;  %v320_v36 = vld [vmem:[%s878_s3 + $0x80] sm:$0xff] (!%p189_p2)  ;;  %v634_v10 = vmov (!%p189_p2), 0  }
   0x8   : > { %393 = vmatprep.subr.bf16.mxu0 (!%p189_p2), %v353_v7  ;;  %v354_v15 = vpack.c.bf16 (!%p189_p2), %v309_v14, %v306_v13  ;;  %v310_v32 = vld [vmem:[%s878_s3 + $0x30] sm:$0xff] (!%p189_p2)  ;;  %v313_v33 = vld [vmem:[%s878_s3 + $0x48] sm:$0xff] (!%p189_p2)  ;;  %v312_v37 = vld [vmem:[%s878_s3 + $0x40] sm:$0xff] (!%p189_p2)  ;;  %425 = vmatprep.mubr.bf16.mxu0 (!%p189_p2), %v634_v10 }
   0x9   : > { %394 = vmatpush1.bf16.msra.mxu0 (!%p189_p2), %v352_v11  ;;  %v355_v34 = vpack.c.bf16 (!%p189_p2), %v313_v33, %v310_v32  ;;  %v317_v35 = vld [vmem:[%s878_s3 + $0x68] sm:$0xff] (!%p189_p2)  ;;  %v315_v39 = vld [vmem:[%s878_s3 + $0x58] sm:$0xff] (!%p189_p2)  ;;  %v316_v41 = vld [vmem:[%s878_s3 + $0x60] sm:$0xff] (!%p189_p2) }
   0xa   : > { %395 = vmatprep.subr.bf16.mxu0 (!%p189_p2), %v356_v12  ;;  %588 = vmatprep.subr.bf16.mxu1 (!%p189_p2), %v354_v15  ;;  %v359_v38 = vpack.c.bf16 (!%p189_p2), %v320_v36, %v317_v35  ;;  %v357_v40 = vpack.c.bf16 (!%p189_p2), %v315_v39, %v312_v37  ;;  %v319_v42 = vld [vmem:[%s878_s3 + $0x78] sm:$0xff] (!%p189_p2)  ;;  %v326_v45 = vld [vmem:[%s878_s3 + $0xb0] sm:$0xff] (!%p189_p2)  ;;  %v321_v48 = vld [vmem:[%s878_s3 + $0x88] sm:$0xff] (!%p189_p2) }
   0xb   : > { %589 = vmatpush3.bf16.msra.mxu1 (!%p189_p2), %v354_v15  ;;  %v358_v43 = vpack.c.bf16 (!%p189_p2), %v319_v42, %v316_v41  ;;  %v323_v44 = vld [vmem:[%s878_s3 + $0x98] sm:$0xff] (!%p189_p2)  ;;  %v318_v46 = vld [vmem:[%s878_s3 + $0x70] sm:$0xff] (!%p189_p2)  ;;  %v325_v50 = vld [vmem:[%s878_s3 + $0xa8] sm:$0xff] (!%p189_p2) }
   0xc   : > { %590 = vmatprep.subr.bf16.mxu1 (!%p189_p2), %v357_v40  ;;  %v362_v47 = vpack.c.bf16 (!%p189_p2), %v326_v45, %v323_v44  ;;  %v322_v49 = vld [vmem:[%s878_s3 + $0x90] sm:$0xff] (!%p189_p2)  ;;  %v360_v51 = vpack.c.bf16 (!%p189_p2), %v321_v48, %v318_v46  ;;  %v329_v53 = vld [vmem:[%s878_s3 + $0xc8] sm:$0xff] (!%p189_p2)  ;;  %v332_v54 = vld [vmem:[%s878_s3 + $0xe0] sm:$0xff] (!%p189_p2) }
   0xd   : > { %s882_s20 = smov (!%p218_p3, %s570_s20), 7  ;;  %396 = vmatpush1.bf16.msra.mxu0 %v355_v34  ;;  %v361_v52 = vpack.c.bf16 %v325_v50, %v322_v49  ;;  %v324_v55 = vld [vmem:[%s878_s3 + $0xa0] sm:$0xff]  ;;  %v365_v56 = vpack.c.bf16 %v332_v54, %v329_v53  ;;  %v327_v57 = vld [vmem:[%s878_s3 + $0xb8] sm:$0xff]  ;;  %v338_v63 = vld [vmem:[%s878_s3 + $0x110] sm:$0xff] }
   0xe   : > { %s571_s21 = sshll.u32 %s882_s20, 3  ;;  %397 = vmatprep.subr.bf16.mxu0 %v359_v38  ;;  %v328_v58 = vld [vmem:[%s878_s3 + $0xc0] sm:$0xff]  ;;  %v331_v59 = vld [vmem:[%s878_s3 + $0xd8] sm:$0xff]  ;;  %v363_v60 = vpack.c.bf16 %v327_v57, %v324_v55  ;;  %v337_v4 = vld [vmem:[%s878_s3 + $0x108] sm:$0xff]  ;;  %s608_s10 = smul.u32 24, %s882_s20 }
   0xf   : > { %s221_s24 = scalar_lea.vmem %s875_s0, %s571_s21  ;;  %591 = vmatpush3.bf16.msra.mxu1 %v357_v40  ;;  %v364_v61 = vpack.c.bf16 %v331_v59, %v328_v58  ;;  %v335_v62 = vld [vmem:[%s878_s3 + $0xf8] sm:$0xff]  ;;  %v341_v7 = vld [vmem:[%s878_s3 + $0x128] sm:$0xff]  ;;  %v344_v8 = vld [vmem:[%s878_s3 + $0x140] sm:$0xff] }
  0x10   : > { %v231_v0 = vld [vmem:[%s221_s24] sm:$0xff]  ;;  %v233_v1 = vld [vmem:[%s221_s24 + $0x10] sm:$0xff]  ;;  %v232_v2 = vld [vmem:[%s221_s24 + $0x8] sm:$0xff]  ;;  %592 = vmatprep.subr.bf16.mxu1 %v360_v51  ;;  %v371_v11 = vpack.c.bf16 %v344_v8, %v341_v7  ;;  %s858_s13 = scalar_lea.vmem %s880_s5, %s608_s10 }
  0x11   : > { %235 = vadd.xlane.f32.xlu0 %v231_v0  ;;  %239 = vadd.xlane.f32.xlu1 %v233_v1  ;;  %v234_v3 = vld [vmem:[%s221_s24 + $0x18] sm:$0xff]  ;;  %v336_v9 = vld [vmem:[%s878_s3 + $0x100] sm:$0xff] }
  0x12   : > { %398 = vmatpush1.bf16.msra.mxu0 %v358_v43  ;;  %v339_v12 = vld [vmem:[%s878_s3 + $0x118] sm:$0xff]  ;;  %v340_v13 = vld [vmem:[%s878_s3 + $0x120] sm:$0xff] }
  0x13   : > { %399 = vmatprep.subr.bf16.mxu0 %v362_v47  ;;  %593 = vmatpush3.bf16.msra.mxu1 %v360_v51  ;;  %v343_v14 = vld [vmem:[%s878_s3 + $0x138] sm:$0xff]  ;;  %v369_v15 = vpack.c.bf16 %v339_v12, %v336_v9  ;;  %v574_v47 = vld [vmem:[%s876_s1] ss:$0 sm:$0xff] }
  0x14   : > { %594 = vmatprep.subr.bf16.mxu1 %v363_v60 }
  0x15   : > { %237 = vadd.xlane.f32.xlu0 %v232_v2  ;;  %241 = vadd.xlane.f32.xlu1 %v234_v3 }
  0x16   : > { %400 = vmatpush1.bf16.msra.mxu0 %v361_v52  ;;  %v575_v52 = vld [vmem:[%s877_s2] ss:$0 sm:$0xff] }
  0x17   : > { %401 = vmatprep.subr.bf16.mxu0 %v365_v56  ;;  %595 = vmatpush3.bf16.msra.mxu1 %v363_v60 }
  0x1a   : > { %402 = vmatpush1.bf16.msra.mxu0 %v364_v61 }
  0x9e   : > { %v236_v16 = vpop.xlane.xlu0 %235  ;;  %v240_v17 = vpop.xlane.xlu1 %239 }
  0x9f   : > { %v244_v18 = vmul.f32 0.0078125, %v236_v16  ;;  %v246_v19 = vmul.f32 0.0078125, %v240_v17  ;;  %v347_v16 = vld [vmem:[%s878_s3 + $0x158] sm:$0xff]  ;;  %v350_v17 = vld [vmem:[%s878_s3 + $0x170] sm:$0xff] }
  0xa1   : > { %v703_v20 = vsub.f32 %v231_v0, %v244_v18  ;;  %v705_v21 = vsub.f32 %v233_v1, %v246_v19  ;;  %v330_v0 = vld [vmem:[%s878_s3 + $0xd0] sm:$0xff]  ;;  %v368_v1 = vpack.c.bf16 %v338_v63, %v335_v62  ;;  %v370_v19 = vpack.c.bf16 %v343_v14, %v340_v13 }
  0xa2   : > { %v238_v22 = vpop.xlane.xlu0 %237  ;;  %v242_v23 = vpop.xlane.xlu1 %241  ;;  %v342_v18 = vld [vmem:[%s878_s3 + $0x130] sm:$0xff] }
  0xa3   : > { %v245_v24 = vmul.f32 0.0078125, %v238_v22  ;;  %v252_v25 = vmul.f32 %v703_v20, %v703_v20  ;;  %v247_v26 = vmul.f32 0.0078125, %v242_v23  ;;  %v254_v29 = vmul.f32 %v705_v21, %v705_v21  ;;  %403 = vmatprep.subr.bf16.mxu0 %v368_v1  ;;  %v345_v22 = vld [vmem:[%s878_s3 + $0x148] sm:$0xff] }
  0xa4   : > { %v374_v23 = vpack.c.bf16 %v350_v17, %v347_v16 }
  0xa5   : > { %v709_v27 = vsub.f32 %v232_v2, %v245_v24  ;;  %256 = vadd.xlane.f32.xlu0 %v252_v25  ;;  %v711_v28 = vsub.f32 %v234_v3, %v247_v26  ;;  %v333_v2 = vld [vmem:[%s878_s3 + $0xe8] sm:$0xff]  ;;  %v334_v3 = vld [vmem:[%s878_s3 + $0xf0] sm:$0xff]  ;;  %v372_v26 = vpack.c.bf16 %v345_v22, %v342_v18 }
  0xa6   : > { %v366_v5 = vpack.c.bf16 %v333_v2, %v330_v0  ;;  %v367_v6 = vpack.c.bf16 %v337_v4, %v334_v3  ;;  %v346_v24 = vld [vmem:[%s878_s3 + $0x150] sm:$0xff]  ;;  %v349_v25 = vld [vmem:[%s878_s3 + $0x168] sm:$0xff] }
  0xa7   : > { %v253_v30 = vmul.f32 %v709_v27, %v709_v27  ;;  %v255_v31 = vmul.f32 %v711_v28, %v711_v28 }
  0xa8   : > { %596 = vmatprep.subr.bf16.mxu1 %v366_v5  ;;  %404 = vmatpush1.bf16.msra.mxu0 %v367_v6 }
  0xa9   : > { %260 = vadd.xlane.f32.xlu0 %v254_v29  ;;  %258 = vadd.xlane.f32.xlu1 %v253_v30  ;;  %v373_v29 = vpack.c.bf16 %v349_v25, %v346_v24  ;;  %v348_v30 = vld [vmem:[%s878_s3 + $0x160] sm:$0xff] }
  0xaa   : > { %597 = vmatpush3.bf16.msra.mxu1 %v366_v5  ;;  %405 = vmatprep.subr.bf16.mxu0 %v371_v11 }
  0xab   : > { %598 = vmatprep.subr.bf16.mxu1 %v369_v15 }
  0xac   : > { %406 = vmatpush1.bf16.msra.mxu0 %v370_v19 }
  0xad   : > { %262 = vadd.xlane.f32.xlu1 %v255_v31  ;;  %407 = vmatprep.subr.bf16.mxu0 %v374_v23  ;;  %v351_v31 = vld [vmem:[%s878_s3 + $0x178] sm:$0xff] }
  0xae   : > { %599 = vmatpush3.bf16.msra.mxu1 %v369_v15  ;;  %v375_v32 = vpack.c.bf16 %v351_v31, %v348_v30 }
  0xaf   : > { %600 = vmatprep.subr.bf16.mxu1 %v372_v26 }
  0xb0   : > { %408 = vmatpush1.bf16.msra.mxu0 %v373_v29 }
  0xb2   : > { %601 = vmatpush3.bf16.msra.mxu1 %v372_v26 }
  0xb3   : > { %602 = vmatprep.subr.bf16.mxu1 %v375_v32 }
  0xb6   : > { %603 = vmatpush3.bf16.msra.mxu1 %v375_v32 }
 0x132   : > { %v257_v33 = vpop.xlane.xlu0 %256 }
 0x133   : > { %v264_v34 = vmul.f32 0.0078125, %v257_v33 }
 0x135   : > { %v268_v35 = vadd.f32 1e-05, %v264_v34 }
 0x136   : > { %v259_v36 = vpop.xlane.xlu1 %258  ;;  %v261_v37 = vpop.xlane.xlu0 %260 }
 0x137   : > { %618 = vrsqrt.f32 %v268_v35  ;;  %v265_v38 = vmul.f32 0.0078125, %v259_v36  ;;  %v266_v39 = vmul.f32 0.0078125, %v261_v37 }
 0x139   : > { %v269_v40 = vadd.f32 1e-05, %v265_v38  ;;  %v270_v41 = vadd.f32 1e-05, %v266_v39 }
 0x13a   : > { %v263_v42 = vpop.xlane.xlu1 %262 }
 0x13b   : > { %620 = vrsqrt.f32 %v269_v40  ;;  %v267_v43 = vmul.f32 0.0078125, %v263_v42 }
 0x13c   : > { %622 = vrsqrt.f32 %v270_v41 }
 0x13d   : > { %v271_v44 = vadd.f32 1e-05, %v267_v43 }
 0x13f   : > { %624 = vrsqrt.f32 %v271_v44 }
 0x141   : > { %v619_v45 = vpop.eup %618 }
 0x142   : > { %v276_v46 = vmul.f32 %v619_v45, %v703_v20 }
 0x144   : > { %v287_v51 = vmul.f32 %v574_v47, %v276_v46 }
 0x145   : > { %v621_v48 = vpop.eup %620 }
 0x146   : > { %v623_v49 = vpop.eup %622  ;;  %v277_v50 = vmul.f32 %v621_v48, %v709_v27  ;;  %v298_v56 = vadd.f32 %v575_v52, %v287_v51 }
 0x147   : > { %v278_v53 = vmul.f32 %v623_v49, %v705_v21  ;;  %v378_v21 = vlaneseq }
 0x148   : > { %v288_v54 = vmul.f32 %v574_v47, %v277_v50 }
 0x149   : > { %v625_v55 = vpop.eup %624  ;;  %v289_v58 = vmul.f32 %v574_v47, %v278_v53  ;;  %v379_v63 = vshrl.u32 %v378_v21, 7 }
 0x14a   : > { %v299_v57 = vadd.f32 %v575_v52, %v288_v54  ;;  %v279_v20 = vmul.f32 %v625_v55, %v711_v28  ;;  %v376_v28 = vld [vmem:[%s879_s4] sm:$0x7] }
 0x14b   : > { %v300_v27 = vadd.f32 %v575_v52, %v289_v58  ;;  %v380_v0 = vsub.s32 0, %v379_v63  ;;  %v384_v1 = vsub.s32 1, %v379_v63  ;;  %v388_v4 = vsub.s32 2, %v379_v63 }
 0x14c   : > { %v302_v59 = vpack.c.bf16 %v299_v57, %v298_v56  ;;  %v290_v60 = vmul.f32 %v574_v47, %v279_v20 }
 0x14d   : > { %v381_v2 = vrot.slane %v376_v28, %v380_v0  ;;  %v385_v3 = vrot.slane %v376_v28, %v384_v1 }
 0x14e   : > { %426 = vmatmul.mubr.bf16.vlgmr.msra.gmra.mrb[0].mxu0 %v302_v59  ;;  %604 = vmatprep.mubr.bf16.mxu1 %v302_v59  ;;  %v301_v61 = vadd.f32 %v575_v52, %v290_v60 }
 0x14f   : > { %435 = vmatprep.mubr.bf16.mxu0 %v634_v10  ;;  %v389_v10 = vrot.slane %v376_v28, %v388_v4 }
 0x150   : > { %v303_v62 = vpack.c.bf16 %v301_v61, %v300_v27 }
 0x152   : > { %605 = vmatmul.mubr.bf16.vlgmr.msra.gmra.mrb[0].mxu1 %v303_v62 }
 0x156   : > { %436 = vmatmul.mubr.bf16.gmra.mrb[4].mxu0 %v303_v62 }
 0x221   : > { %v427_v5 = vpop.f32.mrb[0].mxu0 }
 0x222   : > { %v428_v6 = vadd.f32 %v427_v5, %v381_v2  ;;  %v429_v7 = vpop.f32.mrb[1].mxu0 }
 0x223   : > { %v430_v8 = vadd.f32 %v429_v7, %v385_v3  ;;  %v431_v9 = vpop.f32.mrb[2].mxu0 }
 0x224   : > { %495 = vst [vmem:[%s858_s13] sm:$0xff] %v428_v6  ;;  %v432_v11 = vadd.f32 %v431_v9, %v381_v2  ;;  %v433_v12 = vpop.f32.mrb[3].mxu0 }
 0x225   : > { %496 = vst [vmem:[%s858_s13 + $0x8] sm:$0xff] %v430_v8  ;;  %v434_v13 = vadd.f32 %v433_v12, %v385_v3  ;;  %v606_v14 = vpop.f32.mrb[0].mxu1 }
 0x226   : > { %498 = vst [vmem:[%s858_s13 + $0x18] sm:$0xff] %v432_v11  ;;  %v480_v15 = vpop.f32.mrb[1].mxu1  ;;  %v489_v23 = vadd.f32 %v606_v14, %v389_v10 }
 0x227   : > { %499 = vst [vmem:[%s858_s13 + $0x20] sm:$0xff] %v434_v13  ;;  %v481_v16 = vadd.f32 %v480_v15, %v389_v10  ;;  %v607_v17 = vpop.f32.mrb[2].mxu1 }
 0x228   : > { %v483_v18 = vpop.f32.mrb[3].mxu1  ;;  %v492_v26 = vadd.f32 %v607_v17, %v389_v10  ;;  %503 = vst [vmem:[%s858_s13 + $0x40] sm:$0xff] %v489_v23 }
 0x229   : > { %497 = vst [vmem:[%s858_s13 + $0x10] sm:$0xff] %v481_v16  ;;  %v484_v19 = vadd.f32 %v483_v18, %v389_v10  ;;  %v437_v22 = vpop.f32.mrb[4].mxu0 }
 0x22a   : > { %v438_v24 = vadd.f32 %v437_v22, %v381_v2  ;;  %v439_v25 = vpop.f32.mrb[5].mxu0  ;;  %506 = vst [vmem:[%s858_s13 + $0x58] sm:$0xff] %v492_v26 }
 0x22b   : > { %500 = vst [vmem:[%s858_s13 + $0x28] sm:$0xff] %v484_v19  ;;  %v440_v29 = vadd.f32 %v439_v25, %v385_v3  ;;  %v441_v30 = vpop.f32.mrb[6].mxu0 }
 0x22c   : > { %501 = vst [vmem:[%s858_s13 + $0x30] sm:$0xff] %v438_v24  ;;  %v442_v31 = vadd.f32 %v441_v30, %v381_v2  ;;  %v443_v32 = vpop.f32.mrb[7].mxu0 }
 0x22d   : > { %502 = vst [vmem:[%s858_s13 + $0x38] sm:$0xff] %v440_v29  ;;  %v444_v33 = vadd.f32 %v443_v32, %v385_v3 }
 0x22e   : > { %504 = vst [vmem:[%s858_s13 + $0x48] sm:$0xff] %v442_v31 }
 0x22f   : > { %505 = vst [vmem:[%s858_s13 + $0x50] sm:$0xff] %v444_v33 }
 0x230 PF: > { %s15_s18 = sadd.s32 1, %s632_s18  }
 0x231   : > { %p12_p4 = scmp.ge.s32.totalorder %s15_s18, 4  }
 0x233   :  { %14 = sbr.rel (!%p12_p4) target bundleno = 1 (0x1), region = 70 }

// kernel: factorised_transformer_layer.7
= control target key start
LH: loop header
LB: loop body
LE: loop exit
PB: predicated region body
PF: predicated region fallthrough
CT: control target
= control target key end

     0   :  { %s864_s6 = smov 0   ;;  %s993_s0 = inlined_call_operand.vmem [shape: f32[4,16,192], index: 0, kind: input, shape index: {}]   ;;  %s994_s1 = inlined_call_operand.vmem [shape: f32[4,16,64], index: 1, kind: output, shape index: {}]  }
   0x1 LB: > { %s709_s7 = sadd.s32 4294967295, %s847_s6   ;;  %p713_p0 = scmp.ge.s32.totalorder %s847_s6, 1  ;;  %s847_s6 = sphi %s864_s6, %s11_s6  }
   0x2   : > { %p89_p1 = scmp.lt.s32.totalorder %s847_s6, 3 }
   0x4   : > { %p90_p2 = pnand %p713_p0, %p89_p1 }
   0x5   : > { %s714_s8 = sshll.u32 (!%p90_p2), %s709_s7, 1  ;;  %v849_v0 = vmov (!%p90_p2), 0.0   ;;  %vm850_vm0 = vmmov (!%p90_p2), 0   ;;  %s851_s13 = smov (!%p90_p2), 64   ;;  %vm139_vm1 = vcmask (!%p90_p2), 261120   ;;  %vm241_vm2 = vcmask (!%p90_p2), 130048  }
   0x6   : > { %93 = sbr.rel (%p90_p2) target bundleno = 1557 (0x615), region = 24  ;;  %p112_p3 = scmp.lt.s32.totalorder (!%p90_p2), %s714_s8, 3  ;;  %748 = vmatprep.subr.bf16.mxu0 (!%p90_p2), %v849_v0  ;;  %754 = vmatprep.subr.bf16.mxu1 (!%p90_p2), %v849_v0  ;;  %vm646_vm3 = vcmask (!%p90_p2), 523264  }
   0x7   : > { %750 = vmatprep.mubr.msk.bf16.mxu0 (!%p90_p2), %vm850_vm0, %v849_v0  ;;  %756 = vmatprep.mubr.msk.bf16.mxu1 (!%p90_p2), %vm850_vm0, %v849_v0  ;;  %s852_s14 = smov (!%p90_p2), 32   ;;  %s853_s15 = smov (!%p90_p2), 96  }
   0xd   : > { %s996_s8 = smov (!%p112_p3, %s714_s8), 3 }
   0xe   : > { %s730_s9 = sshll.u32 %s996_s8, 5  ;;  %s731_s16 = sshll.u32 %s996_s8, 4 }
   0xf   : > { %s884_s12 = scalar_lea.vmem %s993_s0, %s730_s9  ;;  %s123_s19 = scalar_lea.vmem %s994_s1, %s731_s16 }
  0x10   : > { %v126_v1 = vld [vmem:[%s884_s12] sm:$0xff]  ;;  %v128_v2 = vld [vmem:[%s884_s12 + $0x10] sm:$0xff]  ;;  %v127_v47 = vld [vmem:[%s884_s12 + $0x8] sm:$0xff] }
  0x11   : > { %v130_v3 = vld [vmem:[%s884_s12 + $0x20] sm:$0xff]  ;;  %v889_v4 = vpack.c.bf16 %v128_v2, %v126_v1  ;;  %v132_v5 = vld [vmem:[%s884_s12 + $0x30] sm:$0xff]  ;;  %v129_v48 = vld [vmem:[%s884_s12 + $0x18] sm:$0xff] }
  0x12   : > { %v893_v6 = vpack.c.bf16 %v132_v5, %v130_v3  ;;  %v922_v49 = vpack.c.bf16 %v129_v48, %v127_v47  ;;  %v131_v50 = vld [vmem:[%s884_s12 + $0x28] sm:$0xff]  ;;  %v133_v51 = vld [vmem:[%s884_s12 + $0x38] sm:$0xff] }
  0x13   : > { %137 = vrot.lane.b32.xlu0 %v889_v4, %s851_s13  ;;  %v930_v52 = vpack.c.bf16 %v133_v51, %v131_v50 }
  0x17   : > { %188 = vrot.lane.b32.xlu0 %v893_v6, %s851_s13 }
  0x85   : > { %v138_v7 = vpop.permute.xlu0 %137 }
  0x86   : > { %v144_v8 = vsel %vm139_vm1, %v138_v7, 0 }
  0x87   : > { %749 = vmatpush3.bf16.xpose.msra.mxu0 %v144_v8 }
  0x88   : > { %760 = vmatprep.subr.bf16.mxu0 %v849_v0 }
  0x89   : > { %v189_v9 = vpop.permute.xlu0 %188 }
  0x8a   : > { %v194_v10 = vsel %vm139_vm1, %v189_v9, 0 }
  0x8b   : > { %755 = vmatpush3.bf16.xpose.msra.mxu1 %v194_v10 }
  0x8c   : > { %766 = vmatprep.subr.bf16.mxu1 %v849_v0 }
  0x8e   : > { %751 = vmatmul.mubr.msk.bf16.vlgmr.msra.gmra.mrb[0].mxu0 %vm139_vm1, %v889_v4 }
  0x8f   : > { %762 = vmatprep.mubr.msk.bf16.mxu0 %vm850_vm0, %v849_v0  ;;  %761 = vmatpush3.bf16.msra.mxu0 %v922_v49 }
  0x90   : > { %772 = vmatprep.subr.bf16.mxu0 %v849_v0 }
  0x92   : > { %757 = vmatmul.mubr.msk.bf16.vlgmr.msra.gmra.mrb[0].mxu1 %vm139_vm1, %v893_v6 }
  0x93   : > { %768 = vmatprep.mubr.msk.bf16.mxu1 %vm850_vm0, %v849_v0  ;;  %767 = vmatpush3.bf16.msra.mxu1 %v930_v52 }
  0x94   : > { %778 = vmatprep.subr.bf16.mxu1 %v849_v0 }
 0x161   : > { %v180_v11 = vpop.f32.mrb[0].mxu0 }
 0x162   : > { %v237_v12 = vmul.f32 0.17677669, %v180_v11  ;;  %v752_v13 = vpop.f32.mrb[1].mxu0 }
 0x163   : > { %v183_v14 = vpop.f32.mrb[2].mxu0 }
 0x164   : > { %v238_v15 = vmul.f32 0.17677669, %v183_v14  ;;  %v753_v16 = vpop.f32.mrb[3].mxu0  ;;  %v242_v17 = vsel %vm241_vm2, %v237_v12, -inf }
 0x165   : > { %243 = vmax.xlane.f32.xlu1 %v242_v17  ;;  %v230_v18 = vpop.f32.mrb[0].mxu1 }
 0x166   : > { %v239_v19 = vmul.f32 0.17677669, %v230_v18  ;;  %v758_v20 = vpop.f32.mrb[1].mxu1  ;;  %v245_v24 = vsel %vm241_vm2, %v238_v15, -inf }
 0x167   : > { %v233_v21 = vpop.f32.mrb[2].mxu1 }
 0x168   : > { %v240_v22 = vmul.f32 0.17677669, %v233_v21  ;;  %v759_v23 = vpop.f32.mrb[3].mxu1  ;;  %v248_v25 = vsel %vm241_vm2, %v239_v19, -inf }
 0x169   : > { %246 = vmax.xlane.f32.xlu1 %v245_v24  ;;  %249 = vmax.xlane.f32.xlu0 %v248_v25 }
 0x16a   : > { %v251_v26 = vsel %vm241_vm2, %v240_v22, -inf }
 0x16d   : > { %252 = vmax.xlane.f32.xlu1 %v251_v26 }
 0x17e   : > { %380 = vrot.lane.b32.xlu1 %v889_v4, %s852_s14 }
 0x17f   : > { %431 = vrot.lane.b32.xlu0 %v893_v6, %s852_s14 }
 0x1f2   : > { %v244_v27 = vpop.xlane.xlu1 %243 }
 0x1f3   : > { %v254_v28 = vsub.f32 %v237_v12, %v244_v27 }
 0x1f5   : > { %v258_v29 = vmul.f32 1.442695, %v254_v28 }
 0x1f6   : > { %v247_v30 = vpop.xlane.xlu1 %246  ;;  %v250_v31 = vpop.xlane.xlu0 %249 }
 0x1f7   : > { %809 = vpow2.f32 %v258_v29  ;;  %v255_v32 = vsub.f32 %v238_v15, %v247_v30  ;;  %v256_v33 = vsub.f32 %v239_v19, %v250_v31 }
 0x1f9   : > { %v262_v34 = vmul.f32 1.442695, %v256_v33  ;;  %v260_v35 = vmul.f32 1.442695, %v255_v32 }
 0x1fa   : > { %v253_v36 = vpop.xlane.xlu1 %252  ;;  %v432_v2 = vpop.permute.xlu0 %431 }
 0x1fb   : > { %v257_v37 = vsub.f32 %v240_v22, %v253_v36  ;;  %811 = vpow2.f32 %v262_v34 }
 0x1fc   : > { %813 = vpow2.f32 %v260_v35 }
 0x1fd   : > { %v264_v38 = vmul.f32 1.442695, %v257_v37 }
 0x1fe   : > { %v381_v53 = vpop.permute.xlu1 %380 }
 0x1ff   : > { %815 = vpow2.f32 %v264_v38  ;;  %v386_v3 = vsel %vm139_vm1, %v381_v53, 0 }
 0x201   : > { %v810_v39 = vpop.eup %809 }
 0x202   : > { %v266_v40 = vsel %vm241_vm2, %v810_v39, 0.0 }
 0x203   : > { %267 = vadd.xlane.f32.xlu1 %v266_v40 }
 0x205   : > { %v812_v41 = vpop.eup %811 }
 0x206   : > { %v272_v42 = vsel %vm241_vm2, %v812_v41, 0.0  ;;  %v814_v43 = vpop.eup %813 }
 0x207   : > { %273 = vadd.xlane.f32.xlu1 %v272_v42  ;;  %v269_v44 = vsel %vm241_vm2, %v814_v43, 0.0 }
 0x209   : > { %v816_v45 = vpop.eup %815 }
 0x20a   : > { %v275_v46 = vsel %vm241_vm2, %v816_v45, 0.0 }
 0x20b   : > { %270 = vadd.xlane.f32.xlu1 %v269_v44 }
 0x20f   : > { %276 = vadd.xlane.f32.xlu1 %v275_v46 }
 0x220   : > { %378 = vrot.lane.b32.xlu1 %v889_v4, %s853_s15 }
 0x224   : > { %429 = vrot.lane.b32.xlu1 %v893_v6, %s853_s15  ;;  %v437_v6 = vsel %vm139_vm1, %v432_v2, 0 }
 0x290   : > { %v268_v54 = vpop.xlane.xlu1 %267 }
 0x291   : > { %817 = vrcp.f32 %v268_v54 }
 0x294   : > { %v274_v55 = vpop.xlane.xlu1 %273 }
 0x298   : > { %v271_v56 = vpop.xlane.xlu1 %270 }
 0x299   : > { %819 = vrcp.f32 %v271_v56 }
 0x29a   : > { %821 = vrcp.f32 %v274_v55 }
 0x29b   : > { %v818_v58 = vpop.eup %817 }
 0x29c   : > { %v277_v57 = vpop.xlane.xlu1 %276  ;;  %v282_v60 = vmul.f32 %v818_v58, %v810_v39 }
 0x29d   : > { %823 = vrcp.f32 %v277_v57 }
 0x2a0   : > { %v379_v8 = vpop.permute.xlu1 %378 }
 0x2a3   : > { %v820_v59 = vpop.eup %819 }
 0x2a4   : > { %v283_v61 = vmul.f32 %v820_v59, %v814_v43  ;;  %v822_v62 = vpop.eup %821  ;;  %v430_v9 = vpop.permute.xlu1 %429 }
 0x2a5   : > { %v284_v4 = vmul.f32 %v822_v62, %v812_v41 }
 0x2a6   : > { %v286_v63 = vpack.c.bf16 %v283_v61, %v282_v60 }
 0x2a7   : > { %v824_v1 = vpop.eup %823 }
 0x2a8   : > { %v285_v5 = vmul.f32 %v824_v1, %v816_v45  ;;  %763 = vmatmul.mubr.msk.bf16.vlgmr.msra.gmra.mrb[4].mxu0 %vm241_vm2, %v286_v63 }
 0x2a9   : > { %773 = vmatpush3.bf16.xpose.msra.mxu0 %v386_v3  ;;  %774 = vmatprep.mubr.msk.bf16.mxu0 %vm850_vm0, %v849_v0 }
 0x2aa   : > { %v287_v7 = vpack.c.bf16 %v285_v5, %v284_v4  ;;  %784 = vmatprep.subr.bf16.mxu0 %v849_v0 }
 0x2ac   : > { %769 = vmatmul.mubr.msk.bf16.vlgmr.msra.gmra.mrb[4].mxu1 %vm241_vm2, %v287_v7 }
 0x2ad   : > { %779 = vmatpush3.bf16.xpose.msra.mxu1 %v437_v6  ;;  %780 = vmatprep.mubr.msk.bf16.mxu1 %vm850_vm0, %v849_v0 }
 0x2ae   : > { %790 = vmatprep.subr.bf16.mxu1 %v849_v0 }
 0x2b0   : > { %775 = vmatmul.mubr.msk.bf16.vlgmr.msra.gmra.mrb[8].mxu0 %vm139_vm1, %v379_v8 }
 0x2b1   : > { %786 = vmatprep.mubr.msk.bf16.mxu0 %vm850_vm0, %v849_v0 }
 0x2b4   : > { %781 = vmatmul.mubr.msk.bf16.vlgmr.msra.gmra.mrb[8].mxu1 %vm139_vm1, %v430_v9 }
 0x2b5   : > { %792 = vmatprep.mubr.msk.bf16.mxu1 %vm850_vm0, %v849_v0 }
 0x37b   : > { %v952_v10 = vpop.f32.mrb[4].mxu0 }
 0x37c   : > { %v764_v11 = vpop.f32.mrb[5].mxu0 }
 0x37d   : > { %v954_v12 = vpop.f32.mrb[6].mxu0 }
 0x37e   : > { %v765_v13 = vpop.f32.mrb[7].mxu0 }
 0x37f   : > { %v956_v14 = vpop.f32.mrb[4].mxu1 }
 0x380   : > { %v770_v15 = vpop.f32.mrb[5].mxu1 }
 0x381   : > { %v958_v16 = vpop.f32.mrb[6].mxu1 }
 0x382   : > { %v771_v17 = vpop.f32.mrb[7].mxu1 }
 0x383   : > { %v422_v18 = vpop.f32.mrb[8].mxu0 }
 0x384   : > { %v480_v19 = vmul.f32 0.17677669, %v422_v18  ;;  %v776_v20 = vpop.f32.mrb[9].mxu0 }
 0x385   : > { %v425_v21 = vpop.f32.mrb[10].mxu0 }
 0x386   : > { %v481_v22 = vmul.f32 0.17677669, %v425_v21  ;;  %v777_v23 = vpop.f32.mrb[11].mxu0  ;;  %v484_v0 = vsel %vm241_vm2, %v480_v19, -inf }
 0x387   : > { %485 = vmax.xlane.f32.xlu1 %v484_v0  ;;  %v473_v24 = vpop.f32.mrb[8].mxu1 }
 0x388   : > { %v482_v25 = vmul.f32 0.17677669, %v473_v24  ;;  %v782_v26 = vpop.f32.mrb[9].mxu1  ;;  %v487_v27 = vsel %vm241_vm2, %v481_v22, -inf }
 0x389   : > { %488 = vmax.xlane.f32.xlu0 %v487_v27  ;;  %v476_v28 = vpop.f32.mrb[10].mxu1 }
 0x38a   : > { %v483_v29 = vmul.f32 0.17677669, %v476_v28  ;;  %v783_v30 = vpop.f32.mrb[11].mxu1  ;;  %v490_v31 = vsel %vm241_vm2, %v482_v25, -inf }
 0x38b   : > { %491 = vmax.xlane.f32.xlu1 %v490_v31 }
 0x38c   : > { %v493_v32 = vsel %vm241_vm2, %v483_v29, -inf }
 0x38d   : > { %494 = vmax.xlane.f32.xlu0 %v493_v32 }
 0x414   : > { %v486_v33 = vpop.xlane.xlu1 %485 }
 0x415   : > { %v496_v34 = vsub.f32 %v480_v19, %v486_v33 }
 0x416   : > { %v489_v35 = vpop.xlane.xlu0 %488 }
 0x417   : > { %v500_v36 = vmul.f32 1.442695, %v496_v34  ;;  %v497_v37 = vsub.f32 %v481_v22, %v489_v35 }
 0x418   : > { %v492_v38 = vpop.xlane.xlu1 %491 }
 0x419   : > { %825 = vpow2.f32 %v500_v36  ;;  %v502_v39 = vmul.f32 1.442695, %v497_v37  ;;  %v498_v40 = vsub.f32 %v482_v25, %v492_v38 }
 0x41a   : > { %v495_v41 = vpop.xlane.xlu0 %494 }
 0x41b   : > { %827 = vpow2.f32 %v502_v39  ;;  %v504_v42 = vmul.f32 1.442695, %v498_v40  ;;  %v499_v43 = vsub.f32 %v483_v29, %v495_v41 }
 0x41d   : > { %829 = vpow2.f32 %v504_v42  ;;  %v506_v44 = vmul.f32 1.442695, %v499_v43 }
 0x41f   : > { %831 = vpow2.f32 %v506_v44 }
 0x423   : > { %v826_v45 = vpop.eup %825 }
 0x424   : > { %v508_v46 = vsel %vm241_vm2, %v826_v45, 0.0 }
 0x425   : > { %v828_v47 = vpop.eup %827  ;;  %509 = vadd.xlane.f32.xlu1 %v508_v46 }
 0x426   : > { %v511_v48 = vsel %vm241_vm2, %v828_v47, 0.0 }
 0x427   : > { %v830_v50 = vpop.eup %829  ;;  %512 = vadd.xlane.f32.xlu0 %v511_v48 }
 0x428   : > { %v514_v51 = vsel %vm241_vm2, %v830_v50, 0.0 }
 0x429   : > { %v832_v53 = vpop.eup %831  ;;  %515 = vadd.xlane.f32.xlu1 %v514_v51 }
 0x42a   : > { %v517_v54 = vsel %vm241_vm2, %v832_v53, 0.0 }
 0x42b   : > { %518 = vadd.xlane.f32.xlu0 %v517_v54 }
 0x43a   : > { %531 = vrot.lane.b32.xlu1 %v922_v49, %s853_s15 }
 0x441   : > { %579 = vrot.lane.b32.xlu0 %v930_v52, %s853_s15 }
 0x4b2   : > { %v510_v55 = vpop.xlane.xlu1 %509 }
 0x4b3   : > { %833 = vrcp.f32 %v510_v55 }
 0x4b4   : > { %v513_v56 = vpop.xlane.xlu0 %512 }
 0x4b5   : > { %835 = vrcp.f32 %v513_v56 }
 0x4b6   : > { %v516_v57 = vpop.xlane.xlu1 %515 }
 0x4b7   : > { %837 = vrcp.f32 %v516_v57 }
 0x4b8   : > { %v519_v58 = vpop.xlane.xlu0 %518 }
 0x4b9   : > { %839 = vrcp.f32 %v519_v58 }
 0x4ba   : > { %v532_v59 = vpop.permute.xlu1 %531 }
 0x4bb   : > { %785 = vmatpush3.bf16.msra.mxu0 %v532_v59 }
 0x4bc   : > { %v580_v60 = vpop.permute.xlu0 %579 }
 0x4bd   : > { %v834_v61 = vpop.eup %833  ;;  %791 = vmatpush3.bf16.msra.mxu1 %v580_v60 }
 0x4be   : > { %v524_v63 = vmul.f32 %v834_v61, %v826_v45 }
 0x4bf   : > { %v836_v62 = vpop.eup %835 }
 0x4c0   : > { %v525_v1 = vmul.f32 %v836_v62, %v828_v47 }
 0x4c1   : > { %v838_v49 = vpop.eup %837 }
 0x4c2   : > { %v528_v2 = vpack.c.bf16 %v525_v1, %v524_v63  ;;  %v526_v52 = vmul.f32 %v838_v49, %v830_v50 }
 0x4c3   : > { %v840_v3 = vpop.eup %839 }
 0x4c4   : > { %v527_v4 = vmul.f32 %v840_v3, %v832_v53  ;;  %787 = vmatmul.mubr.msk.bf16.vlgmr.msra.gmra.mrb[12].mxu0 %vm241_vm2, %v528_v2 }
 0x4c6   : > { %v529_v5 = vpack.c.bf16 %v527_v4, %v526_v52 }
 0x4c8   : > { %793 = vmatmul.mubr.msk.bf16.vlgmr.msra.gmra.mrb[12].mxu1 %vm241_vm2, %v529_v5 }
 0x597   : > { %v571_v6 = vpop.f32.mrb[12].mxu0 }
 0x598   : > { %630 = vrot.lane.b32.xlu1 %v571_v6, %s852_s14  ;;  %v788_v7 = vpop.f32.mrb[13].mxu0 }
 0x599   : > { %v574_v8 = vpop.f32.mrb[14].mxu0 }
 0x59a   : > { %v789_v9 = vpop.f32.mrb[15].mxu0 }
 0x59b   : > { %v619_v11 = vpop.f32.mrb[12].mxu1 }
 0x59c   : > { %632 = vrot.lane.b32.xlu1 %v574_v8, %s852_s14  ;;  %634 = vrot.lane.b32.xlu0 %v619_v11, %s852_s14  ;;  %v794_v13 = vpop.f32.mrb[13].mxu1 }
 0x59d   : > { %v622_v15 = vpop.f32.mrb[14].mxu1 }
 0x59e   : > { %v795_v17 = vpop.f32.mrb[15].mxu1 }
 0x5a0   : > { %636 = vrot.lane.b32.xlu1 %v622_v15, %s852_s14 }
 0x60a   : > { %v631_v18 = vpop.permute.xlu1 %630 }
 0x60b   : > { %v642_v19 = vsel %vm139_vm1, %v952_v10, %v631_v18 }
 0x60c   : > { %647 = vst.msk [vmem:[%s123_s19] sm:$0xff] %vm646_vm3, %v642_v19 }
 0x60e   : > { %v633_v20 = vpop.permute.xlu1 %632  ;;  %v635_v21 = vpop.permute.xlu0 %634 }
 0x60f   : > { %v643_v22 = vsel %vm139_vm1, %v954_v12, %v633_v20  ;;  %v644_v23 = vsel %vm139_vm1, %v956_v14, %v635_v21 }
 0x610   : > { %648 = vst.msk [vmem:[%s123_s19 + $0x8] sm:$0xff] %vm646_vm3, %v643_v22  ;;  %649 = vst.msk [vmem:[%s123_s19 + $0x10] sm:$0xff] %vm646_vm3, %v644_v23 }
 0x612   : > { %v637_v0 = vpop.permute.xlu1 %636 }
 0x613   : > { %v645_v24 = vsel %vm139_vm1, %v958_v16, %v637_v0 }
 0x614   : > { %650 = vst.msk [vmem:[%s123_s19 + $0x18] sm:$0xff] %vm646_vm3, %v645_v24 }
 0x615 PF: > { %s11_s6 = sadd.s32 1, %s847_s6  }
 0x616   : > { %p8_p4 = scmp.ge.s32.totalorder %s11_s6, 4  }
 0x618   :  { %10 = sbr.rel (!%p8_p4) target bundleno = 1 (0x1), region = 54 }

// kernel: factorised_transformer_layer.9
= control target key start
LH: loop header
LB: loop body
LE: loop exit
PB: predicated region body
PF: predicated region fallthrough
CT: control target
= control target key end

     0   :  { %s661_s21 = smov 0   ;;  %s745_s0 = inlined_call_operand.vmem [shape: f32[64,64], index: 0, kind: input, shape index: {}]   ;;  %s746_s1 = inlined_call_operand.vmem [shape: f32[64,64], index: 1, kind: input, shape index: {}]   ;;  %s747_s2 = inlined_call_operand.vmem [shape: f32[64,128], index: 2, kind: input, shape index: {}]   ;;  %s748_s3 = inlined_call_operand.vmem [shape: f32[64,128], index: 3, kind: input, shape index: {}]   ;;  %s749_s4 = inlined_call_operand.vmem [shape: f32[1,128], index: 4, kind: input, shape index: {}]   ;;  %s750_s5 = inlined_call_operand.vmem [shape: f32[64,128], index: 5, kind: input, shape index: {}]   ;;  %s751_s6 = inlined_call_operand.vmem [shape: f32[64,128], index: 6, kind: output, shape index: {}]  }
   0x1 LB: > { %s550_s22 = sadd.s32 4294967295, %s624_s21   ;;  %p554_p0 = scmp.ge.s32.totalorder %s624_s21, 1  ;;  %s624_s21 = sphi %s661_s21, %s16_s21  }
   0x2   : > { %p235_p1 = scmp.lt.s32.totalorder %s624_s21, 3 }
   0x4   : > { %p236_p2 = pnand %p554_p0, %p235_p1 }
   0x5   : > { %v324_v0 = vld [vmem:[%s748_s3] sm:$0xff] (!%p236_p2)  ;;  %v325_v1 = vld [vmem:[%s748_s3 + $0x8] sm:$0xff] (!%p236_p2)  ;;  %s555_s29 = sshll.u32 (!%p236_p2), %s550_s22, 2  ;;  %v326_v5 = vld [vmem:[%s748_s3 + $0x10] sm:$0xff] (!%p236_p2)  ;;  %vm336_vm0 = vcmask (!%p236_p2), 523264  }
   0x6   : > { %239 = sbr.rel (%p236_p2) target bundleno = 247 (0xf7), region = 44  ;;  %v306_v2 = vld [vmem:[%s747_s2] sm:$0xff] (!%p236_p2)  ;;  %v332_v3 = vpack.c.bf16 (!%p236_p2), %v325_v1, %v324_v0  ;;  %v307_v4 = vld [vmem:[%s747_s2 + $0x8] sm:$0xff] (!%p236_p2)  ;;  %v327_v6 = vld [vmem:[%s748_s3 + $0x18] sm:$0xff] (!%p236_p2)  ;;  %p276_p3 = scmp.lt.s32.totalorder (!%p236_p2), %s555_s29, 7 }
   0x7   : > { %v314_v7 = vpack.c.bf16 (!%p236_p2), %v307_v4, %v306_v2  ;;  %v333_v8 = vpack.c.bf16 (!%p236_p2), %v327_v6, %v326_v5  ;;  %v308_v9 = vld [vmem:[%s747_s2 + $0x10] sm:$0xff] (!%p236_p2)  ;;  %v309_v10 = vld [vmem:[%s747_s2 + $0x18] sm:$0xff] (!%p236_p2)  ;;  %v328_v11 = vld [vmem:[%s748_s3 + $0x20] sm:$0xff] (!%p236_p2) }
   0x8   : > { %582 = vmatprep.subr.bf16.mxu1 (!%p236_p2), %v332_v3  ;;  %v315_v12 = vpack.c.bf16 (!%p236_p2), %v309_v10, %v308_v9  ;;  %v329_v13 = vld [vmem:[%s748_s3 + $0x28] sm:$0xff] (!%p236_p2)  ;;  %v310_v14 = vld [vmem:[%s747_s2 + $0x20] sm:$0xff] (!%p236_p2)  ;;  %v330_v17 = vld [vmem:[%s748_s3 + $0x30] sm:$0xff] (!%p236_p2) }
   0x9   : > { %v311_v15 = vld [vmem:[%s747_s2 + $0x28] sm:$0xff] (!%p236_p2)  ;;  %594 = vmatprep.subr.bf16.mxu0 (!%p236_p2), %v314_v7  ;;  %583 = vmatpush3.bf16.msra.mxu1 (!%p236_p2), %v332_v3  ;;  %v334_v16 = vpack.c.bf16 (!%p236_p2), %v329_v13, %v328_v11  ;;  %v331_v19 = vld [vmem:[%s748_s3 + $0x38] sm:$0xff] (!%p236_p2)  ;;  %v312_v20 = vld [vmem:[%s747_s2 + $0x30] sm:$0xff] (!%p236_p2) }
   0xa   : > { %595 = vmatpush3.bf16.msra.mxu0 (!%p236_p2), %v314_v7  ;;  %584 = vmatprep.subr.bf16.mxu1 (!%p236_p2), %v333_v8  ;;  %v316_v18 = vpack.c.bf16 (!%p236_p2), %v311_v15, %v310_v14  ;;  %v313_v21 = vld [vmem:[%s747_s2 + $0x38] sm:$0xff] (!%p236_p2)  ;;  %v335_v27 = vpack.c.bf16 (!%p236_p2), %v331_v19, %v330_v17  ;;  %v567_v40 = vld [vmem:[%s749_s4] ss:$0 sm:$0xff] (!%p236_p2) }
   0xb   : > { %596 = vmatprep.subr.bf16.mxu0 (!%p236_p2), %v315_v12  ;;  %v317_v29 = vpack.c.bf16 (!%p236_p2), %v313_v21, %v312_v20 }
   0xd   : > { %s753_s29 = smov (!%p276_p3, %s555_s29), 7  ;;  %585 = vmatpush3.bf16.msra.mxu1 %v333_v8 }
   0xe   : > { %s708_s27 = sshll.u32 %s753_s29, 3  ;;  %597 = vmatpush3.bf16.msra.mxu0 %v315_v12  ;;  %586 = vmatprep.subr.bf16.mxu1 %v334_v16 }
   0xf   : > { %s285_s29 = scalar_lea.vmem %s746_s1, %s708_s27  ;;  %s279_s15 = scalar_lea.vmem %s745_s0, %s708_s27  ;;  %598 = vmatprep.subr.bf16.mxu0 %v316_v18 }
  0x10   : > { %v318_v22 = vld [vmem:[%s285_s29] sm:$0xff]  ;;  %v319_v23 = vld [vmem:[%s285_s29 + $0x8] sm:$0xff]  ;;  %v320_v30 = vld [vmem:[%s285_s29 + $0x10] sm:$0xff]  ;;  %s291_s18 = scalar_lea.vmem %s750_s5, %s708_s27  ;;  %s297_s24 = scalar_lea.vmem %s751_s6, %s708_s27 }
  0x11   : > { %v300_v24 = vld [vmem:[%s279_s15] sm:$0xff]  ;;  %v322_v25 = vpack.c.bf16 %v319_v23, %v318_v22  ;;  %v301_v26 = vld [vmem:[%s279_s15 + $0x8] sm:$0xff]  ;;  %587 = vmatpush3.bf16.msra.mxu1 %v334_v16  ;;  %v321_v31 = vld [vmem:[%s285_s29 + $0x18] sm:$0xff] }
  0x12   : > { %v304_v28 = vpack.c.bf16 %v301_v26, %v300_v24  ;;  %599 = vmatpush3.bf16.msra.mxu0 %v316_v18  ;;  %588 = vmatprep.subr.bf16.mxu1 %v335_v27  ;;  %v302_v32 = vld [vmem:[%s279_s15 + $0x10] sm:$0xff]  ;;  %v303_v33 = vld [vmem:[%s279_s15 + $0x18] sm:$0xff]  ;;  %v323_v34 = vpack.c.bf16 %v321_v31, %v320_v30  ;;  %v458_v46 = vld [vmem:[%s291_s18] sm:$0xff] }
  0x13   : > { %590 = vmatprep.mubr.msk.bf16.mxu1 %vm336_vm0, %v322_v25  ;;  %600 = vmatprep.subr.bf16.mxu0 %v317_v29  ;;  %v305_v35 = vpack.c.bf16 %v303_v33, %v302_v32  ;;  %v459_v52 = vld [vmem:[%s291_s18 + $0x8] sm:$0xff]  ;;  %v460_v53 = vld [vmem:[%s291_s18 + $0x10] sm:$0xff]  ;;  %v461_v57 = vld [vmem:[%s291_s18 + $0x18] sm:$0xff] }
  0x14   : > { %602 = vmatprep.mubr.msk.bf16.mxu0 %vm336_vm0, %v304_v28 }
  0x15   : > { %589 = vmatpush3.bf16.msra.mxu1 %v335_v27 }
  0x16   : > { %601 = vmatpush3.bf16.msra.mxu0 %v317_v29 }
  0x18   : > { %591 = vmatmul.mubr.msk.bf16.vlgmr.msra.gmra.mrb[0].mxu1 %vm336_vm0, %v323_v34 }
  0x19   : > { %603 = vmatmul.mubr.msk.bf16.vlgmr.msra.gmra.mrb[0].mxu0 %vm336_vm0, %v305_v35 }
  0xeb   : > { %v592_v36 = vpop.f32.mrb[0].mxu1 }
  0xec   : > { %v604_v37 = vpop.f32.mrb[0].mxu0  ;;  %v377_v38 = vpop.f32.mrb[1].mxu1 }
  0xed   : > { %v441_v39 = vadd.f32 %v604_v37, %v592_v36  ;;  %v432_v41 = vpop.f32.mrb[1].mxu0  ;;  %v593_v42 = vpop.f32.mrb[2].mxu1 }
  0xee   : > { %v433_v43 = vadd.f32 %v432_v41, %v377_v38  ;;  %v605_v44 = vpop.f32.mrb[2].mxu0  ;;  %v380_v45 = vpop.f32.mrb[3].mxu1 }
  0xef   : > { %v444_v47 = vadd.f32 %v605_v44, %v593_v42  ;;  %v435_v48 = vpop.f32.mrb[3].mxu0  ;;  %v456_v51 = vadd.f32 %v567_v40, %v441_v39 }
  0xf0   : > { %v454_v49 = vadd.f32 %v567_v40, %v433_v43  ;;  %v436_v50 = vadd.f32 %v435_v48, %v380_v45 }
  0xf1   : > { %v457_v55 = vadd.f32 %v567_v40, %v444_v47  ;;  %v464_v59 = vadd.f32 %v460_v53, %v456_v51 }
  0xf2   : > { %v462_v54 = vadd.f32 %v458_v46, %v454_v49  ;;  %v455_v56 = vadd.f32 %v567_v40, %v436_v50 }
  0xf3   : > { %v465_v60 = vadd.f32 %v461_v57, %v457_v55  ;;  %468 = vst [vmem:[%s297_s24 + $0x10] sm:$0xff] %v464_v59 }
  0xf4   : > { %466 = vst [vmem:[%s297_s24] sm:$0xff] %v462_v54  ;;  %v463_v58 = vadd.f32 %v459_v52, %v455_v56 }
  0xf5   : > { %469 = vst [vmem:[%s297_s24 + $0x18] sm:$0xff] %v465_v60 }
  0xf6   : > { %467 = vst [vmem:[%s297_s24 + $0x8] sm:$0xff] %v463_v58 }
  0xf7 PF: > { %s16_s21 = sadd.s32 1, %s624_s21  }
  0xf8   : > { %p13_p4 = scmp.ge.s32.totalorder %s16_s21, 4  }
  0xfa   :  { %15 = sbr.rel (!%p13_p4) target bundleno = 1 (0x1), region = 80 }

// kernel: factorised_transformer_layer.8
= control target key start
LH: loop header
LB: loop body
LE: loop exit
PB: predicated region body
PF: predicated region fallthrough
CT: control target
= control target key end

     0   :  { %s2528_s6 = smov 0   ;;  %s3019_s0 = inlined_call_operand.vmem [shape: f32[32,2,192], index: 0, kind: input, shape index: {}]   ;;  %s3020_s1 = inlined_call_operand.vmem [shape: f32[32,2,64], index: 1, kind: output, shape index: {}]  }
   0x1 LB: > { %s2105_s7 = sadd.s32 4294967295, %s2510_s6   ;;  %p2109_p0 = scmp.ge.s32.totalorder %s2510_s6, 1  ;;  %s2510_s6 = sphi %s2528_s6, %s11_s6  }
   0x2   : > { %p89_p1 = scmp.lt.s32.totalorder %s2510_s6, 5 }
   0x4   : > { %p90_p2 = pnand %p2109_p0, %p89_p1 }
   0x5   : > { %s2110_s8 = sshll.u32 (!%p90_p2), %s2105_s7, 3  ;;  %v2512_v0 = vmov (!%p90_p2), 0.0   ;;  %vm2513_vm0 = vmmov (!%p90_p2), 0   ;;  %s2514_s13 = smov (!%p90_p2), 64   ;;  %vm143_vm1 = vcmask (!%p90_p2), 261120   ;;  %vm541_vm2 = vcmask (!%p90_p2), 9216  }
   0x6   : > { %93 = sbr.rel (%p90_p2) target bundleno = 1649 (0x671), region = 24  ;;  %p111_p3 = scmp.lt.s32.totalorder (!%p90_p2), %s2110_s8, 31  ;;  %2214 = vmatprep.subr.bf16.mxu0 (!%p90_p2), %v2512_v0  ;;  %2220 = vmatprep.subr.bf16.mxu1 (!%p90_p2), %v2512_v0  ;;  %vm730_vm3 = vcmask (!%p90_p2), 1040384   ;;  %vm726_vm4 = vcmask (!%p90_p2), 15360   ;;  %vm2040_vm5 = vcmask (!%p90_p2), 517120  }
   0x7   : > { %2216 = vmatprep.mubr.msk.bf16.mxu0 (!%p90_p2), %vm2513_vm0, %v2512_v0  ;;  %2222 = vmatprep.mubr.msk.bf16.mxu1 (!%p90_p2), %vm2513_vm0, %v2512_v0  ;;  %s2516_s14 = smov (!%p90_p2), 32   ;;  %s2517_s15 = smov (!%p90_p2), 96  }
   0xd   : > { %s3022_s8 = smov (!%p111_p3, %s2110_s8), 31 }
   0xe   : > { %s2149_s9 = sshll.u32 %s3022_s8, 2  ;;  %s2114_s16 = sshll.u32 %s3022_s8, 1 }
   0xf   : > { %s115_s12 = scalar_lea.vmem %s3019_s0, %s2149_s9  ;;  %s121_s19 = scalar_lea.vmem %s3020_s1, %s2114_s16 }
  0x10   : > { %v2548_v1 = vld [vmem:[%s115_s12] sm:$0xf]  ;;  %v2550_v2 = vld [vmem:[%s115_s12 + $0x4] sm:$0xf]  ;;  %v2552_v3 = vld [vmem:[%s115_s12 + $0x8] sm:$0xf] }
  0x11   : > { %v2556_v4 = vpack.c.bf16 %v2548_v1, %v2548_v1  ;;  %v2560_v5 = vpack.c.bf16 %v2552_v3, %v2552_v3  ;;  %v2562_v6 = vld [vmem:[%s115_s12 + $0xc] sm:$0xf]  ;;  %v2567_v7 = vpack.c.bf16 %v2550_v2, %v2550_v2  ;;  %v2574_v9 = vld [vmem:[%s115_s12 + $0x10] sm:$0xf]  ;;  %v2576_v10 = vld [vmem:[%s115_s12 + $0x14] sm:$0xf] }
  0x12   : > { %v2572_v8 = vpack.c.bf16 %v2562_v6, %v2562_v6  ;;  %v2582_v11 = vpack.c.bf16 %v2574_v9, %v2574_v9  ;;  %v2586_v12 = vpack.c.bf16 %v2576_v10, %v2576_v10  ;;  %v2588_v13 = vld [vmem:[%s115_s12 + $0x18] sm:$0xf]  ;;  %v2590_v14 = vld [vmem:[%s115_s12 + $0x1c] sm:$0xf] }
  0x13   : > { %141 = vrot.lane.b32.xlu0 %v2556_v4, %s2514_s13  ;;  %240 = vrot.lane.b32.xlu1 %v2560_v5, %s2514_s13  ;;  %v2596_v15 = vpack.c.bf16 %v2588_v13, %v2588_v13  ;;  %v2600_v16 = vpack.c.bf16 %v2590_v14, %v2590_v14 }
  0x17   : > { %191 = vrot.lane.b32.xlu0 %v2567_v7, %s2514_s13  ;;  %289 = vrot.lane.b32.xlu1 %v2572_v8, %s2514_s13 }
  0x1b   : > { %338 = vrot.lane.b32.xlu0 %v2582_v11, %s2514_s13  ;;  %387 = vrot.lane.b32.xlu1 %v2586_v12, %s2514_s13 }
  0x1f   : > { %436 = vrot.lane.b32.xlu0 %v2596_v15, %s2514_s13  ;;  %485 = vrot.lane.b32.xlu1 %v2600_v16, %s2514_s13 }
  0x85   : > { %v142_v17 = vpop.permute.xlu0 %141  ;;  %v241_v19 = vpop.permute.xlu1 %240 }
  0x86   : > { %v148_v18 = vsel %vm143_vm1, %v142_v17, 0  ;;  %v246_v22 = vsel %vm143_vm1, %v241_v19, 0 }
  0x87   : > { %2215 = vmatpush3.bf16.xpose.msra.mxu0 %v148_v18 }
  0x88   : > { %2226 = vmatprep.subr.bf16.mxu0 %v2512_v0 }
  0x89   : > { %v192_v20 = vpop.permute.xlu0 %191  ;;  %v290_v23 = vpop.permute.xlu1 %289 }
  0x8a   : > { %v197_v21 = vsel %vm143_vm1, %v192_v20, 0  ;;  %v295_v24 = vsel %vm143_vm1, %v290_v23, 0 }
  0x8b   : > { %2221 = vmatpush3.bf16.xpose.msra.mxu1 %v197_v21 }
  0x8c   : > { %2232 = vmatprep.subr.bf16.mxu1 %v2512_v0 }
  0x8d   : > { %v339_v25 = vpop.permute.xlu0 %338  ;;  %v388_v27 = vpop.permute.xlu1 %387 }
  0x8e   : > { %2217 = vmatmul.mubr.msk.bf16.vlgmr.msra.gmra.mrb[0].mxu0 %vm143_vm1, %v2556_v4  ;;  %v344_v26 = vsel %vm143_vm1, %v339_v25, 0  ;;  %v393_v28 = vsel %vm143_vm1, %v388_v27, 0 }
  0x8f   : > { %2227 = vmatpush3.bf16.xpose.msra.mxu0 %v246_v22  ;;  %2228 = vmatprep.mubr.msk.bf16.mxu0 %vm2513_vm0, %v2512_v0 }
  0x90   : > { %2238 = vmatprep.subr.bf16.mxu0 %v2512_v0 }
  0x91   : > { %v437_v29 = vpop.permute.xlu0 %436  ;;  %v486_v31 = vpop.permute.xlu1 %485 }
  0x92   : > { %2223 = vmatmul.mubr.msk.bf16.vlgmr.msra.gmra.mrb[0].mxu1 %vm143_vm1, %v2567_v7  ;;  %v442_v30 = vsel %vm143_vm1, %v437_v29, 0  ;;  %v491_v32 = vsel %vm143_vm1, %v486_v31, 0 }
  0x93   : > { %2233 = vmatpush3.bf16.xpose.msra.mxu1 %v295_v24  ;;  %2234 = vmatprep.mubr.msk.bf16.mxu1 %vm2513_vm0, %v2512_v0 }
  0x94   : > { %2244 = vmatprep.subr.bf16.mxu1 %v2512_v0 }
  0x96   : > { %2229 = vmatmul.mubr.msk.bf16.vlgmr.msra.gmra.mrb[4].mxu0 %vm143_vm1, %v2560_v5 }
  0x97   : > { %2239 = vmatpush3.bf16.xpose.msra.mxu0 %v344_v26  ;;  %2240 = vmatprep.mubr.msk.bf16.mxu0 %vm2513_vm0, %v2512_v0 }
  0x98   : > { %2250 = vmatprep.subr.bf16.mxu0 %v2512_v0 }
  0x9a   : > { %2235 = vmatmul.mubr.msk.bf16.vlgmr.msra.gmra.mrb[4].mxu1 %vm143_vm1, %v2572_v8 }
  0x9b   : > { %2245 = vmatpush3.bf16.xpose.msra.mxu1 %v393_v28  ;;  %2246 = vmatprep.mubr.msk.bf16.mxu1 %vm2513_vm0, %v2512_v0 }
  0x9c   : > { %2256 = vmatprep.subr.bf16.mxu1 %v2512_v0 }
  0x9e   : > { %2241 = vmatmul.mubr.msk.bf16.vlgmr.msra.gmra.mrb[8].mxu0 %vm143_vm1, %v2582_v11 }
  0x9f   : > { %2251 = vmatpush3.bf16.xpose.msra.mxu0 %v442_v30  ;;  %2252 = vmatprep.mubr.msk.bf16.mxu0 %vm2513_vm0, %v2512_v0 }
  0xa0   : > { %2262 = vmatprep.subr.bf16.mxu0 %v2512_v0 }
  0xa2   : > { %2247 = vmatmul.mubr.msk.bf16.vlgmr.msra.gmra.mrb[8].mxu1 %vm143_vm1, %v2586_v12 }
  0xa3   : > { %2257 = vmatpush3.bf16.xpose.msra.mxu1 %v491_v32  ;;  %2258 = vmatprep.mubr.msk.bf16.mxu1 %vm2513_vm0, %v2512_v0 }
  0xa4   : > { %2268 = vmatprep.subr.bf16.mxu1 %v2512_v0 }
  0xa6   : > { %2253 = vmatmul.mubr.msk.bf16.vlgmr.msra.gmra.mrb[12].mxu0 %vm143_vm1, %v2596_v15 }
  0xa7   : > { %2264 = vmatprep.mubr.msk.bf16.mxu0 %vm2513_vm0, %v2512_v0 }
  0xaa   : > { %2259 = vmatmul.mubr.msk.bf16.vlgmr.msra.gmra.mrb[12].mxu1 %vm143_vm1, %v2600_v16 }
  0xab   : > { %2270 = vmatprep.mubr.msk.bf16.mxu1 %vm2513_vm0, %v2512_v0 }
 0x161   : > { %v184_v33 = vpop.f32.mrb[0].mxu0 }
 0x162   : > { %v533_v34 = vmul.f32 0.17677669, %v184_v33  ;;  %v2218_v35 = vpop.f32.mrb[1].mxu0 }
 0x163   : > { %v187_v36 = vpop.f32.mrb[2].mxu0 }
 0x164   : > { %v2219_v37 = vpop.f32.mrb[3].mxu0  ;;  %v542_v38 = vsel %vm541_vm2, %v533_v34, -inf }
 0x165   : > { %543 = vmax.xlane.f32.xlu0 %v542_v38  ;;  %v233_v39 = vpop.f32.mrb[0].mxu1 }
 0x166   : > { %v534_v40 = vmul.f32 0.17677669, %v233_v39  ;;  %v2224_v41 = vpop.f32.mrb[1].mxu1 }
 0x167   : > { %v236_v42 = vpop.f32.mrb[2].mxu1 }
 0x168   : > { %v545_v43 = vsel %vm541_vm2, %v534_v40, -inf  ;;  %v2225_v44 = vpop.f32.mrb[3].mxu1 }
 0x169   : > { %v282_v45 = vpop.f32.mrb[4].mxu0  ;;  %546 = vmax.xlane.f32.xlu1 %v545_v43 }
 0x16a   : > { %v535_v46 = vmul.f32 0.17677669, %v282_v45  ;;  %v2230_v47 = vpop.f32.mrb[5].mxu0 }
 0x16b   : > { %v285_v48 = vpop.f32.mrb[6].mxu0 }
 0x16c   : > { %v2231_v49 = vpop.f32.mrb[7].mxu0  ;;  %v548_v50 = vsel %vm541_vm2, %v535_v46, -inf }
 0x16d   : > { %549 = vmax.xlane.f32.xlu0 %v548_v50  ;;  %v331_v51 = vpop.f32.mrb[4].mxu1 }
 0x16e   : > { %v536_v52 = vmul.f32 0.17677669, %v331_v51  ;;  %v2236_v53 = vpop.f32.mrb[5].mxu1 }
 0x16f   : > { %v334_v54 = vpop.f32.mrb[6].mxu1 }
 0x170   : > { %v551_v55 = vsel %vm541_vm2, %v536_v52, -inf  ;;  %v2237_v56 = vpop.f32.mrb[7].mxu1 }
 0x171   : > { %552 = vmax.xlane.f32.xlu0 %v551_v55  ;;  %v380_v57 = vpop.f32.mrb[8].mxu0 }
 0x172   : > { %v537_v58 = vmul.f32 0.17677669, %v380_v57  ;;  %v2242_v59 = vpop.f32.mrb[9].mxu0 }
 0x173   : > { %v383_v60 = vpop.f32.mrb[10].mxu0 }
 0x174   : > { %v2243_v61 = vpop.f32.mrb[11].mxu0  ;;  %v554_v62 = vsel %vm541_vm2, %v537_v58, -inf }
 0x175   : > { %v429_v63 = vpop.f32.mrb[8].mxu1  ;;  %555 = vmax.xlane.f32.xlu1 %v554_v62  ;;  %v2515_v62 = vmov 1983009808  }
 0x176   : > { %v538_v17 = vmul.f32 0.17677669, %v429_v63  ;;  %v2248_v18 = vpop.f32.mrb[9].mxu1  ;;  %v647_v63 = vunpack.c.l.s4 %v2515_v62 }
 0x177   : > { %v432_v19 = vpop.f32.mrb[10].mxu1 }
 0x178   : > { %v557_v20 = vsel %vm541_vm2, %v538_v17, -inf  ;;  %v2249_v21 = vpop.f32.mrb[11].mxu1 }
 0x179   : > { %558 = vmax.xlane.f32.xlu0 %v557_v20  ;;  %v478_v22 = vpop.f32.mrb[12].mxu0  ;;  %v648_v21 = vunpack.c.0.s8 %v647_v63 }
 0x17a   : > { %v2658_v23 = vmul.f32 0.17677669, %v478_v22  ;;  %v2254_v24 = vpop.f32.mrb[13].mxu0 }
 0x17b   : > { %v481_v25 = vpop.f32.mrb[14].mxu0 }
 0x17c   : > { %v560_v26 = vsel %vm541_vm2, %v2658_v23, -inf  ;;  %v2255_v27 = vpop.f32.mrb[15].mxu0 }
 0x17d   : > { %v527_v28 = vpop.f32.mrb[12].mxu1  ;;  %561 = vmax.xlane.f32.xlu1 %v560_v26 }
 0x17e   : > { %v540_v29 = vmul.f32 0.17677669, %v527_v28  ;;  %v2260_v30 = vpop.f32.mrb[13].mxu1 }
 0x17f   : > { %v530_v31 = vpop.f32.mrb[14].mxu1 }
 0x180   : > { %v563_v32 = vsel %vm541_vm2, %v540_v29, -inf  ;;  %v2261_v33 = vpop.f32.mrb[15].mxu1 }
 0x181   : > { %564 = vmax.xlane.f32.xlu0 %v563_v32 }
 0x1f2   : > { %v544_v35 = vpop.xlane.xlu0 %543 }
 0x1f3   : > { %v566_v36 = vsub.f32 %v533_v34, %v544_v35 }
 0x1f5   : > { %v574_v37 = vmul.f32 1.442695, %v566_v36 }
 0x1f6   : > { %v547_v38 = vpop.xlane.xlu1 %546 }
 0x1f7   : > { %2440 = vpow2.f32 %v574_v37  ;;  %v567_v39 = vsub.f32 %v534_v40, %v547_v38 }
 0x1f9   : > { %v576_v41 = vmul.f32 1.442695, %v567_v39 }
 0x1fa   : > { %v550_v42 = vpop.xlane.xlu0 %549 }
 0x1fb   : > { %2442 = vpow2.f32 %v576_v41  ;;  %v568_v43 = vsub.f32 %v535_v46, %v550_v42 }
 0x1fd   : > { %v578_v44 = vmul.f32 1.442695, %v568_v43 }
 0x1fe   : > { %v553_v45 = vpop.xlane.xlu0 %552 }
 0x1ff   : > { %2444 = vpow2.f32 %v578_v44  ;;  %v569_v47 = vsub.f32 %v536_v52, %v553_v45 }
 0x201   : > { %v2663_v48 = vpop.eup %2440  ;;  %v580_v49 = vmul.f32 1.442695, %v569_v47 }
 0x202   : > { %v556_v50 = vpop.xlane.xlu1 %555  ;;  %v590_v51 = vsel %vm541_vm2, %v2663_v48, 0.0 }
 0x203   : > { %2446 = vpow2.f32 %v580_v49  ;;  %v570_v34 = vsub.f32 %v537_v58, %v556_v50  ;;  %591 = vadd.xlane.f32.xlu1 %v590_v51 }
 0x205   : > { %v2667_v53 = vpop.eup %2442  ;;  %v582_v40 = vmul.f32 1.442695, %v570_v34 }
 0x206   : > { %v559_v54 = vpop.xlane.xlu0 %558  ;;  %v593_v46 = vsel %vm541_vm2, %v2667_v53, 0.0 }
 0x207   : > { %2448 = vpow2.f32 %v582_v40  ;;  %v571_v55 = vsub.f32 %v538_v17, %v559_v54  ;;  %594 = vadd.xlane.f32.xlu0 %v593_v46  ;;  %v649_v17 = vlaneseq }
 0x209   : > { %v2671_v52 = vpop.eup %2444  ;;  %v584_v56 = vmul.f32 1.442695, %v571_v55  ;;  %v650_v22 = vshrl.u32 %v649_v17, 7 }
 0x20a   : > { %v596_v57 = vsel %vm541_vm2, %v2671_v52, 0.0 }
 0x20b   : > { %2450 = vpow2.f32 %v584_v56  ;;  %597 = vadd.xlane.f32.xlu1 %v596_v57  ;;  %v2683_v24 = vsub.s32 %v648_v21, %v650_v22 }
 0x20d   : > { %v2675_v58 = vpop.eup %2446  ;;  %v652_v27 = vrot.slane %v2548_v1, %v2683_v24  ;;  %v660_v30 = vrot.slane %v2550_v2, %v2683_v24  ;;  %v562_v2 = vpop.xlane.xlu1 %561 }
 0x20e   : > { %v565_v59 = vpop.xlane.xlu0 %564  ;;  %v599_v60 = vsel %vm541_vm2, %v2675_v58, 0.0  ;;  %v572_v37 = vsub.f32 %v2658_v23, %v562_v2 }
 0x20f   : > { %v573_v61 = vsub.f32 %v540_v29, %v565_v59  ;;  %600 = vadd.xlane.f32.xlu0 %v599_v60  ;;  %v2691_v28 = vcombine.high %v652_v27, %v652_v27  ;;  %v2698_v32 = vcombine.high %v660_v30, %v660_v30 }
 0x210   : > { %v586_v38 = vmul.f32 1.442695, %v572_v37 }
 0x211   : > { %v2679_v18 = vpop.eup %2448  ;;  %v588_v19 = vmul.f32 1.442695, %v573_v61  ;;  %v718_v29 = vpack.c.bf16 %v2691_v28, %v2691_v28  ;;  %v719_v35 = vpack.c.bf16 %v2698_v32, %v2698_v32 }
 0x212   : > { %v602_v20 = vsel %vm541_vm2, %v2679_v18, 0.0 }
 0x213   : > { %2452 = vpow2.f32 %v588_v19  ;;  %603 = vadd.xlane.f32.xlu1 %v602_v20  ;;  %v732_v31 = vsel %vm730_vm3, %v718_v29, 0  ;;  %v778_v36 = vsel %vm730_vm3, %v719_v35, 0 }
 0x214   : > { %2263 = vmatpush3.bf16.msra.mxu0 %v732_v31  ;;  %2269 = vmatpush3.bf16.msra.mxu1 %v778_v36  ;;  %2454 = vpow2.f32 %v586_v38 }
 0x215   : > { %v2685_v25 = vpop.eup %2450  ;;  %2274 = vmatprep.subr.bf16.mxu0 %v2512_v0  ;;  %2280 = vmatprep.subr.bf16.mxu1 %v2512_v0 }
 0x216   : > { %v605_v26 = vsel %vm541_vm2, %v2685_v25, 0.0 }
 0x217   : > { %606 = vadd.xlane.f32.xlu0 %v605_v26 }
 0x21d   : > { %v2700_v33 = vpop.eup %2452 }
 0x21e   : > { %v611_v1 = vsel %vm541_vm2, %v2700_v33, 0.0  ;;  %v2720_v39 = vpop.eup %2454 }
 0x21f   : > { %612 = vadd.xlane.f32.xlu0 %v611_v1  ;;  %v608_v23 = vsel %vm541_vm2, %v2720_v39, 0.0 }
 0x224   : > { %1098 = vrot.lane.b32.xlu1 %v2556_v4, %s2516_s14 }
 0x235   : > { %1148 = vrot.lane.b32.xlu0 %v2567_v7, %s2516_s14 }
 0x239   : > { %1198 = vrot.lane.b32.xlu0 %v2560_v5, %s2516_s14 }
 0x23d   : > { %1196 = vrot.lane.b32.xlu0 %v2560_v5, %s2517_s15  ;;  %v668_v5 = vrot.slane %v2552_v3, %v2683_v24 }
 0x241   : > { %1298 = vrot.lane.b32.xlu0 %v2582_v11, %s2516_s14 }
 0x245   : > { %1296 = vrot.lane.b32.xlu0 %v2582_v11, %s2517_s15  ;;  %v676_v11 = vrot.slane %v2562_v6, %v2683_v24 }
 0x247   : > { %v2756_v41 = vcombine.high %v676_v11, %v676_v11 }
 0x248   : > { %609 = vadd.xlane.f32.xlu1 %v608_v23 }
 0x249   : > { %1398 = vrot.lane.b32.xlu0 %v2596_v15, %s2516_s14  ;;  %v721_v47 = vpack.c.bf16 %v2756_v41, %v2756_v41 }
 0x24b   : > { %v870_v40 = vsel %vm730_vm3, %v721_v47, 0 }
 0x24d   : > { %1396 = vrot.lane.b32.xlu0 %v2596_v15, %s2517_s15 }
 0x259   : > { %1096 = vrot.lane.b32.xlu1 %v2556_v4, %s2517_s15 }
 0x25d   : > { %1146 = vrot.lane.b32.xlu1 %v2567_v7, %s2517_s15 }
 0x261   : > { %1248 = vrot.lane.b32.xlu1 %v2572_v8, %s2516_s14 }
 0x265   : > { %1246 = vrot.lane.b32.xlu1 %v2572_v8, %s2517_s15  ;;  %v2748_v8 = vcombine.high %v668_v5, %v668_v5 }
 0x269   : > { %1348 = vrot.lane.b32.xlu1 %v2586_v12, %s2516_s14 }
 0x26d   : > { %1346 = vrot.lane.b32.xlu1 %v2586_v12, %s2517_s15  ;;  %v684_v12 = vrot.slane %v2574_v9, %v2683_v24  ;;  %v692_v9 = vrot.slane %v2576_v10, %v2683_v24 }
 0x26f   : > { %v2759_v44 = vcombine.high %v684_v12, %v684_v12  ;;  %v2774_v10 = vcombine.high %v692_v9, %v692_v9 }
 0x271   : > { %1448 = vrot.lane.b32.xlu1 %v2600_v16, %s2516_s14  ;;  %v722_v51 = vpack.c.bf16 %v2759_v44, %v2759_v44  ;;  %v723_v59 = vpack.c.bf16 %v2774_v10, %v2774_v10 }
 0x273   : > { %v916_v56 = vsel %vm730_vm3, %v722_v51, 0  ;;  %v962_v63 = vsel %vm730_vm3, %v723_v59, 0 }
 0x275   : > { %1446 = vrot.lane.b32.xlu1 %v2600_v16, %s2517_s15  ;;  %v720_v16 = vpack.c.bf16 %v2748_v8, %v2748_v8 }
 0x277   : > { %v824_v6 = vsel %vm730_vm3, %v720_v16, 0 }
 0x290   : > { %v592_v4 = vpop.xlane.xlu1 %591 }
 0x291   : > { %2456 = vrcp.f32 %v592_v4 }
 0x294   : > { %v595_v7 = vpop.xlane.xlu0 %594 }
 0x295   : > { %2458 = vrcp.f32 %v595_v7 }
 0x298   : > { %v598_v15 = vpop.xlane.xlu1 %597 }
 0x299   : > { %2460 = vrcp.f32 %v598_v15 }
 0x29b   : > { %v2457_v42 = vpop.eup %2456 }
 0x29c   : > { %v622_v3 = vmul.f32 %v2457_v42, %v2663_v48  ;;  %v601_v43 = vpop.xlane.xlu0 %600 }
 0x29d   : > { %2462 = vrcp.f32 %v601_v43 }
 0x29e   : > { %v630_v45 = vpack.c.bf16 %v622_v3, %v622_v3 }
 0x29f   : > { %v2459_v49 = vpop.eup %2458 }
 0x2a0   : > { %v623_v50 = vmul.f32 %v2459_v49, %v2667_v53  ;;  %2265 = vmatmul.mubr.msk.bf16.vlgmr.msra.gmra.mrb[16].mxu0 %vm726_vm4, %v630_v45  ;;  %v604_v48 = vpop.xlane.xlu1 %603  ;;  %v700_v53 = vrot.slane %v2588_v13, %v2683_v24  ;;  %v708_v13 = vrot.slane %v2590_v14, %v2683_v24 }
 0x2a1   : > { %2464 = vrcp.f32 %v604_v48  ;;  %2275 = vmatpush3.bf16.msra.mxu0 %v824_v6  ;;  %2276 = vmatprep.mubr.msk.bf16.mxu0 %vm2513_vm0, %v2512_v0 }
 0x2a2   : > { %v631_v34 = vpack.c.bf16 %v623_v50, %v623_v50  ;;  %2286 = vmatprep.subr.bf16.mxu0 %v2512_v0  ;;  %v2795_v17 = vcombine.high %v708_v13, %v708_v13 }
 0x2a3   : > { %v2461_v54 = vpop.eup %2460 }
 0x2a4   : > { %v624_v46 = vmul.f32 %v2461_v54, %v2671_v52  ;;  %2271 = vmatmul.mubr.msk.bf16.vlgmr.msra.gmra.mrb[16].mxu1 %vm726_vm4, %v631_v34  ;;  %v607_v55 = vpop.xlane.xlu0 %606  ;;  %v2788_v52 = vcombine.high %v700_v53, %v700_v53  ;;  %v725_v22 = vpack.c.bf16 %v2795_v17, %v2795_v17  ;;  %v1099_v36 = vpop.permute.xlu1 %1098 }
 0x2a5   : > { %2466 = vrcp.f32 %v607_v55  ;;  %2281 = vmatpush3.bf16.msra.mxu1 %v870_v40  ;;  %2282 = vmatprep.mubr.msk.bf16.mxu1 %vm2513_vm0, %v2512_v0  ;;  %v1104_v15 = vsel %vm143_vm1, %v1099_v36, 0 }
 0x2a6   : > { %v632_v57 = vpack.c.bf16 %v624_v46, %v624_v46  ;;  %2292 = vmatprep.subr.bf16.mxu1 %v2512_v0  ;;  %v724_v14 = vpack.c.bf16 %v2788_v52, %v2788_v52  ;;  %v1054_v29 = vsel %vm730_vm3, %v725_v22, 0 }
 0x2a7   : > { %v2463_v60 = vpop.eup %2462 }
 0x2a8   : > { %v625_v61 = vmul.f32 %v2463_v60, %v2675_v58  ;;  %2277 = vmatmul.mubr.msk.bf16.vlgmr.msra.gmra.mrb[20].mxu0 %vm726_vm4, %v632_v57  ;;  %v1008_v24 = vsel %vm730_vm3, %v724_v14, 0 }
 0x2a9   : > { %2287 = vmatpush3.bf16.msra.mxu0 %v916_v56  ;;  %2288 = vmatprep.mubr.msk.bf16.mxu0 %vm2513_vm0, %v2512_v0 }
 0x2aa   : > { %v633_v62 = vpack.c.bf16 %v625_v61, %v625_v61  ;;  %2298 = vmatprep.subr.bf16.mxu0 %v2512_v0 }
 0x2ab   : > { %v2465_v19 = vpop.eup %2464 }
 0x2ac   : > { %v626_v20 = vmul.f32 %v2465_v19, %v2679_v18  ;;  %2283 = vmatmul.mubr.msk.bf16.vlgmr.msra.gmra.mrb[20].mxu1 %vm726_vm4, %v633_v62  ;;  %v613_v58 = vpop.xlane.xlu0 %612 }
 0x2ad   : > { %2468 = vrcp.f32 %v613_v58  ;;  %2293 = vmatpush3.bf16.msra.mxu1 %v962_v63  ;;  %2294 = vmatprep.mubr.msk.bf16.mxu1 %vm2513_vm0, %v2512_v0 }
 0x2ae   : > { %v634_v21 = vpack.c.bf16 %v626_v20, %v626_v20  ;;  %2304 = vmatprep.subr.bf16.mxu1 %v2512_v0 }
 0x2af   : > { %v2467_v26 = vpop.eup %2466 }
 0x2b0   : > { %v627_v27 = vmul.f32 %v2467_v26, %v2685_v25  ;;  %2289 = vmatmul.mubr.msk.bf16.vlgmr.msra.gmra.mrb[24].mxu0 %vm726_vm4, %v634_v21  ;;  %v1149_v31 = vpop.permute.xlu0 %1148 }
 0x2b1   : > { %2299 = vmatpush3.bf16.msra.mxu0 %v1008_v24  ;;  %2300 = vmatprep.mubr.msk.bf16.mxu0 %vm2513_vm0, %v2512_v0  ;;  %v1154_v35 = vsel %vm143_vm1, %v1149_v31, 0 }
 0x2b2   : > { %v635_v18 = vpack.c.bf16 %v627_v27, %v627_v27  ;;  %2310 = vmatprep.subr.bf16.mxu0 %v2512_v0 }
 0x2b4   : > { %2295 = vmatmul.mubr.msk.bf16.vlgmr.msra.gmra.mrb[24].mxu1 %vm726_vm4, %v635_v18  ;;  %v1199_v23 = vpop.permute.xlu0 %1198 }
 0x2b5   : > { %2305 = vmatpush3.bf16.msra.mxu1 %v1054_v29  ;;  %2306 = vmatprep.mubr.msk.bf16.mxu1 %vm2513_vm0, %v2512_v0  ;;  %v1204_v3 = vsel %vm143_vm1, %v1199_v23, 0 }
 0x2b6   : > { %2316 = vmatprep.subr.bf16.mxu1 %v2512_v0 }
 0x2b7   : > { %v2469_v25 = vpop.eup %2468 }
 0x2b8   : > { %v629_v30 = vmul.f32 %v2469_v25, %v2700_v33  ;;  %v1197_v16 = vpop.permute.xlu0 %1196 }
 0x2ba   : > { %v637_v1 = vpack.c.bf16 %v629_v30, %v629_v30 }
 0x2bc   : > { %2307 = vmatmul.mubr.msk.bf16.vlgmr.msra.gmra.mrb[28].mxu1 %vm726_vm4, %v637_v1  ;;  %v1299_v43 = vpop.permute.xlu0 %1298 }
 0x2bd   : > { %2318 = vmatprep.mubr.msk.bf16.mxu1 %vm2513_vm0, %v2512_v0  ;;  %v1304_v49 = vsel %vm143_vm1, %v1299_v43, 0 }
 0x2be   : > { %2317 = vmatpush3.bf16.xpose.msra.mxu1 %v1154_v35 }
 0x2bf   : > { %2328 = vmatprep.subr.bf16.mxu1 %v2512_v0 }
 0x2c0   : > { %v1297_v9 = vpop.permute.xlu0 %1296 }
 0x2c4   : > { %v1399_v48 = vpop.permute.xlu0 %1398 }
 0x2c5   : > { %v1404_v51 = vsel %vm143_vm1, %v1399_v48, 0 }
 0x2c8   : > { %v1397_v34 = vpop.permute.xlu0 %1396 }
 0x2d5   : > { %v610_v2 = vpop.xlane.xlu1 %609 }
 0x2d6   : > { %2470 = vrcp.f32 %v610_v2 }
 0x2d9   : > { %v1097_v37 = vpop.permute.xlu1 %1096 }
 0x2dd   : > { %v1147_v38 = vpop.permute.xlu1 %1146 }
 0x2de   : > { %2319 = vmatmul.mubr.msk.bf16.vlgmr.msra.gmra.mrb[32].mxu1 %vm143_vm1, %v1147_v38 }
 0x2df   : > { %2330 = vmatprep.mubr.msk.bf16.mxu1 %vm2513_vm0, %v2512_v0 }
 0x2e0   : > { %v2471_v33 = vpop.eup %2470 }
 0x2e1   : > { %v628_v4 = vmul.f32 %v2471_v33, %v2720_v39  ;;  %v1249_v5 = vpop.permute.xlu1 %1248 }
 0x2e2   : > { %v1254_v7 = vsel %vm143_vm1, %v1249_v5, 0 }
 0x2e3   : > { %v636_v11 = vpack.c.bf16 %v628_v4, %v628_v4  ;;  %2329 = vmatpush3.bf16.xpose.msra.mxu1 %v1254_v7 }
 0x2e4   : > { %2340 = vmatprep.subr.bf16.mxu1 %v2512_v0 }
 0x2e5   : > { %2301 = vmatmul.mubr.msk.bf16.vlgmr.msra.gmra.mrb[28].mxu0 %vm726_vm4, %v636_v11  ;;  %v1247_v12 = vpop.permute.xlu1 %1246 }
 0x2e6   : > { %2311 = vmatpush3.bf16.xpose.msra.mxu0 %v1104_v15  ;;  %2312 = vmatprep.mubr.msk.bf16.mxu0 %vm2513_vm0, %v2512_v0 }
 0x2e7   : > { %2322 = vmatprep.subr.bf16.mxu0 %v2512_v0 }
 0x2e9   : > { %v1349_v39 = vpop.permute.xlu1 %1348 }
 0x2ea   : > { %v1354_v42 = vsel %vm143_vm1, %v1349_v39, 0  ;;  %2331 = vmatmul.mubr.msk.bf16.vlgmr.msra.gmra.mrb[36].mxu1 %vm143_vm1, %v1247_v12 }
 0x2eb   : > { %2341 = vmatpush3.bf16.xpose.msra.mxu1 %v1354_v42  ;;  %2342 = vmatprep.mubr.msk.bf16.mxu1 %vm2513_vm0, %v2512_v0 }
 0x2ec   : > { %2352 = vmatprep.subr.bf16.mxu1 %v2512_v0 }
 0x2ed   : > { %2313 = vmatmul.mubr.msk.bf16.vlgmr.msra.gmra.mrb[32].mxu0 %vm143_vm1, %v1097_v37  ;;  %v1347_v45 = vpop.permute.xlu1 %1346 }
 0x2ee   : > { %2323 = vmatpush3.bf16.xpose.msra.mxu0 %v1204_v3  ;;  %2324 = vmatprep.mubr.msk.bf16.mxu0 %vm2513_vm0, %v2512_v0 }
 0x2ef   : > { %2334 = vmatprep.subr.bf16.mxu0 %v2512_v0 }
 0x2f1   : > { %v1449_v6 = vpop.permute.xlu1 %1448 }
 0x2f2   : > { %v1454_v47 = vsel %vm143_vm1, %v1449_v6, 0  ;;  %2343 = vmatmul.mubr.msk.bf16.vlgmr.msra.gmra.mrb[40].mxu1 %vm143_vm1, %v1347_v45 }
 0x2f3   : > { %2353 = vmatpush3.bf16.xpose.msra.mxu1 %v1454_v47  ;;  %2354 = vmatprep.mubr.msk.bf16.mxu1 %vm2513_vm0, %v2512_v0 }
 0x2f4   : > { %2364 = vmatprep.subr.bf16.mxu1 %v2512_v0 }
 0x2f5   : > { %2325 = vmatmul.mubr.msk.bf16.vlgmr.msra.gmra.mrb[36].mxu0 %vm143_vm1, %v1197_v16  ;;  %v1447_v50 = vpop.permute.xlu1 %1446 }
 0x2f6   : > { %2335 = vmatpush3.bf16.xpose.msra.mxu0 %v1304_v49  ;;  %2336 = vmatprep.mubr.msk.bf16.mxu0 %vm2513_vm0, %v2512_v0 }
 0x2f7   : > { %2346 = vmatprep.subr.bf16.mxu0 %v2512_v0 }
 0x2fa   : > { %2355 = vmatmul.mubr.msk.bf16.vlgmr.msra.gmra.mrb[44].mxu1 %vm143_vm1, %v1447_v50 }
 0x2fb   : > { %2366 = vmatprep.mubr.msk.bf16.mxu1 %vm2513_vm0, %v2512_v0 }
 0x2fd   : > { %2337 = vmatmul.mubr.msk.bf16.vlgmr.msra.gmra.mrb[40].mxu0 %vm143_vm1, %v1297_v9 }
 0x2fe   : > { %2347 = vmatpush3.bf16.xpose.msra.mxu0 %v1404_v51  ;;  %2348 = vmatprep.mubr.msk.bf16.mxu0 %vm2513_vm0, %v2512_v0 }
 0x2ff   : > { %2358 = vmatprep.subr.bf16.mxu0 %v2512_v0 }
 0x305   : > { %2349 = vmatmul.mubr.msk.bf16.vlgmr.msra.gmra.mrb[44].mxu0 %vm143_vm1, %v1397_v34 }
 0x306   : > { %2360 = vmatprep.mubr.msk.bf16.mxu0 %vm2513_vm0, %v2512_v0 }
 0x373   : > { %v2866_v40 = vpop.f32.mrb[16].mxu0 }
 0x374   : > { %v2266_v53 = vpop.f32.mrb[17].mxu0 }
 0x375   : > { %v771_v54 = vpop.f32.mrb[18].mxu0 }
 0x376   : > { %v2267_v46 = vpop.f32.mrb[19].mxu0 }
 0x377   : > { %v2868_v55 = vpop.f32.mrb[16].mxu1 }
 0x378   : > { %v2272_v56 = vpop.f32.mrb[17].mxu1 }
 0x379   : > { %v817_v57 = vpop.f32.mrb[18].mxu1 }
 0x37a   : > { %v2273_v59 = vpop.f32.mrb[19].mxu1 }
 0x37b   : > { %v2870_v13 = vpop.f32.mrb[20].mxu0 }
 0x37c   : > { %v2278_v60 = vpop.f32.mrb[21].mxu0 }
 0x37d   : > { %v863_v61 = vpop.f32.mrb[22].mxu0 }
 0x37e   : > { %v2279_v62 = vpop.f32.mrb[23].mxu0 }
 0x37f   : > { %v2872_v63 = vpop.f32.mrb[20].mxu1 }
 0x380   : > { %v2284_v14 = vpop.f32.mrb[21].mxu1 }
 0x381   : > { %v909_v19 = vpop.f32.mrb[22].mxu1 }
 0x382   : > { %v2285_v20 = vpop.f32.mrb[23].mxu1 }
 0x383   : > { %v2874_v58 = vpop.f32.mrb[24].mxu0 }
 0x384   : > { %v2290_v21 = vpop.f32.mrb[25].mxu0 }
 0x385   : > { %v955_v22 = vpop.f32.mrb[26].mxu0 }
 0x386   : > { %v2291_v24 = vpop.f32.mrb[27].mxu0 }
 0x387   : > { %v2876_v26 = vpop.f32.mrb[24].mxu1 }
 0x388   : > { %v2296_v27 = vpop.f32.mrb[25].mxu1 }
 0x389   : > { %v1001_v18 = vpop.f32.mrb[26].mxu1 }
 0x38a   : > { %v2297_v29 = vpop.f32.mrb[27].mxu1 }
 0x38f   : > { %v2878_v25 = vpop.f32.mrb[28].mxu1 }
 0x390   : > { %v2308_v30 = vpop.f32.mrb[29].mxu1 }
 0x391   : > { %v1093_v31 = vpop.f32.mrb[30].mxu1 }
 0x392   : > { %v2309_v1 = vpop.f32.mrb[31].mxu1 }
 0x3b1   : > { %v1190_v35 = vpop.f32.mrb[32].mxu1 }
 0x3b2   : > { %v2880_v36 = vmul.f32 0.17677669, %v1190_v35  ;;  %v2320_v2 = vpop.f32.mrb[33].mxu1 }
 0x3b3   : > { %v1193_v37 = vpop.f32.mrb[34].mxu1 }
 0x3b4   : > { %v1507_v38 = vsel %vm541_vm2, %v2880_v36, -inf  ;;  %v2321_v33 = vpop.f32.mrb[35].mxu1 }
 0x3b5   : > { %1508 = vmax.xlane.f32.xlu1 %v1507_v38  ;;  %v2420_v33 = vpack.i.bf16 %v2698_v32, %v2691_v28 }
 0x3b8   : > { %v2884_v23 = vpop.f32.mrb[28].mxu0 }
 0x3b9   : > { %v2302_v4 = vpop.f32.mrb[29].mxu0 }
 0x3ba   : > { %v1047_v5 = vpop.f32.mrb[30].mxu0 }
 0x3bb   : > { %v2303_v7 = vpop.f32.mrb[31].mxu0 }
 0x3bd   : > { %v1290_v11 = vpop.f32.mrb[36].mxu1 }
 0x3be   : > { %v2332_v15 = vpop.f32.mrb[37].mxu1  ;;  %v1499_v54 = vmul.f32 0.17677669, %v1290_v11 }
 0x3bf   : > { %v1293_v12 = vpop.f32.mrb[38].mxu1 }
 0x3c0   : > { %v1140_v16 = vpop.f32.mrb[32].mxu0  ;;  %v2333_v39 = vpop.f32.mrb[39].mxu1  ;;  %v1513_v61 = vsel %vm541_vm2, %v1499_v54, -inf }
 0x3c1   : > { %v1496_v42 = vmul.f32 0.17677669, %v1140_v16  ;;  %v2314_v3 = vpop.f32.mrb[33].mxu0 }
 0x3c2   : > { %v1143_v43 = vpop.f32.mrb[34].mxu0 }
 0x3c3   : > { %v2315_v45 = vpop.f32.mrb[35].mxu0  ;;  %v1504_v6 = vsel %vm541_vm2, %v1496_v42, -inf }
 0x3c4   : > { %1505 = vmax.xlane.f32.xlu0 %v1504_v6 }
 0x3c5   : > { %v1390_v47 = vpop.f32.mrb[40].mxu1 }
 0x3c6   : > { %v2344_v9 = vpop.f32.mrb[41].mxu1  ;;  %v1501_v57 = vmul.f32 0.17677669, %v1390_v47 }
 0x3c7   : > { %v1393_v49 = vpop.f32.mrb[42].mxu1 }
 0x3c8   : > { %v1240_v50 = vpop.f32.mrb[36].mxu0  ;;  %v2345_v48 = vpop.f32.mrb[43].mxu1  ;;  %v1519_v24 = vsel %vm541_vm2, %v1501_v57, -inf }
 0x3c9   : > { %v1498_v51 = vmul.f32 0.17677669, %v1240_v50  ;;  %v2326_v34 = vpop.f32.mrb[37].mxu0 }
 0x3ca   : > { %v1243_v53 = vpop.f32.mrb[38].mxu0 }
 0x3cb   : > { %v2327_v46 = vpop.f32.mrb[39].mxu0  ;;  %v1510_v56 = vsel %vm541_vm2, %v1498_v51, -inf }
 0x3cc   : > { %1511 = vmax.xlane.f32.xlu0 %v1510_v56 }
 0x3cd   : > { %v1490_v59 = vpop.f32.mrb[44].mxu1 }
 0x3ce   : > { %v2356_v60 = vpop.f32.mrb[45].mxu1  ;;  %v1503_v22 = vmul.f32 0.17677669, %v1490_v59 }
 0x3cf   : > { %v1493_v62 = vpop.f32.mrb[46].mxu1 }
 0x3d0   : > { %1514 = vmax.xlane.f32.xlu0 %v1513_v61  ;;  %v1340_v14 = vpop.f32.mrb[40].mxu0  ;;  %v2357_v19 = vpop.f32.mrb[47].mxu1  ;;  %v1525_v30 = vsel %vm541_vm2, %v1503_v22, -inf }
 0x3d1   : > { %v1500_v20 = vmul.f32 0.17677669, %v1340_v14  ;;  %v2338_v21 = vpop.f32.mrb[41].mxu0 }
 0x3d2   : > { %v1343_v27 = vpop.f32.mrb[42].mxu0 }
 0x3d3   : > { %v2339_v18 = vpop.f32.mrb[43].mxu0  ;;  %v1516_v29 = vsel %vm541_vm2, %v1500_v20, -inf }
 0x3d4   : > { %1520 = vmax.xlane.f32.xlu0 %v1519_v24  ;;  %1517 = vmax.xlane.f32.xlu1 %v1516_v29 }
 0x3d8   : > { %1526 = vmax.xlane.f32.xlu0 %v1525_v30  ;;  %v1440_v31 = vpop.f32.mrb[44].mxu0 }
 0x3d9   : > { %v1502_v1 = vmul.f32 0.17677669, %v1440_v31  ;;  %v2350_v35 = vpop.f32.mrb[45].mxu0 }
 0x3da   : > { %v1443_v2 = vpop.f32.mrb[46].mxu0 }
 0x3db   : > { %v2351_v37 = vpop.f32.mrb[47].mxu0  ;;  %v1522_v38 = vsel %vm541_vm2, %v1502_v1, -inf }
 0x3dc   : > { %1523 = vmax.xlane.f32.xlu1 %v1522_v38  ;;  %v2430_v38 = vpack.i.bf16 %v2774_v10, %v2759_v44 }
 0x3ed   : > { %2421 = vrot.lane.b32.xlu1 %v2420_v33, %s2517_s15  ;;  %v2435_v33 = vpack.i.bf16 %v2795_v17, %v2788_v52 }
 0x442   : > { %v1509_v4 = vpop.xlane.xlu1 %1508 }
 0x443   : > { %v1529_v5 = vsub.f32 %v2880_v36, %v1509_v4  ;;  %v2425_v4 = vpack.i.bf16 %v2756_v41, %v2748_v8 }
 0x445   : > { %v1538_v7 = vmul.f32 1.442695, %v1529_v5 }
 0x447   : > { %2472 = vpow2.f32 %v1538_v7 }
 0x451   : > { %v2897_v11 = vpop.eup %2472  ;;  %v1506_v15 = vpop.xlane.xlu0 %1505 }
 0x452   : > { %v1528_v12 = vsub.f32 %v1496_v42, %v1506_v15  ;;  %v1555_v16 = vsel %vm541_vm2, %v2897_v11, 0.0 }
 0x453   : > { %1556 = vadd.xlane.f32.xlu0 %v1555_v16 }
 0x454   : > { %v1536_v39 = vmul.f32 1.442695, %v1528_v12 }
 0x456   : > { %2474 = vpow2.f32 %v1536_v39 }
 0x459   : > { %v1512_v3 = vpop.xlane.xlu0 %1511 }
 0x45a   : > { %v1530_v43 = vsub.f32 %v1498_v51, %v1512_v3 }
 0x45c   : > { %v1540_v28 = vmul.f32 1.442695, %v1530_v43 }
 0x45d   : > { %v1515_v32 = vpop.xlane.xlu0 %1514 }
 0x45e   : > { %2476 = vpow2.f32 %v1540_v28  ;;  %v1531_v45 = vsub.f32 %v1499_v54, %v1515_v32 }
 0x460   : > { %v2901_v6 = vpop.eup %2474  ;;  %v1542_v36 = vmul.f32 1.442695, %v1531_v45 }
 0x461   : > { %v1518_v47 = vpop.xlane.xlu1 %1517  ;;  %v1521_v9 = vpop.xlane.xlu0 %1520  ;;  %v1552_v42 = vsel %vm541_vm2, %v2901_v6, 0.0 }
 0x462   : > { %2478 = vpow2.f32 %v1542_v36  ;;  %v1532_v49 = vsub.f32 %v1500_v20, %v1518_v47  ;;  %v1533_v50 = vsub.f32 %v1501_v57, %v1521_v9  ;;  %1553 = vadd.xlane.f32.xlu1 %v1552_v42 }
 0x464   : > { %v1544_v48 = vmul.f32 1.442695, %v1532_v49  ;;  %v1546_v34 = vmul.f32 1.442695, %v1533_v50 }
 0x465   : > { %v1527_v53 = vpop.xlane.xlu0 %1526 }
 0x466   : > { %2480 = vpow2.f32 %v1544_v48  ;;  %v1535_v54 = vsub.f32 %v1503_v22, %v1527_v53 }
 0x467   : > { %2482 = vpow2.f32 %v1546_v34 }
 0x468   : > { %v2905_v51 = vpop.eup %2476  ;;  %v1550_v61 = vmul.f32 1.442695, %v1535_v54 }
 0x469   : > { %v1524_v46 = vpop.xlane.xlu1 %1523  ;;  %v1558_v56 = vsel %vm541_vm2, %v2905_v51, 0.0 }
 0x46a   : > { %v1534_v59 = vsub.f32 %v1502_v1, %v1524_v46  ;;  %1559 = vadd.xlane.f32.xlu1 %v1558_v56 }
 0x46c   : > { %v2909_v60 = vpop.eup %2478  ;;  %v1548_v62 = vmul.f32 1.442695, %v1534_v59 }
 0x46d   : > { %v1561_v57 = vsel %vm541_vm2, %v2909_v60, 0.0  ;;  %v2422_v14 = vpop.permute.xlu1 %2421 }
 0x46e   : > { %2484 = vpow2.f32 %v1548_v62  ;;  %1562 = vadd.xlane.f32.xlu0 %v1561_v57  ;;  %v2424_v19 = vunpack.i.h.bf16 %v2422_v14  ;;  %v2423_v20 = vunpack.i.l.bf16 %v2422_v14 }
 0x46f   : > { %2486 = vpow2.f32 %v1550_v61 }
 0x470   : > { %v2913_v21 = vpop.eup %2480  ;;  %v1625_v22 = vpack.c.bf16 %v2424_v19, %v2424_v19  ;;  %v1624_v24 = vpack.c.bf16 %v2423_v20, %v2423_v20 }
 0x471   : > { %v2915_v27 = vpop.eup %2482  ;;  %v1564_v18 = vsel %vm541_vm2, %v2913_v21, 0.0 }
 0x472   : > { %1565 = vadd.xlane.f32.xlu1 %v1564_v18  ;;  %v1567_v29 = vsel %vm541_vm2, %v2915_v27, 0.0  ;;  %v1636_v30 = vsel %vm730_vm3, %v1624_v24, 0  ;;  %v1682_v31 = vsel %vm730_vm3, %v1625_v22, 0 }
 0x473   : > { %1568 = vadd.xlane.f32.xlu0 %v1567_v29  ;;  %2359 = vmatpush3.bf16.msra.mxu0 %v1636_v30 }
 0x474   : > { %2365 = vmatpush3.bf16.msra.mxu1 %v1682_v31  ;;  %2370 = vmatprep.subr.bf16.mxu0 %v2512_v0 }
 0x475   : > { %2376 = vmatprep.subr.bf16.mxu1 %v2512_v0 }
 0x478   : > { %v2925_v1 = vpop.eup %2484 }
 0x479   : > { %v1570_v35 = vsel %vm541_vm2, %v2925_v1, 0.0  ;;  %v2929_v2 = vpop.eup %2486 }
 0x47a   : > { %1571 = vadd.xlane.f32.xlu0 %v1570_v35  ;;  %v1573_v37 = vsel %vm541_vm2, %v2929_v2, 0.0 }
 0x47e   : > { %1574 = vadd.xlane.f32.xlu0 %v1573_v37 }
 0x483   : > { %2431 = vrot.lane.b32.xlu1 %v2430_v38, %s2517_s15 }
 0x487   : > { %2436 = vrot.lane.b32.xlu1 %v2435_v33, %s2517_s15 }
 0x494   : > { %2426 = vrot.lane.b32.xlu0 %v2425_v4, %s2517_s15 }
 0x4e0   : > { %v1557_v5 = vpop.xlane.xlu0 %1556 }
 0x4e1   : > { %2488 = vrcp.f32 %v1557_v5 }
 0x4eb   : > { %v2489_v7 = vpop.eup %2488 }
 0x4ec   : > { %v1585_v15 = vmul.f32 %v2489_v7, %v2897_v11 }
 0x4ee   : > { %v1593_v12 = vpack.c.bf16 %v1585_v15, %v1585_v15 }
 0x4ef   : > { %v1554_v16 = vpop.xlane.xlu1 %1553 }
 0x4f0   : > { %2490 = vrcp.f32 %v1554_v16  ;;  %2367 = vmatmul.mubr.msk.bf16.vlgmr.msra.gmra.mrb[48].mxu1 %vm726_vm4, %v1593_v12 }
 0x4f1   : > { %2378 = vmatprep.mubr.msk.bf16.mxu1 %vm2513_vm0, %v2512_v0 }
 0x4f7   : > { %v1560_v41 = vpop.xlane.xlu1 %1559 }
 0x4f8   : > { %2492 = vrcp.f32 %v1560_v41 }
 0x4fa   : > { %v2491_v44 = vpop.eup %2490 }
 0x4fb   : > { %v1584_v10 = vmul.f32 %v2491_v44, %v2901_v6  ;;  %v1563_v52 = vpop.xlane.xlu0 %1562 }
 0x4fc   : > { %2494 = vrcp.f32 %v1563_v52 }
 0x4fd   : > { %v1592_v8 = vpack.c.bf16 %v1584_v10, %v1584_v10 }
 0x4ff   : > { %2361 = vmatmul.mubr.msk.bf16.vlgmr.msra.gmra.mrb[48].mxu0 %vm726_vm4, %v1592_v8  ;;  %v1566_v11 = vpop.xlane.xlu1 %1565 }
 0x500   : > { %2372 = vmatprep.mubr.msk.bf16.mxu0 %vm2513_vm0, %v2512_v0  ;;  %v1569_v17 = vpop.xlane.xlu0 %1568  ;;  %2496 = vrcp.f32 %v1566_v11 }
 0x501   : > { %2498 = vrcp.f32 %v1569_v17 }
 0x502   : > { %v2493_v32 = vpop.eup %2492 }
 0x503   : > { %v2432_v3 = vpop.permute.xlu1 %2431  ;;  %v1586_v42 = vmul.f32 %v2493_v32, %v2905_v51 }
 0x504   : > { %v2434_v28 = vunpack.i.h.bf16 %v2432_v3  ;;  %v2433_v45 = vunpack.i.l.bf16 %v2432_v3 }
 0x505   : > { %v1594_v59 = vpack.c.bf16 %v1586_v42, %v1586_v42 }
 0x506   : > { %v2495_v6 = vpop.eup %2494  ;;  %v1629_v49 = vpack.c.bf16 %v2434_v28, %v2434_v28  ;;  %v1628_v53 = vpack.c.bf16 %v2433_v45, %v2433_v45 }
 0x507   : > { %v1572_v39 = vpop.xlane.xlu0 %1571  ;;  %v1587_v50 = vmul.f32 %v2495_v6, %v2909_v60  ;;  %v2437_v54 = vpop.permute.xlu1 %2436 }
 0x508   : > { %2500 = vrcp.f32 %v1572_v39  ;;  %v2439_v61 = vunpack.i.h.bf16 %v2437_v54  ;;  %v1820_v51 = vsel %vm730_vm3, %v1628_v53, 0  ;;  %v1866_v60 = vsel %vm730_vm3, %v1629_v49, 0 }
 0x509   : > { %v1595_v57 = vpack.c.bf16 %v1587_v50, %v1587_v50  ;;  %v2438_v14 = vunpack.i.l.bf16 %v2437_v54 }
 0x50a   : > { %v2497_v62 = vpop.eup %2496  ;;  %v1631_v20 = vpack.c.bf16 %v2439_v61, %v2439_v61 }
 0x50b   : > { %v1575_v43 = vpop.xlane.xlu0 %1574  ;;  %v2499_v19 = vpop.eup %2498  ;;  %v1588_v22 = vmul.f32 %v2497_v62, %v2913_v21  ;;  %v1630_v18 = vpack.c.bf16 %v2438_v14, %v2438_v14 }
 0x50c   : > { %2502 = vrcp.f32 %v1575_v43  ;;  %v1589_v24 = vmul.f32 %v2499_v19, %v2915_v27  ;;  %v1958_v21 = vsel %vm730_vm3, %v1631_v20, 0 }
 0x50d   : > { %v1596_v30 = vpack.c.bf16 %v1588_v22, %v1588_v22  ;;  %v1912_v35 = vsel %vm730_vm3, %v1630_v18, 0 }
 0x50e   : > { %v1597_v31 = vpack.c.bf16 %v1589_v24, %v1589_v24 }
 0x50f   : > { %v2427_v36 = vpop.permute.xlu0 %2426 }
 0x510   : > { %v2429_v47 = vunpack.i.h.bf16 %v2427_v36  ;;  %v2428_v9 = vunpack.i.l.bf16 %v2427_v36 }
 0x512   : > { %v1627_v48 = vpack.c.bf16 %v2429_v47, %v2429_v47  ;;  %v1626_v34 = vpack.c.bf16 %v2428_v9, %v2428_v9  ;;  %v2501_v29 = vpop.eup %2500 }
 0x513   : > { %v1590_v27 = vmul.f32 %v2501_v29, %v2925_v1 }
 0x514   : > { %v1728_v46 = vsel %vm730_vm3, %v1626_v34, 0  ;;  %v1774_v56 = vsel %vm730_vm3, %v1627_v48, 0 }
 0x515   : > { %2371 = vmatpush3.bf16.msra.mxu0 %v1728_v46  ;;  %2377 = vmatpush3.bf16.msra.mxu1 %v1774_v56  ;;  %v1598_v33 = vpack.c.bf16 %v1590_v27, %v1590_v27 }
 0x516   : > { %2382 = vmatprep.subr.bf16.mxu0 %v2512_v0  ;;  %2388 = vmatprep.subr.bf16.mxu1 %v2512_v0  ;;  %v2503_v37 = vpop.eup %2502 }
 0x517   : > { %v1591_v38 = vmul.f32 %v2503_v37, %v2929_v2 }
 0x518   : > { %2373 = vmatmul.mubr.msk.bf16.vlgmr.msra.gmra.mrb[52].mxu0 %vm726_vm4, %v1594_v59  ;;  %2379 = vmatmul.mubr.msk.bf16.vlgmr.msra.gmra.mrb[52].mxu1 %vm726_vm4, %v1595_v57 }
 0x519   : > { %2383 = vmatpush3.bf16.msra.mxu0 %v1820_v51  ;;  %2389 = vmatpush3.bf16.msra.mxu1 %v1866_v60  ;;  %v1599_v4 = vpack.c.bf16 %v1591_v38, %v1591_v38 }
 0x51a   : > { %2384 = vmatprep.mubr.msk.bf16.mxu0 %vm2513_vm0, %v2512_v0  ;;  %2390 = vmatprep.mubr.msk.bf16.mxu1 %vm2513_vm0, %v2512_v0 }
 0x51b   : > { %2394 = vmatprep.subr.bf16.mxu0 %v2512_v0  ;;  %2400 = vmatprep.subr.bf16.mxu1 %v2512_v0 }
 0x520   : > { %2385 = vmatmul.mubr.msk.bf16.vlgmr.msra.gmra.mrb[56].mxu0 %vm726_vm4, %v1596_v30  ;;  %2391 = vmatmul.mubr.msk.bf16.vlgmr.msra.gmra.mrb[56].mxu1 %vm726_vm4, %v1597_v31 }
 0x521   : > { %2395 = vmatpush3.bf16.msra.mxu0 %v1912_v35  ;;  %2401 = vmatpush3.bf16.msra.mxu1 %v1958_v21 }
 0x522   : > { %2396 = vmatprep.mubr.msk.bf16.mxu0 %vm2513_vm0, %v2512_v0  ;;  %2402 = vmatprep.mubr.msk.bf16.mxu1 %vm2513_vm0, %v2512_v0 }
 0x528   : > { %2397 = vmatmul.mubr.msk.bf16.vlgmr.msra.gmra.mrb[60].mxu0 %vm726_vm4, %v1598_v33  ;;  %2403 = vmatmul.mubr.msk.bf16.vlgmr.msra.gmra.mrb[60].mxu1 %vm726_vm4, %v1599_v4 }
 0x5c3   : > { %v1718_v5 = vpop.f32.mrb[48].mxu1 }
 0x5c4   : > { %v2368_v7 = vpop.f32.mrb[49].mxu1 }
 0x5c5   : > { %v1721_v15 = vpop.f32.mrb[50].mxu1 }
 0x5c6   : > { %v2369_v12 = vpop.f32.mrb[51].mxu1 }
 0x5d2   : > { %v1672_v16 = vpop.f32.mrb[48].mxu0 }
 0x5d3   : > { %v2362_v1 = vpop.f32.mrb[49].mxu0  ;;  %2008 = vrot.lane.b32.xlu1 %v1672_v16, %s2516_s14 }
 0x5d4   : > { %v1675_v2 = vpop.f32.mrb[50].mxu0 }
 0x5d5   : > { %v2363_v44 = vpop.f32.mrb[51].mxu0 }
 0x5d7   : > { %2010 = vrot.lane.b32.xlu1 %v1718_v5, %s2516_s14 }
 0x5eb   : > { %v1764_v10 = vpop.f32.mrb[52].mxu0  ;;  %v1810_v0 = vpop.f32.mrb[52].mxu1 }
 0x5ec   : > { %2014 = vrot.lane.b32.xlu1 %v1810_v0, %s2516_s14  ;;  %v2380_v52 = vpop.f32.mrb[53].mxu1  ;;  %2012 = vrot.lane.b32.xlu0 %v1764_v10, %s2516_s14  ;;  %v2374_v8 = vpop.f32.mrb[53].mxu0 }
 0x5ed   : > { %v1767_v41 = vpop.f32.mrb[54].mxu0  ;;  %v1813_v17 = vpop.f32.mrb[54].mxu1 }
 0x5ee   : > { %v2375_v11 = vpop.f32.mrb[55].mxu0  ;;  %v2381_v39 = vpop.f32.mrb[55].mxu1 }
 0x5f3   : > { %v1856_v3 = vpop.f32.mrb[56].mxu0  ;;  %v1902_v43 = vpop.f32.mrb[56].mxu1 }
 0x5f4   : > { %2018 = vrot.lane.b32.xlu1 %v1902_v43, %s2516_s14  ;;  %v2392_v28 = vpop.f32.mrb[57].mxu1  ;;  %2016 = vrot.lane.b32.xlu0 %v1856_v3, %s2516_s14  ;;  %v2386_v32 = vpop.f32.mrb[57].mxu0 }
 0x5f5   : > { %v1859_v45 = vpop.f32.mrb[58].mxu0  ;;  %v1905_v6 = vpop.f32.mrb[58].mxu1 }
 0x5f6   : > { %v2387_v36 = vpop.f32.mrb[59].mxu0  ;;  %v2393_v47 = vpop.f32.mrb[59].mxu1 }
 0x5fb   : > { %v1948_v9 = vpop.f32.mrb[60].mxu0  ;;  %v1994_v42 = vpop.f32.mrb[60].mxu1 }
 0x5fc   : > { %2022 = vrot.lane.b32.xlu1 %v1994_v42, %s2516_s14  ;;  %v2404_v49 = vpop.f32.mrb[61].mxu1  ;;  %2020 = vrot.lane.b32.xlu0 %v1948_v9, %s2516_s14  ;;  %v2398_v50 = vpop.f32.mrb[61].mxu0 }
 0x5fd   : > { %v1951_v48 = vpop.f32.mrb[62].mxu0  ;;  %v1997_v34 = vpop.f32.mrb[62].mxu1 }
 0x5fe   : > { %v2399_v53 = vpop.f32.mrb[63].mxu0  ;;  %v2405_v54 = vpop.f32.mrb[63].mxu1 }
 0x645   : > { %v2009_v46 = vpop.permute.xlu1 %2008 }
 0x646   : > { %v2032_v56 = vsel %vm143_vm1, %v2866_v40, %v2009_v46 }
 0x647   : > { %2041 = vst.msk [vmem:[%s121_s19] sm:$0x3] %vm2040_vm5, %v2032_v56 }
 0x649   : > { %v2011_v59 = vpop.permute.xlu1 %2010 }
 0x64a   : > { %v2033_v61 = vsel %vm143_vm1, %v2868_v55, %v2011_v59 }
 0x64b   : > { %2042 = vst.msk [vmem:[%s121_s19 + $0x2] sm:$0x3] %vm2040_vm5, %v2033_v61 }
 0x65e   : > { %v2015_v62 = vpop.permute.xlu1 %2014  ;;  %v2013_v57 = vpop.permute.xlu0 %2012 }
 0x65f   : > { %v2035_v51 = vsel %vm143_vm1, %v2872_v63, %v2015_v62  ;;  %v2034_v60 = vsel %vm143_vm1, %v2870_v13, %v2013_v57 }
 0x660   : > { %2044 = vst.msk [vmem:[%s121_s19 + $0x6] sm:$0x3] %vm2040_vm5, %v2035_v51  ;;  %2043 = vst.msk [vmem:[%s121_s19 + $0x4] sm:$0x3] %vm2040_vm5, %v2034_v60 }
 0x666   : > { %v2019_v40 = vpop.permute.xlu1 %2018  ;;  %v2017_v14 = vpop.permute.xlu0 %2016 }
 0x667   : > { %v2037_v19 = vsel %vm143_vm1, %v2876_v26, %v2019_v40  ;;  %v2036_v55 = vsel %vm143_vm1, %v2874_v58, %v2017_v14 }
 0x668   : > { %2046 = vst.msk [vmem:[%s121_s19 + $0xa] sm:$0x3] %vm2040_vm5, %v2037_v19  ;;  %2045 = vst.msk [vmem:[%s121_s19 + $0x8] sm:$0x3] %vm2040_vm5, %v2036_v55 }
 0x66e   : > { %v2023_v63 = vpop.permute.xlu1 %2022  ;;  %v2021_v20 = vpop.permute.xlu0 %2020 }
 0x66f   : > { %v2039_v13 = vsel %vm143_vm1, %v2878_v25, %v2023_v63  ;;  %v2038_v22 = vsel %vm143_vm1, %v2884_v23, %v2021_v20 }
 0x670   : > { %2048 = vst.msk [vmem:[%s121_s19 + $0xe] sm:$0x3] %vm2040_vm5, %v2039_v13  ;;  %2047 = vst.msk [vmem:[%s121_s19 + $0xc] sm:$0x3] %vm2040_vm5, %v2038_v22 }
 0x671 PF: > { %s11_s6 = sadd.s32 1, %s2510_s6  }
 0x672   : > { %p8_p4 = scmp.ge.s32.totalorder %s11_s6, 6  }
 0x674   :  { %10 = sbr.rel (!%p8_p4) target bundleno = 1 (0x1), region = 54 }

// kernel: factorised_transformer_layer.10
= control target key start
LH: loop header
LB: loop body
LE: loop exit
PB: predicated region body
PF: predicated region fallthrough
CT: control target
= control target key end

     0   :  { %s578_s18 = smov 0   ;;  %s724_s0 = inlined_call_operand.vmem [shape: f32[64,128], index: 0, kind: input, shape index: {}]   ;;  %s725_s1 = inlined_call_operand.vmem [shape: f32[1,128], index: 1, kind: input, shape index: {}]   ;;  %s726_s2 = inlined_call_operand.vmem [shape: f32[1,128], index: 2, kind: input, shape index: {}]   ;;  %s727_s3 = inlined_call_operand.vmem [shape: f32[128,256], index: 3, kind: input, shape index: {}]   ;;  %s728_s4 = inlined_call_operand.vmem [shape: f32[1,256], index: 4, kind: input, shape index: {}]   ;;  %s729_s5 = inlined_call_operand.vmem [shape: f32[64,256], index: 5, kind: output, shape index: {}]  }
   0x1 LB: > { %s491_s19 = sadd.s32 4294967295, %s545_s18   ;;  %p495_p0 = scmp.ge.s32.totalorder %s545_s18, 1  ;;  %s545_s18 = sphi %s578_s18, %s15_s18  }
   0x2   : > { %p188_p1 = scmp.lt.s32.totalorder %s545_s18, 3 }
   0x4   : > { %p189_p2 = pnand %p495_p0, %p188_p1 }
   0x5   : > { %s496_s20 = sshll.u32 (!%p189_p2), %s491_s19, 2  ;;  %v305_v4 = vld [vmem:[%s727_s3 + $0x8] sm:$0xff] (!%p189_p2)  ;;  %v307_v5 = vld [vmem:[%s727_s3 + $0x18] sm:$0xff] (!%p189_p2)  ;;  %v304_v6 = vld [vmem:[%s727_s3] sm:$0xff] (!%p189_p2)  ;;  %v547_v61 = vmov (!%p189_p2), 0  }
   0x6   : > { %192 = sbr.rel (%p189_p2) target bundleno = 558 (0x22e), region = 40  ;;  %p218_p3 = scmp.lt.s32.totalorder (!%p189_p2), %s496_s20, 7  ;;  %v337_v7 = vpack.c.bf16 (!%p189_p2), %v307_v5, %v305_v4  ;;  %v306_v8 = vld [vmem:[%s727_s3 + $0x10] sm:$0xff] (!%p189_p2)  ;;  %v309_v9 = vld [vmem:[%s727_s3 + $0x28] sm:$0xff] (!%p189_p2)  ;;  %v311_v10 = vld [vmem:[%s727_s3 + $0x38] sm:$0xff] (!%p189_p2)  ;;  %396 = vmatprep.mubr.bf16.mxu0 (!%p189_p2), %v547_v61  ;;  %406 = vmatprep.mubr.bf16.mxu1 (!%p189_p2), %v547_v61 }
   0x7   : > { %v336_v11 = vpack.c.bf16 (!%p189_p2), %v306_v8, %v304_v6  ;;  %v339_v12 = vpack.c.bf16 (!%p189_p2), %v311_v10, %v309_v9  ;;  %v308_v29 = vld [vmem:[%s727_s3 + $0x20] sm:$0xff] (!%p189_p2)  ;;  %v310_v30 = vld [vmem:[%s727_s3 + $0x30] sm:$0xff] (!%p189_p2)  ;;  %v313_v32 = vld [vmem:[%s727_s3 + $0x48] sm:$0xff] (!%p189_p2) }
   0x8   : > { %364 = vmatprep.subr.bf16.mxu0 (!%p189_p2), %v337_v7  ;;  %506 = vmatprep.subr.bf16.mxu1 (!%p189_p2), %v337_v7  ;;  %v338_v31 = vpack.c.bf16 (!%p189_p2), %v310_v30, %v308_v29  ;;  %v315_v33 = vld [vmem:[%s727_s3 + $0x58] sm:$0xff] (!%p189_p2)  ;;  %v312_v35 = vld [vmem:[%s727_s3 + $0x40] sm:$0xff] (!%p189_p2)  ;;  %v314_v36 = vld [vmem:[%s727_s3 + $0x50] sm:$0xff] (!%p189_p2) }
   0x9   : > { %365 = vmatpush1.bf16.msra.mxu0 (!%p189_p2), %v336_v11  ;;  %514 = vmatpush1.bf16.msra.mxu1 (!%p189_p2), %v336_v11  ;;  %v341_v34 = vpack.c.bf16 (!%p189_p2), %v315_v33, %v313_v32  ;;  %v340_v37 = vpack.c.bf16 (!%p189_p2), %v314_v36, %v312_v35  ;;  %v317_v38 = vld [vmem:[%s727_s3 + $0x68] sm:$0xff] (!%p189_p2)  ;;  %v319_v39 = vld [vmem:[%s727_s3 + $0x78] sm:$0xff] (!%p189_p2)  ;;  %v316_v41 = vld [vmem:[%s727_s3 + $0x60] sm:$0xff] (!%p189_p2) }
   0xa   : > { %366 = vmatprep.subr.bf16.mxu0 (!%p189_p2), %v339_v12  ;;  %507 = vmatprep.subr.bf16.mxu1 (!%p189_p2), %v339_v12  ;;  %v343_v40 = vpack.c.bf16 (!%p189_p2), %v319_v39, %v317_v38  ;;  %v318_v42 = vld [vmem:[%s727_s3 + $0x70] sm:$0xff] (!%p189_p2)  ;;  %v321_v44 = vld [vmem:[%s727_s3 + $0x88] sm:$0xff] (!%p189_p2)  ;;  %v323_v45 = vld [vmem:[%s727_s3 + $0x98] sm:$0xff] (!%p189_p2)  ;;  %v354_v39 = vlaneseq (!%p189_p2) }
   0xb   : > { %v342_v43 = vpack.c.bf16 (!%p189_p2), %v318_v42, %v316_v41  ;;  %v345_v46 = vpack.c.bf16 (!%p189_p2), %v323_v45, %v321_v44  ;;  %v320_v47 = vld [vmem:[%s727_s3 + $0x80] sm:$0xff] (!%p189_p2)  ;;  %v322_v48 = vld [vmem:[%s727_s3 + $0x90] sm:$0xff] (!%p189_p2)  ;;  %v325_v50 = vld [vmem:[%s727_s3 + $0xa8] sm:$0xff] (!%p189_p2) }
   0xc   : > { %v344_v49 = vpack.c.bf16 (!%p189_p2), %v322_v48, %v320_v47  ;;  %v327_v51 = vld [vmem:[%s727_s3 + $0xb8] sm:$0xff] (!%p189_p2)  ;;  %v324_v52 = vld [vmem:[%s727_s3 + $0xa0] sm:$0xff] (!%p189_p2)  ;;  %v326_v54 = vld [vmem:[%s727_s3 + $0xb0] sm:$0xff] (!%p189_p2) }
   0xd   : > { %s731_s20 = smov (!%p218_p3, %s496_s20), 7  ;;  %367 = vmatpush1.bf16.msra.mxu0 %v338_v31  ;;  %515 = vmatpush1.bf16.msra.mxu1 %v338_v31  ;;  %v347_v53 = vpack.c.bf16 %v327_v51, %v325_v50  ;;  %v329_v55 = vld [vmem:[%s727_s3 + $0xc8] sm:$0xff]  ;;  %v331_v56 = vld [vmem:[%s727_s3 + $0xd8] sm:$0xff]  ;;  %v346_v57 = vpack.c.bf16 %v326_v54, %v324_v52  ;;  %v328_v59 = vld [vmem:[%s727_s3 + $0xc0] sm:$0xff] }
   0xe   : > { %s497_s21 = sshll.u32 %s731_s20, 3  ;;  %368 = vmatprep.subr.bf16.mxu0 %v341_v34  ;;  %508 = vmatprep.subr.bf16.mxu1 %v341_v34  ;;  %v349_v58 = vpack.c.bf16 %v331_v56, %v329_v55  ;;  %v330_v60 = vld [vmem:[%s727_s3 + $0xd0] sm:$0xff]  ;;  %v333_v62 = vld [vmem:[%s727_s3 + $0xe8] sm:$0xff]  ;;  %v335_v63 = vld [vmem:[%s727_s3 + $0xf8] sm:$0xff]  ;;  %s505_s26 = sshll.u32 %s731_s20, 4 }
   0xf   : > { %s221_s24 = scalar_lea.vmem %s724_s0, %s497_s21  ;;  %s228_s29 = scalar_lea.vmem %s729_s5, %s505_s26 }
  0x10   : > { %v231_v0 = vld [vmem:[%s221_s24] sm:$0xff]  ;;  %v233_v1 = vld [vmem:[%s221_s24 + $0x10] sm:$0xff]  ;;  %v232_v2 = vld [vmem:[%s221_s24 + $0x8] sm:$0xff] }
  0x11   : > { %235 = vadd.xlane.f32.xlu0 %v231_v0  ;;  %239 = vadd.xlane.f32.xlu1 %v233_v1  ;;  %v234_v3 = vld [vmem:[%s221_s24 + $0x18] sm:$0xff] }
  0x12   : > { %369 = vmatpush1.bf16.msra.mxu0 %v340_v37  ;;  %516 = vmatpush1.bf16.msra.mxu1 %v340_v37 }
  0x13   : > { %370 = vmatprep.subr.bf16.mxu0 %v343_v40  ;;  %509 = vmatprep.subr.bf16.mxu1 %v343_v40  ;;  %v355_v40 = vshrl.u32 %v354_v39, 7 }
  0x15   : > { %237 = vadd.xlane.f32.xlu0 %v232_v2  ;;  %241 = vadd.xlane.f32.xlu1 %v234_v3  ;;  %v356_v41 = vsub.s32 0, %v355_v40  ;;  %v360_v42 = vsub.s32 1, %v355_v40 }
  0x16   : > { %371 = vmatpush1.bf16.msra.mxu0 %v342_v43  ;;  %517 = vmatpush1.bf16.msra.mxu1 %v342_v43 }
  0x17   : > { %372 = vmatprep.subr.bf16.mxu0 %v345_v46  ;;  %510 = vmatprep.subr.bf16.mxu1 %v345_v46 }
  0x1a   : > { %373 = vmatpush1.bf16.msra.mxu0 %v344_v49  ;;  %518 = vmatpush1.bf16.msra.mxu1 %v344_v49 }
  0x1b   : > { %374 = vmatprep.subr.bf16.mxu0 %v347_v53  ;;  %511 = vmatprep.subr.bf16.mxu1 %v347_v53 }
  0x1e   : > { %375 = vmatpush1.bf16.msra.mxu0 %v346_v57  ;;  %519 = vmatpush1.bf16.msra.mxu1 %v346_v57 }
  0x1f   : > { %376 = vmatprep.subr.bf16.mxu0 %v349_v58  ;;  %512 = vmatprep.subr.bf16.mxu1 %v349_v58 }
  0x9e   : > { %v236_v13 = vpop.xlane.xlu0 %235  ;;  %v240_v14 = vpop.xlane.xlu1 %239 }
  0x9f   : > { %v244_v15 = vmul.f32 0.0078125, %v236_v13  ;;  %v246_v16 = vmul.f32 0.0078125, %v240_v14 }
  0xa1   : > { %v610_v17 = vsub.f32 %v231_v0, %v244_v15  ;;  %v612_v18 = vsub.f32 %v233_v1, %v246_v16  ;;  %v348_v0 = vpack.c.bf16 %v330_v60, %v328_v59  ;;  %v351_v1 = vpack.c.bf16 %v335_v63, %v333_v62 }
  0xa2   : > { %v238_v19 = vpop.xlane.xlu0 %237  ;;  %v242_v20 = vpop.xlane.xlu1 %241 }
  0xa3   : > { %v245_v21 = vmul.f32 0.0078125, %v238_v19  ;;  %v252_v22 = vmul.f32 %v610_v17, %v610_v17  ;;  %v247_v23 = vmul.f32 0.0078125, %v242_v20  ;;  %v254_v26 = vmul.f32 %v612_v18, %v612_v18  ;;  %377 = vmatpush1.bf16.msra.mxu0 %v348_v0  ;;  %520 = vmatpush1.bf16.msra.mxu1 %v348_v0 }
  0xa4   : > { %378 = vmatprep.subr.bf16.mxu0 %v351_v1  ;;  %513 = vmatprep.subr.bf16.mxu1 %v351_v1 }
  0xa5   : > { %v616_v24 = vsub.f32 %v232_v2, %v245_v21  ;;  %256 = vadd.xlane.f32.xlu0 %v252_v22  ;;  %v618_v25 = vsub.f32 %v234_v3, %v247_v23  ;;  %v332_v2 = vld [vmem:[%s727_s3 + $0xe0] sm:$0xff]  ;;  %v334_v3 = vld [vmem:[%s727_s3 + $0xf0] sm:$0xff] }
  0xa6   : > { %v350_v4 = vpack.c.bf16 %v334_v3, %v332_v2  ;;  %v501_v21 = vld [vmem:[%s725_s1] ss:$0 sm:$0xff] }
  0xa7   : > { %v253_v27 = vmul.f32 %v616_v24, %v616_v24  ;;  %v255_v28 = vmul.f32 %v618_v25, %v618_v25 }
  0xa8   : > { %379 = vmatpush1.bf16.msra.mxu0 %v350_v4  ;;  %521 = vmatpush1.bf16.msra.mxu1 %v350_v4 }
  0xa9   : > { %260 = vadd.xlane.f32.xlu0 %v254_v26  ;;  %258 = vadd.xlane.f32.xlu1 %v253_v27 }
  0xad   : > { %262 = vadd.xlane.f32.xlu1 %v255_v28  ;;  %v502_v28 = vld [vmem:[%s726_s2] ss:$0 sm:$0xff] }
 0x132   : > { %v257_v5 = vpop.xlane.xlu0 %256 }
 0x133   : > { %v264_v6 = vmul.f32 0.0078125, %v257_v5 }
 0x135   : > { %v268_v7 = vadd.f32 1e-05, %v264_v6 }
 0x136   : > { %v259_v8 = vpop.xlane.xlu1 %258  ;;  %v261_v9 = vpop.xlane.xlu0 %260 }
 0x137   : > { %531 = vrsqrt.f32 %v268_v7  ;;  %v265_v10 = vmul.f32 0.0078125, %v259_v8  ;;  %v266_v11 = vmul.f32 0.0078125, %v261_v9 }
 0x139   : > { %v269_v12 = vadd.f32 1e-05, %v265_v10  ;;  %v270_v13 = vadd.f32 1e-05, %v266_v11 }
 0x13a   : > { %v263_v14 = vpop.xlane.xlu1 %262 }
 0x13b   : > { %533 = vrsqrt.f32 %v269_v12  ;;  %v267_v15 = vmul.f32 0.0078125, %v263_v14 }
 0x13c   : > { %535 = vrsqrt.f32 %v270_v13 }
 0x13d   : > { %v271_v16 = vadd.f32 1e-05, %v267_v15 }
 0x13f   : > { %537 = vrsqrt.f32 %v271_v16 }
 0x141   : > { %v532_v19 = vpop.eup %531 }
 0x142   : > { %v276_v20 = vmul.f32 %v532_v19, %v610_v17 }
 0x144   : > { %v287_v27 = vmul.f32 %v501_v21, %v276_v20 }
 0x145   : > { %v534_v22 = vpop.eup %533 }
 0x146   : > { %v536_v23 = vpop.eup %535  ;;  %v277_v26 = vmul.f32 %v534_v22, %v616_v24  ;;  %v298_v32 = vadd.f32 %v502_v28, %v287_v27 }
 0x147   : > { %v278_v29 = vmul.f32 %v536_v23, %v612_v18  ;;  %v352_v18 = vld [vmem:[%s728_s4] sm:$0x3] }
 0x148   : > { %v288_v30 = vmul.f32 %v501_v21, %v277_v26  ;;  %v357_v43 = vrot.slane %v352_v18, %v356_v41  ;;  %v361_v44 = vrot.slane %v352_v18, %v360_v42 }
 0x149   : > { %v538_v31 = vpop.eup %537  ;;  %v289_v34 = vmul.f32 %v501_v21, %v278_v29 }
 0x14a   : > { %v299_v33 = vadd.f32 %v502_v28, %v288_v30  ;;  %v279_v17 = vmul.f32 %v538_v31, %v618_v25 }
 0x14b   : > { %v300_v37 = vadd.f32 %v502_v28, %v289_v34 }
 0x14c   : > { %v302_v35 = vpack.c.bf16 %v299_v33, %v298_v32  ;;  %v290_v36 = vmul.f32 %v501_v21, %v279_v17 }
 0x14e   : > { %397 = vmatmul.mubr.bf16.vlgmr.msra.gmra.mrb[0].mxu0 %v302_v35  ;;  %v301_v24 = vadd.f32 %v502_v28, %v290_v36 }
 0x150   : > { %v303_v38 = vpack.c.bf16 %v301_v24, %v300_v37 }
 0x152   : > { %407 = vmatmul.mubr.bf16.vlgmr.msra.gmra.mrb[0].mxu1 %v303_v38 }
 0x221   : > { %v398_v25 = vpop.f32.mrb[0].mxu0 }
 0x222   : > { %v399_v45 = vadd.f32 %v398_v25, %v357_v43  ;;  %v400_v46 = vpop.f32.mrb[1].mxu0 }
 0x223   : > { %v401_v47 = vadd.f32 %v400_v46, %v361_v44  ;;  %v402_v48 = vpop.f32.mrb[2].mxu0 }
 0x224   : > { %v417_v49 = vmax.f32 %v399_v45, 0.0  ;;  %v403_v50 = vadd.f32 %v402_v48, %v357_v43  ;;  %v404_v51 = vpop.f32.mrb[3].mxu0 }
 0x225   : > { %v418_v52 = vmax.f32 %v401_v47, 0.0  ;;  %v405_v53 = vadd.f32 %v404_v51, %v361_v44  ;;  %v408_v54 = vpop.f32.mrb[0].mxu1 }
 0x226   : > { %425 = vst [vmem:[%s228_s29] sm:$0xff] %v417_v49  ;;  %v419_v55 = vmax.f32 %v403_v50, 0.0  ;;  %v409_v56 = vadd.f32 %v408_v54, %v357_v43  ;;  %v410_v57 = vpop.f32.mrb[1].mxu1 }
 0x227   : > { %426 = vst [vmem:[%s228_s29 + $0x8] sm:$0xff] %v418_v52  ;;  %v420_v58 = vmax.f32 %v405_v53, 0.0  ;;  %v411_v59 = vadd.f32 %v410_v57, %v361_v44  ;;  %v412_v60 = vpop.f32.mrb[2].mxu1 }
 0x228   : > { %427 = vst [vmem:[%s228_s29 + $0x10] sm:$0xff] %v419_v55  ;;  %v421_v61 = vmax.f32 %v409_v56, 0.0  ;;  %v413_v62 = vadd.f32 %v412_v60, %v357_v43  ;;  %v414_v63 = vpop.f32.mrb[3].mxu1 }
 0x229   : > { %428 = vst [vmem:[%s228_s29 + $0x18] sm:$0xff] %v420_v58  ;;  %v422_v0 = vmax.f32 %v411_v59, 0.0  ;;  %v415_v1 = vadd.f32 %v414_v63, %v361_v44 }
 0x22a   : > { %429 = vst [vmem:[%s228_s29 + $0x20] sm:$0xff] %v421_v61  ;;  %v423_v2 = vmax.f32 %v413_v62, 0.0 }
 0x22b   : > { %430 = vst [vmem:[%s228_s29 + $0x28] sm:$0xff] %v422_v0  ;;  %v424_v3 = vmax.f32 %v415_v1, 0.0 }
 0x22c   : > { %431 = vst [vmem:[%s228_s29 + $0x30] sm:$0xff] %v423_v2 }
 0x22d   : > { %432 = vst [vmem:[%s228_s29 + $0x38] sm:$0xff] %v424_v3 }
 0x22e PF: > { %s15_s18 = sadd.s32 1, %s545_s18  }
 0x22f   : > { %p12_p4 = scmp.ge.s32.totalorder %s15_s18, 4  }
 0x231   :  { %14 = sbr.rel (!%p12_p4) target bundleno = 1 (0x1), region = 70 }

// kernel: factorised_transformer_layer.11
= control target key start
LH: loop header
LB: loop body
LE: loop exit
PB: predicated region body
PF: predicated region fallthrough
CT: control target
= control target key end

     0   :  { %9 = vsyncpa [#allocation3], 0  ;;  %s858_s0 = inlined_call_operand.vmem [shape: f32[64,256], index: 0, kind: input, shape index: {}]   ;;  %s859_s1 = inlined_call_operand.vmem [shape: f32[256,128], index: 1, kind: input, shape index: {}]   ;;  %s860_s2 = inlined_call_operand.vmem [shape: f32[1,128], index: 2, kind: input, shape index: {}]   ;;  %s861_s3 = inlined_call_operand.vmem [shape: f32[64,128], index: 3, kind: input, shape index: {}]   ;;  %s862_s4 = inlined_call_operand.hbm [shape: f32[64,128], index: 4, kind: output, shape index: {}]  }
   0x1   :  { %11 = vsyncpa [#allocation3 + $0x1], 0  ;;  %s636_s15 = smov 0   ;;  %s638_s16 = smov 0  }
   0x2   :  { %s640_s17 = smov 0   ;;  %s642_s18 = smov 0  }
   0x3 LB: > { %s657_s19 = sadd.s32 4294967295, %s606_s18   ;;  %s441_s20 = sadd.s32 4294967294, %s606_s18   ;;  %s606_s18 = sphi %s642_s18, %s868_s18   ;;  %s602_s17 = sphi %s640_s17, %s867_s17   ;;  %s598_s16 = sphi %s638_s16, %s866_s16   ;;  %s594_s15 = sphi %s636_s15, %s865_s15  }
   0x4   : > { %s661_s21 = sadd.s32 1, %s606_s18   ;;  %s118_s22 = sadd.s32 1, %s602_s17 }
   0x5   : > { %s115_s23 = ssub.s32 %s606_s18, %s661_s21  ;;  %p128_p0 = scmp.ne.s32.totalorder %s602_s17, %s598_s16 }
   0x6   : > { %p116_p1 = scmp.eq.s32.totalorder %s115_s23, 0  ;;  %p129_p2 = scmp.eq.s32.totalorder %s657_s19, 1 }
   0x7   : > { %p134_p3 = scmp.ne.s32.totalorder %s598_s16, %s594_s15  ;;  %p135_p4 = scmp.eq.s32.totalorder %s441_s20, 1 }
   0x8   : > { %s672_s24 = scalar_select %p116_p1, %s602_s17, %s118_s22  }
   0x9   : > { %p674_p5 = por %p129_p2, %p128_p0  ;;  %p678_p6 = por %p135_p4, %p134_p3 }
   0xa   : > { %p444_p7 = scmp.ge.s32.totalorder %s606_s18, 1  ;;  %p178_p8 = scmp.lt.s32.totalorder %s606_s18, 3 }
   0xc   : > { %p179_p9 = pnand %p444_p7, %p178_p8 }
   0xd   : > { %v253_v0 = vld [vmem:[%s859_s1 + $0x80] sm:$0xff] (!%p179_p9)  ;;  %v254_v1 = vld [vmem:[%s859_s1 + $0x88] sm:$0xff] (!%p179_p9)  ;;  %s446_s7 = sshll.u32 (!%p179_p9), %s657_s19, 2  ;;  %v255_v5 = vld [vmem:[%s859_s1 + $0x90] sm:$0xff] (!%p179_p9)  ;;  %s207_s8 = sand.u32 (!%p179_p9), 1, %s598_s16  }
   0xe   : > { %182 = sbr.rel (%p179_p9) target bundleno = 284 (0x11c), region = 36  ;;  %v237_v2 = vld [vmem:[%s859_s1] sm:$0xff] (!%p179_p9)  ;;  %v277_v3 = vpack.c.bf16 (!%p179_p9), %v254_v1, %v253_v0  ;;  %v238_v4 = vld [vmem:[%s859_s1 + $0x8] sm:$0xff] (!%p179_p9)  ;;  %v256_v6 = vld [vmem:[%s859_s1 + $0x98] sm:$0xff] (!%p179_p9)  ;;  %p211_p10 = scmp.lt.s32.totalorder (!%p179_p9), %s446_s7, 7 }
   0xf   : > { %v269_v7 = vpack.c.bf16 (!%p179_p9), %v238_v4, %v237_v2  ;;  %v278_v8 = vpack.c.bf16 (!%p179_p9), %v256_v6, %v255_v5  ;;  %v239_v9 = vld [vmem:[%s859_s1 + $0x10] sm:$0xff] (!%p179_p9)  ;;  %v240_v10 = vld [vmem:[%s859_s1 + $0x18] sm:$0xff] (!%p179_p9)  ;;  %v257_v11 = vld [vmem:[%s859_s1 + $0xa0] sm:$0xff] (!%p179_p9)  ;;  %s458_s22 = sshll.u32 (!%p179_p9), %s657_s19, 9  ;;  %s817_s19 = scalar_lea.sflag (!%p179_p9), [#allocation3], %s207_s8 }
  0x10   : > { %459 = vmatprep.subr.bf16.mxu0 (!%p179_p9), %v277_v3  ;;  %487 = vmatprep.subr.bf16.mxu1 (!%p179_p9), %v277_v3  ;;  %v258_v12 = vld [vmem:[%s859_s1 + $0xa8] sm:$0xff] (!%p179_p9)  ;;  %v270_v13 = vpack.c.bf16 (!%p179_p9), %v240_v10, %v239_v9  ;;  %v241_v15 = vld [vmem:[%s859_s1 + $0x20] sm:$0xff] (!%p179_p9)  ;;  %v259_v17 = vld [vmem:[%s859_s1 + $0xb0] sm:$0xff] (!%p179_p9)  ;;  %s813_s29 = scalar_lea.hbm (!%p179_p9), %s862_s4, %s458_s22  ;;  %s608_s5 = smov (!%p179_p9), [#allocation2]  }
  0x11   : > { %460 = vmatpush3.bf16.msra.mxu0 (!%p179_p9), %v269_v7  ;;  %495 = vmatpush3.bf16.msra.mxu1 (!%p179_p9), %v269_v7  ;;  %v279_v14 = vpack.c.bf16 (!%p179_p9), %v258_v12, %v257_v11  ;;  %v242_v16 = vld [vmem:[%s859_s1 + $0x28] sm:$0xff] (!%p179_p9)  ;;  %v260_v18 = vld [vmem:[%s859_s1 + $0xb8] sm:$0xff] (!%p179_p9)  ;;  %v243_v21 = vld [vmem:[%s859_s1 + $0x30] sm:$0xff] (!%p179_p9)  ;;  %s548_s6 = sshll.u32 (!%p179_p9), %s608_s5, 4  ;;  %s549_s6 = int_to_ptr.vmem [resolvable:$false] %s548_s6 }
  0x12   : > { %461 = vmatprep.subr.bf16.mxu0 (!%p179_p9), %v278_v8  ;;  %488 = vmatprep.subr.bf16.mxu1 (!%p179_p9), %v278_v8  ;;  %v271_v19 = vpack.c.bf16 (!%p179_p9), %v242_v16, %v241_v15  ;;  %v280_v20 = vpack.c.bf16 (!%p179_p9), %v260_v18, %v259_v17  ;;  %v244_v22 = vld [vmem:[%s859_s1 + $0x38] sm:$0xff] (!%p179_p9)  ;;  %v261_v23 = vld [vmem:[%s859_s1 + $0xc0] sm:$0xff] (!%p179_p9)  ;;  %v262_v24 = vld [vmem:[%s859_s1 + $0xc8] sm:$0xff] (!%p179_p9) }
  0x13   : > { %v272_v29 = vpack.c.bf16 (!%p179_p9), %v244_v22, %v243_v21  ;;  %v281_v32 = vpack.c.bf16 (!%p179_p9), %v262_v24, %v261_v23  ;;  %v245_v33 = vld [vmem:[%s859_s1 + $0x40] sm:$0xff] (!%p179_p9)  ;;  %v246_v34 = vld [vmem:[%s859_s1 + $0x48] sm:$0xff] (!%p179_p9)  ;;  %v263_v35 = vld [vmem:[%s859_s1 + $0xd0] sm:$0xff] (!%p179_p9) }
  0x14   : > { %v264_v36 = vld [vmem:[%s859_s1 + $0xd8] sm:$0xff] (!%p179_p9)  ;;  %v273_v37 = vpack.c.bf16 (!%p179_p9), %v246_v34, %v245_v33  ;;  %v247_v39 = vld [vmem:[%s859_s1 + $0x50] sm:$0xff] (!%p179_p9)  ;;  %v265_v41 = vld [vmem:[%s859_s1 + $0xe0] sm:$0xff] (!%p179_p9) }
  0x15   : > { %s870_s7 = smov (!%p211_p10, %s446_s7), 7  ;;  %462 = vmatpush3.bf16.msra.mxu0 %v270_v13  ;;  %496 = vmatpush3.bf16.msra.mxu1 %v270_v13  ;;  %v282_v38 = vpack.c.bf16 %v264_v36, %v263_v35  ;;  %v248_v40 = vld [vmem:[%s859_s1 + $0x58] sm:$0xff]  ;;  %v266_v42 = vld [vmem:[%s859_s1 + $0xe8] sm:$0xff]  ;;  %v249_v45 = vld [vmem:[%s859_s1 + $0x60] sm:$0xff] }
  0x16   : > { %s457_s10 = sshll.u32 %s870_s7, 4  ;;  %463 = vmatprep.subr.bf16.mxu0 %v279_v14  ;;  %489 = vmatprep.subr.bf16.mxu1 %v279_v14  ;;  %v274_v43 = vpack.c.bf16 %v248_v40, %v247_v39  ;;  %v283_v44 = vpack.c.bf16 %v266_v42, %v265_v41  ;;  %v250_v46 = vld [vmem:[%s859_s1 + $0x68] sm:$0xff]  ;;  %v267_v47 = vld [vmem:[%s859_s1 + $0xf0] sm:$0xff]  ;;  %v268_v48 = vld [vmem:[%s859_s1 + $0xf8] sm:$0xff]  ;;  %s450_s9 = sshll.u32 %s870_s7, 3 }
  0x17   : > { %s733_s23 = scalar_lea.vmem %s858_s0, %s457_s10  ;;  %v275_v49 = vpack.c.bf16 %v250_v46, %v249_v45  ;;  %v284_v50 = vpack.c.bf16 %v268_v48, %v267_v47  ;;  %v251_v51 = vld [vmem:[%s859_s1 + $0x70] sm:$0xff]  ;;  %v252_v52 = vld [vmem:[%s859_s1 + $0x78] sm:$0xff]  ;;  %s445_s10 = sshll.u32 %s207_s8, 5  ;;  %v451_v62 = vld [vmem:[%s860_s2] ss:$0 sm:$0xff] }
  0x18   : > { %v226_v25 = vld [vmem:[%s733_s23 + $0x8] sm:$0xff]  ;;  %v228_v26 = vld [vmem:[%s733_s23 + $0x18] sm:$0xff]  ;;  %v225_v53 = vld [vmem:[%s733_s23] sm:$0xff]  ;;  %v276_v54 = vpack.c.bf16 %v252_v52, %v251_v51  ;;  %s221_s13 = scalar_lea.vmem %s861_s3, %s450_s9  ;;  %s209_s7 = scalar_lea.vmem [#allocation2], %s445_s10 }
  0x19   : > { %v230_v27 = vld [vmem:[%s733_s23 + $0x28] sm:$0xff]  ;;  %v232_v28 = vld [vmem:[%s733_s23 + $0x38] sm:$0xff]  ;;  %464 = vmatpush3.bf16.msra.mxu0 %v271_v19  ;;  %497 = vmatpush3.bf16.msra.mxu1 %v271_v19  ;;  %v234_v30 = vpack.c.bf16 %v228_v26, %v226_v25  ;;  %v227_v55 = vld [vmem:[%s733_s23 + $0x10] sm:$0xff]  ;;  %s367_s20 = sshll.u32 %s209_s7, 4  ;;  %s550_s9 = scalar_lea.vmem %s549_s6, 1024  ;;  %s808_s20 = int_to_ptr.vmem [resolvable:$true] %s367_s20 }
  0x1a   : > { %v236_v31 = vpack.c.bf16 %v232_v28, %v230_v27  ;;  %465 = vmatprep.subr.bf16.mxu0 %v280_v20  ;;  %490 = vmatprep.subr.bf16.mxu1 %v280_v20  ;;  %v229_v56 = vld [vmem:[%s733_s23 + $0x20] sm:$0xff]  ;;  %v231_v57 = vld [vmem:[%s733_s23 + $0x30] sm:$0xff]  ;;  %v233_v58 = vpack.c.bf16 %v227_v55, %v225_v53  ;;  %v342_v13 = vld [vmem:[%s221_s13 + $0x8] sm:$0xff]  ;;  %s544_s30 = scalar_lea.vmem %s808_s20, 512  ;;  %p551_p0 = scmp.lt.s32.totalorder %s808_s20, %s549_s6 }
  0x1b   : > { %324 = vmatprep.mubr.bf16.mxu0 %v234_v30  ;;  %v235_v59 = vpack.c.bf16 %v231_v57, %v229_v56  ;;  %v341_v5 = vld [vmem:[%s221_s13] sm:$0xff]  ;;  %v343_v6 = vld [vmem:[%s221_s13 + $0x10] sm:$0xff]  ;;  %v344_v14 = vld [vmem:[%s221_s13 + $0x18] sm:$0xff]  ;;  %p545_p11 = scmp.ne.s32.totalorder %s808_s20, %s544_s30  ;;  %p552_p1 = scmp.lt.s32.totalorder %s550_s9, %s544_s30 }
  0x1c   : > { %332 = vmatprep.mubr.bf16.mxu1 %v236_v31 }
  0x1d   : > { %466 = vmatpush3.bf16.msra.mxu0 %v272_v29  ;;  %498 = vmatpush3.bf16.msra.mxu1 %v272_v29  ;;  %p546_p12 = pnand %p545_p11, %p674_p5  ;;  %p553_p2 = por %p552_p1, %p551_p0 }
  0x1e   : > { %467 = vmatprep.subr.bf16.mxu0 %v281_v32  ;;  %491 = vmatprep.subr.bf16.mxu1 %v281_v32 }
  0x1f   : > { %p547_p13 = pneg %p546_p12 }
  0x21   : > { %468 = vmatpush3.bf16.msra.mxu0 %v273_v37  ;;  %499 = vmatpush3.bf16.msra.mxu1 %v273_v37  ;;  %p554_p3 = pnand %p553_p2, %p547_p13 }
  0x22   : > { %469 = vmatprep.subr.bf16.mxu0 %v282_v38  ;;  %492 = vmatprep.subr.bf16.mxu1 %v282_v38 }
  0x25   : > { %470 = vmatpush3.bf16.msra.mxu0 %v274_v43  ;;  %500 = vmatpush3.bf16.msra.mxu1 %v274_v43 }
  0x26   : > { %471 = vmatprep.subr.bf16.mxu0 %v283_v44  ;;  %493 = vmatprep.subr.bf16.mxu1 %v283_v44 }
  0x29   : > { %472 = vmatpush3.bf16.msra.mxu0 %v275_v49  ;;  %501 = vmatpush3.bf16.msra.mxu1 %v275_v49 }
  0x2a   : > { %473 = vmatprep.subr.bf16.mxu0 %v284_v50  ;;  %494 = vmatprep.subr.bf16.mxu1 %v284_v50 }
  0x2d   : > { %474 = vmatpush3.bf16.msra.mxu0 %v276_v54  ;;  %502 = vmatpush3.bf16.msra.mxu1 %v276_v54 }
  0x30   : > { %325 = vmatmul.mubr.bf16.vlgmr.msra.gmra.mrb[0].mxu0 %v233_v58  ;;  %333 = vmatmul.mubr.bf16.vlgmr.msra.gmra.mrb[0].mxu1 %v235_v59 }
 0x103   : > { %v475_v60 = vpop.f32.mrb[0].mxu0  ;;  %v481_v61 = vpop.f32.mrb[0].mxu1 }
 0x104   : > { %v476_v63 = vpop.f32.mrb[1].mxu0  ;;  %v482_v0 = vpop.f32.mrb[1].mxu1 }
 0x105   : > { %v477_v1 = vadd.f32 %v476_v63, %v475_v60  ;;  %v483_v2 = vadd.f32 %v482_v0, %v481_v61  ;;  %v478_v3 = vpop.f32.mrb[2].mxu0  ;;  %v484_v4 = vpop.f32.mrb[2].mxu1 }
 0x106   : > { %v479_v7 = vpop.f32.mrb[3].mxu0  ;;  %v485_v8 = vpop.f32.mrb[3].mxu1 }
 0x107   : > { %v327_v9 = vadd.f32 %v477_v1, %v451_v62  ;;  %v335_v10 = vadd.f32 %v483_v2, %v451_v62  ;;  %v480_v11 = vadd.f32 %v479_v7, %v478_v3  ;;  %v486_v12 = vadd.f32 %v485_v8, %v484_v4 }
 0x109   : > { %v345_v15 = vadd.f32 %v341_v5, %v327_v9  ;;  %v347_v16 = vadd.f32 %v343_v6, %v335_v10  ;;  %v330_v17 = vadd.f32 %v480_v11, %v451_v62  ;;  %v338_v18 = vadd.f32 %v486_v12, %v451_v62 }
 0x10b   : > { %349 = vst [vmem:[%s209_s7] sm:$0xff] %v345_v15  ;;  %351 = vst [vmem:[%s209_s7 + $0x10] sm:$0xff] %v347_v16  ;;  %v346_v19 = vadd.f32 %v342_v13, %v330_v17  ;;  %v348_v20 = vadd.f32 %v344_v14, %v338_v18 }
 0x10d   : > { %350 = vst [vmem:[%s209_s7 + $0x8] sm:$0xff] %v346_v19  ;;  %352 = vst [vmem:[%s209_s7 + $0x18] sm:$0xff] %v348_v20 }
 0x10e   : > { %557 = shalt.err (!%p554_p3)
}
 0x10f   : > { %s558_s8 = scalar_lea.hbm %s813_s29, 512  ;;  %s562_s12 = scalar_lea.hbm %s862_s4, 1024 }
 0x110   : > { %p559_p4 = scmp.ne.s32.totalorder %s813_s29, %s558_s8  ;;  %p563_p9 = scmp.lt.u32.totalorder %s813_s29, %s862_s4 }
 0x111   : > { %p564_p10 = scmp.lt.u32.totalorder %s562_s12, %s558_s8  ;;  %p566_p12 = scmp.lt.u32.totalorder %s558_s8, %s813_s29 }
 0x112   : > { %p560_p7 = pnand %p559_p4, %p674_p5 }
 0x113   : > { %p565_p11 = por %p564_p10, %p563_p9 }
 0x114   : > { %p561_p8 = pneg %p560_p7 }
 0x115   : > { %p567_p13 = por %p566_p12, %p565_p11 }
 0x117   : > { %p568_p0 = pnand %p567_p13, %p561_p8 }
 0x119   : > { %571 = shalt.err (!%p568_p0)
}
 0x11a   : > { %s609_s23 = smov 128   ;;  %s610_s7 = smov 8  }
 0x11b   : > { %503 = dma.vmem_to_hbm [thread:$0]  (%p674_p5), %s808_s20, 512, %s813_s29, %s817_s19, %s609_s23, %s609_s23, %s610_s7  }
 0x11c PF: > { %p509_p1 = scmp.ge.s32.totalorder %s606_s18, 2  ;;  %s382_s22 = sand.u32 1, %s594_s15  }
 0x11d   : > { %s383_s27 = scalar_lea.sflag [#allocation3], %s382_s22 }
 0x11e   : > { %p506_p2 = pnand %p509_p1, %p678_p6 }
 0x120   : > { %589 = dma.done.wait (!%p506_p2), %s383_s27, 512  }
 0x121   : > { %591 = vsyncadd (!%p506_p2), %s383_s27, 4294966784  ;;  %p14_p3 = scmp.ge.s32.totalorder %s661_s21, 4   ;;  %s865_s15 = smov %s598_s16 }
 0x122   : > { %s866_s16 = smov %s602_s17  ;;  %s867_s17 = smov %s672_s24 }
 0x123   : > { %s868_s18 = smov %s661_s21  ;;  %16 = sbr.rel (!%p14_p3) target bundleno = 3 (0x3), region = 74 }
 0x12a   :  { %388 = vsyncpa [#allocation3], 1 }
 0x12b   :  { %390 = vsyncpa [#allocation3 + $0x1], 1 }

</bundles_post_ra>
